<compile_context>
chip_gen: v6e
topology: v6e:2x2x1
jax: 0.10.0
libtpu: 0.0.40
codegen_flags: <defaults>
</compile_context>

<pallas_src>
import math

import jax
import jax.numpy as jnp
from jax.experimental import pallas as pl

# ----------------------------- config ---------------------------------------
B = 2            # batch
S = 8            # seq_len == audio_n_segments
D = 128          # stand-in for 2048 (video feat dim == audio_embed_size)
DI = 32          # stand-in for NonLocalBlock dim_inner=256
HEADS = 8        # head_num
HD = D // HEADS  # per-head dim (16)
NCLASSES = 8
TA = 40          # audio frames (divisible by S)
FA = 16          # audio freq bins
FR = 64          # stand-in for audio-resnet feature dim (512)
V_IN = 3         # video channels feeding the stand-in encoder
V_IN_PAD = 8     # zero-padded K for the tiny 3->D matmul
A_IN = (TA // S) * FA            # 80 audio features per segment
NORM_VALUE = 255.0
MEAN = 100.0 / NORM_VALUE
BN_SCALE = 1.0 / math.sqrt(1.0 + 1e-5)   # eval BatchNorm with fresh stats

W_LANES = 128      # weight slab width
B_LANES = 3 * D    # bias slab width (384, widest bias = fused QKV bias)
OUT_LANES = 128    # packed output width

# ----------------------------- packed slab layouts ----------------------------
_W_LAYOUT = (
    ("v_w",     V_IN_PAD, D),        # stand-in video encoder linear
    ("ar_w",    A_IN,     FR),       # stand-in audio backbone linear
    ("afc_w",   FR,       D),        # a_fc Linear (BN folded)
    ("nl_qkv",  D,        3 * DI),   # NonLocal(video) theta|phi|g fused
    ("nl_out",  DI,       D),        # NonLocal(video) out Linear (BN folded)
    ("nla_qkv", D,        3 * DI),   # NonLocal(audio)
    ("nla_out", DI,       D),
    ("v2a_out", D,        D),        # MHA output projections
    ("a2v_out", D,        D),
    ("fc",      2 * D,    NCLASSES), # final classifier
)


def _round8(n):
    return ((n + 7) // 8) * 8


def _build_w_layout():
    table, off = {}, 0
    for name, r, c in _W_LAYOUT:
        table[name] = (off, r, c)
        off += _round8(r)
    return table, off


_W_OFF, W_ROWS = _build_w_layout()

# bias slab: one row per bias vector (width = real length, rest zero)
_B_ROWS = {
    "v_b": (0, D), "ar_b": (1, FR), "afc_b": (2, D),
    "nl_qkv_b": (3, 3 * DI), "nl_out_b": (4, D),
    "nla_qkv_b": (5, 3 * DI), "nla_out_b": (6, D),
    "from_v_b": (7, 3 * D), "from_a_b": (8, 3 * D),
    "v2a_out_b": (9, D), "a2v_out_b": (10, D),
    "ta_wv": (11, D), "ta_wa": (12, D),     # Conv1d(2D->1,k=1)+BN folded, v|a halves
}
MISC_ROW = 13            # cols 0:S = ta_fc bias, S:S+NCLASSES = fc bias, 16/17 = alphas
ALPHA_NL_COL = 16
ALPHA_NLA_COL = 17
TAFC_ROW0 = 14           # rows 14..14+S: Linear(S,S) weight, stored transposed
B_ROWS = 24

# ----------------------------- fused Pallas kernel ---------------------------


def _fused_kernel(vp_ref, af_ref, wslab_ref, wproj_ref, bslab_ref, out_ref):
    f32, bf16 = jnp.float32, jnp.bfloat16

    def W(name):                                  # bf16 weight block (static slice, free)
        o, r, c = _W_OFF[name]
        return wslab_ref[o:o + r, 0:c]

    def bias(name):                               # f32 (1, c) bias row
        r, c = _B_ROWS[name]
        return bslab_ref[r:r + 1, 0:c]

    def mm(a_bf, b_bf):                           # MXU: bf16 operands, f32 accumulation
        return jnp.dot(a_bf, b_bf, preferred_element_type=f32)

    def bmm(eq, a_bf, b_bf):
        return jnp.einsum(eq, a_bf, b_bf, preferred_element_type=f32)

    def softmax_last(s):                          # exact softmax (parity with PyTorch)
        m = jnp.max(s, axis=-1, keepdims=True)
        p = jnp.exp(s - m)
        return p / jnp.sum(p, axis=-1, keepdims=True)

    def nonlocal_block(x, qkv_w, qkv_b, out_w, out_b, alpha):
        # x: (B*S, D) f32.  theta/phi/g fused into one (D, 3*DI) matmul.
        x_bf = x.astype(bf16)
        proj = mm(x_bf, qkv_w) + qkv_b                               # (B*S, 3*DI)
        pr = proj.astype(bf16).reshape(B, S, 3 * DI)
        th, ph, g = pr[:, :, 0:DI], pr[:, :, DI:2 * DI], pr[:, :, 2 * DI:3 * DI]
        p = softmax_last(bmm("bqd,bkd->bqk", th, ph) * (DI ** -0.5))
        t = bmm("bqk,bkd->bqd", p.astype(bf16), g).reshape(B * S, DI)
        out = mm(t.astype(bf16), out_w) + out_b                      # BN(eval) folded
        return out + alpha * x

    def attention_core(q_bf, k_bf, v_bf):
        # q/k/v: (B, S, D) bf16 -> ScaledDotProductAttention per head, heads from
        # static lane slices of the already-projected full-width activations.
        scale = 1.0 / math.sqrt(HD)
        outs = []
        for h in range(HEADS):
            lo, hi = h * HD, (h + 1) * HD
            s = bmm("bqd,bkd->bqk", q_bf[:, :, lo:hi], k_bf[:, :, lo:hi]) * scale
            p = softmax_last(s).astype(bf16)
            outs.append(bmm("bqk,bkd->bqd", p, v_bf[:, :, lo:hi]))
        return jnp.concatenate(outs, axis=-1).reshape(B * S, D)      # f32

    alpha_nl = bslab_ref[MISC_ROW:MISC_ROW + 1, ALPHA_NL_COL:ALPHA_NL_COL + 1]
    alpha_nla = bslab_ref[MISC_ROW:MISC_ROW + 1, ALPHA_NLA_COL:ALPHA_NLA_COL + 1]

    # ---- video branch -------------------------------------------------------
    # TODO(synk): frozen 3D-ResNet101 backbone replaced by mean-pool + linear stand-in.
    v0 = mm(vp_ref[...].astype(bf16), W("v_w")) + bias("v_b")        # (B*S, D)
    v_nl = nonlocal_block(v0, W("nl_qkv"), bias("nl_qkv_b"),
                          W("nl_out"), bias("nl_out_b"), alpha_nl)

    # ---- audio branch -------------------------------------------------------
    # TODO(synk): a_resnet (ResNet18 audio CNN) replaced by flatten + linear stand-in.
    a0 = mm(af_ref[...].astype(bf16), W("ar_w")) + bias("ar_b")      # (B*S, FR)
    a1 = jnp.tanh(mm(a0.astype(bf16), W("afc_w")) + bias("afc_b"))   # Linear+BN(folded)+Tanh
    a_nl = nonlocal_block(a1, W("nla_qkv"), bias("nla_qkv_b"),
                          W("nla_out"), bias("nla_out_b"), alpha_nla)

    # ---- fused cross-modal Q/K/V projections (one wide matmul per modality) --
    #   wproj[0] @ video  -> [v2a_K | v2a_V | a2v_Q]
    #   wproj[1] @ audio  -> [v2a_Q | a2v_K | a2v_V]
    v_nl_bf = v_nl.astype(bf16)
    a_nl_bf = a_nl.astype(bf16)
    proj_v = jnp.maximum(mm(v_nl_bf, wproj_ref[0]) + bias("from_v_b"), 0.0)
    proj_a = jnp.maximum(mm(a_nl_bf, wproj_ref[1]) + bias("from_a_b"), 0.0)
    pv = proj_v.astype(bf16).reshape(B, S, 3 * D)
    pa = proj_a.astype(bf16).reshape(B, S, 3 * D)

    # v2a: q = audio, k/v = video
    y_v2a = attention_core(pa[:, :, 0:D], pv[:, :, 0:D], pv[:, :, D:2 * D])
    v2a = jnp.maximum(mm(y_v2a.astype(bf16), W("v2a_out")) + bias("v2a_out_b"), 0.0)
    # a2v: q = video, k/v = audio
    y_a2v = attention_core(pv[:, :, 2 * D:3 * D], pa[:, :, D:2 * D], pa[:, :, 2 * D:3 * D])
    a2v = jnp.maximum(mm(y_a2v.astype(bf16), W("a2v_out")) + bias("a2v_out_b"), 0.0)

    v2 = (v_nl + v2a).reshape(B, S, D)
    a2 = (a_nl + a2v).reshape(B, S, D)

    # ---- temporal attention head (VPU/XLU math, no narrow MXU pushes) --------
    # Conv1d(2D->1, k=1, no bias) + BN(folded) + Tanh over the v|a channel halves.
    wv = bias("ta_wv").reshape(1, 1, D)
    wa = bias("ta_wa").reshape(1, 1, D)
    ht = jnp.tanh(jnp.sum(v2 * wv + a2 * wa, axis=-1))               # (B, S)
    # Linear(S, S) + ReLU  (weight stored transposed; done as mul + sublane reduce)
    tafc_t = bslab_ref[TAFC_ROW0:TAFC_ROW0 + S, 0:S]                 # (S, S) = W^T
    tafc_b = bslab_ref[MISC_ROW:MISC_ROW + 1, 0:S]                   # (1, S)
    at = jnp.maximum(jnp.sum(ht[:, :, None] * tafc_t[None, :, :], axis=1) + tafc_b,
                     0.0)                                            # (B, S) == gamma

    # temporal-attention-weighted mean pooling + final fc (dropout = identity, eval)
    at3 = at[:, :, None]
    pooled_v = jnp.sum(v2 * at3, axis=1) * (1.0 / S)                 # (B, D)
    pooled_a = jnp.sum(a2 * at3, axis=1) * (1.0 / S)                 # (B, D)
    pooled = jnp.concatenate([pooled_v, pooled_a], axis=-1).astype(bf16)   # (B, 2D)
    fc_b = bslab_ref[MISC_ROW:MISC_ROW + 1, S:S + NCLASSES]
    logits = mm(pooled, W("fc")) + fc_b                              # (B, NCLASSES)

    # pack logits (lanes 0:8) and gamma (lanes 8:16) into one lane-dense row.
    pad = jnp.zeros((B, OUT_LANES - NCLASSES - S), f32)
    out_ref[...] = jnp.concatenate([logits, at, pad], axis=-1)


# ----------------------------- forward wrapper --------------------------------


def vaanet_erase_forward(v_raw, a_raw, params):
    # ---- video pre-processing ----------------------------------------------
    v = v_raw / NORM_VALUE - MEAN                       # div_/sub_ normalization
    v_pooled = jnp.mean(v, axis=(3, 4, 5)).reshape(B * S, V_IN)
    v_pooled = jnp.pad(v_pooled, ((0, 0), (0, V_IN_PAD - V_IN)))   # zero-pad K: 3 -> 8

    # ---- audio segmentation --------------------------------------------------
    # Equivalent to the PyTorch transpose/chunk/stack/flatten chain with rows
    # pre-permuted to batch-major order (legal: the per-row audio backbone and
    # a_fc commute with a row permutation, and the final permute lands at (b,s)).
    a_flat = a_raw.reshape(B, S, A_IN).reshape(B * S, A_IN)

    out = pl.pallas_call(
        _fused_kernel,
        out_shape=jax.ShapeDtypeStruct((B, OUT_LANES), jnp.float32),
        cost_estimate=pl.CostEstimate(flops=5_600_000,
                                      transcendentals=4_600,
                                      bytes_accessed=500_000),
    )(v_pooled.astype(jnp.float32), a_flat.astype(jnp.float32),
      params["wslab"], params["wproj"], params["bslab"])

    logits = out[:, 0:NCLASSES]
    gamma = out[:, NCLASSES:NCLASSES + S]
    return logits, gamma


# ----------------------------- parameter init ---------------------------------


def init_params(key):
    keys = iter(jax.random.split(key, 48))

    def rnd(shape, scale=0.05):
        return scale * jax.random.normal(next(keys), shape, dtype=jnp.float32)

    # ---- bf16 weight slab ----------------------------------------------------
    wslab = jnp.zeros((W_ROWS, W_LANES), jnp.float32)

    def putw(name, mat):
        nonlocal wslab
        o, _, _ = _W_OFF[name]
        r, c = mat.shape
        wslab = wslab.at[o:o + r, 0:c].set(mat)

    putw("v_w", rnd((V_IN, D)))                      # rows 3..7 stay zero (K padding)
    putw("ar_w", rnd((A_IN, FR)))
    putw("afc_w", rnd((FR, D)) * BN_SCALE)           # BatchNorm1d(eval) folded
    putw("nl_qkv", rnd((D, 3 * DI)))                 # theta | phi | g
    putw("nl_out", rnd((DI, D)) * BN_SCALE)          # out Linear + BN folded
    putw("nla_qkv", rnd((D, 3 * DI)))
    putw("nla_out", rnd((DI, D)) * BN_SCALE)
    putw("v2a_out", rnd((D, D)))
    putw("a2v_out", rnd((D, D)))
    putw("fc", rnd((2 * D, NCLASSES)))               # rows 0:D video, D:2D audio

    # ---- fused cross-modal projection weights --------------------------------
    #   wproj[0] (video input):  [v2a_K | v2a_V | a2v_Q] column blocks
    #   wproj[1] (audio input):  [v2a_Q | a2v_K | a2v_V]
    wproj = rnd((2, D, 3 * D))

    # ---- f32 bias / scalar slab ----------------------------------------------
    bslab = jnp.zeros((B_ROWS, B_LANES), jnp.float32)

    def putb(name, vec):
        nonlocal bslab
        r, c = _B_ROWS[name]
        bslab = bslab.at[r:r + 1, 0:c].set(vec.reshape(1, c))

    putb("v_b", rnd((D,)))
    putb("ar_b", rnd((FR,)))
    putb("afc_b", rnd((D,)) * BN_SCALE)
    putb("nl_qkv_b", rnd((3 * DI,)))
    putb("nl_out_b", rnd((D,)) * BN_SCALE)
    putb("nla_qkv_b", rnd((3 * DI,)))
    putb("nla_out_b", rnd((D,)) * BN_SCALE)
    putb("from_v_b", rnd((3 * D,)))
    putb("from_a_b", rnd((3 * D,)))
    putb("v2a_out_b", rnd((D,)))
    putb("a2v_out_b", rnd((D,)))
    putb("ta_wv", rnd((D,)) * BN_SCALE)              # Conv1d weight (v half), BN folded
    putb("ta_wa", rnd((D,)) * BN_SCALE)              # Conv1d weight (a half), BN folded
    # misc row: ta_fc bias | fc bias | NonLocal alphas (nn.Parameter([0.0]))
    bslab = bslab.at[MISC_ROW, 0:S].set(rnd((S,)))
    bslab = bslab.at[MISC_ROW, S:S + NCLASSES].set(rnd((NCLASSES,)))
    bslab = bslab.at[MISC_ROW, ALPHA_NL_COL].set(0.0)
    bslab = bslab.at[MISC_ROW, ALPHA_NLA_COL].set(0.0)
    # Linear(S, S) weight, stored transposed: Wt[i, j] = W[j, i]
    bslab = bslab.at[TAFC_ROW0:TAFC_ROW0 + S, 0:S].set(rnd((S, S)))

    return {"wslab": wslab.astype(jnp.bfloat16),
            "wproj": wproj.astype(jnp.bfloat16),
            "bslab": bslab}


# ----------------------------- main -------------------------------------------

if __name__ == "__main__":
    key = jax.random.PRNGKey(0)
    kv, ka, kp = jax.random.split(key, 3)
    # v: (batch, seq_len, nc=3, snippet_duration=4, sample_size=8, sample_size=8)
    v_raw = jax.random.uniform(kv, (B, S, 3, 4, 8, 8),
                               minval=0.0, maxval=255.0, dtype=jnp.float32)
    # a: (batch, audio_time=40, freq=16)
    a_raw = jax.random.normal(ka, (B, TA, FA), dtype=jnp.float32)

    params = init_params(kp)
    fwd = jax.jit(vaanet_erase_forward)
    logits, gamma = fwd(v_raw, a_raw, params)
    jax.block_until_ready((logits, gamma))
    assert logits.shape == (B, NCLASSES) and gamma.shape == (B, S)
    print("KERNEL_OK")
</pallas_src>

<mosaic_0001>
module attributes {stable_mosaic.version = 11 : i64} {
  func.func @_fused_kernel(%arg0: memref<16x8xf32, #tpu.memory_space<vmem>>, %arg1: memref<16x80xf32, #tpu.memory_space<vmem>>, %arg2: memref<984x128xbf16, #tpu.memory_space<vmem>>, %arg3: memref<2x128x384xbf16, #tpu.memory_space<vmem>>, %arg4: memref<24x384xf32, #tpu.memory_space<vmem>>, %arg5: memref<2x128xf32, #tpu.memory_space<vmem>>) attributes {dimension_semantics = [], scalar_prefetch = 0 : i64, scratch_operands = 0 : i64, tpu.core_type = #tpu.core_type<tc>} {
    %c13 = arith.constant 13 : index
    %c16 = arith.constant 16 : index
    %0 = vector.load %arg4[%c13, %c16] : memref<24x384xf32, #tpu.memory_space<vmem>>, vector<1x1xf32>
    %c13_0 = arith.constant 13 : index
    %c17 = arith.constant 17 : index
    %1 = vector.load %arg4[%c13_0, %c17] : memref<24x384xf32, #tpu.memory_space<vmem>>, vector<1x1xf32>
    %c0 = arith.constant 0 : index
    %c0_1 = arith.constant 0 : index
    %2 = vector.load %arg0[%c0, %c0_1] : memref<16x8xf32, #tpu.memory_space<vmem>>, vector<16x8xf32>
    %3 = arith.truncf %2 : vector<16x8xf32> to vector<16x8xbf16>
    %c0_2 = arith.constant 0 : index
    %c0_3 = arith.constant 0 : index
    %4 = vector.load %arg2[%c0_2, %c0_3] : memref<984x128xbf16, #tpu.memory_space<vmem>>, vector<8x128xbf16>
    %cst = arith.constant dense<0.000000e+00> : vector<16x128xf32>
    %5 = tpu.matmul %3, %4, %cst {dimension_numbers = #tpu.dot_dimension_numbers<[1], [0], [0], [1], [0, 0, 1, 1], [], []>} : vector<16x8xbf16>, vector<8x128xbf16>, vector<16x128xf32> -> vector<16x128xf32>
    %c0_4 = arith.constant 0 : index
    %c0_5 = arith.constant 0 : index
    %6 = vector.load %arg4[%c0_4, %c0_5] : memref<24x384xf32, #tpu.memory_space<vmem>>, vector<1x128xf32>
    %7 = vector.broadcast %6 : vector<1x128xf32> to vector<16x128xf32>
    %8 = arith.addf %5, %7 : vector<16x128xf32>
    %c152 = arith.constant 152 : index
    %c0_6 = arith.constant 0 : index
    %9 = vector.load %arg2[%c152, %c0_6] : memref<984x128xbf16, #tpu.memory_space<vmem>>, vector<128x96xbf16>
    %c3 = arith.constant 3 : index
    %c0_7 = arith.constant 0 : index
    %10 = vector.load %arg4[%c3, %c0_7] : memref<24x384xf32, #tpu.memory_space<vmem>>, vector<1x96xf32>
    %c280 = arith.constant 280 : index
    %c0_8 = arith.constant 0 : index
    %11 = vector.load %arg2[%c280, %c0_8] : memref<984x128xbf16, #tpu.memory_space<vmem>>, vector<32x128xbf16>
    %c4 = arith.constant 4 : index
    %c0_9 = arith.constant 0 : index
    %12 = vector.load %arg4[%c4, %c0_9] : memref<24x384xf32, #tpu.memory_space<vmem>>, vector<1x128xf32>
    %13 = arith.truncf %8 : vector<16x128xf32> to vector<16x128xbf16>
    %cst_10 = arith.constant dense<0.000000e+00> : vector<16x96xf32>
    %14 = tpu.matmul %13, %9, %cst_10 {dimension_numbers = #tpu.dot_dimension_numbers<[1], [0], [0], [1], [0, 0, 1, 1], [], []>} : vector<16x128xbf16>, vector<128x96xbf16>, vector<16x96xf32> -> vector<16x96xf32>
    %15 = vector.broadcast %10 : vector<1x96xf32> to vector<16x96xf32>
    %16 = arith.addf %14, %15 : vector<16x96xf32>
    %17 = arith.truncf %16 : vector<16x96xf32> to vector<16x96xbf16>
    %18 = vector.shape_cast %17 : vector<16x96xbf16> to vector<2x8x96xbf16>
    %19 = vector.extract_strided_slice %18 {offsets = [0, 0, 0], sizes = [2, 8, 32], strides = [1, 1, 1]} : vector<2x8x96xbf16> to vector<2x8x32xbf16>
    %20 = vector.extract_strided_slice %18 {offsets = [0, 0, 32], sizes = [2, 8, 32], strides = [1, 1, 1]} : vector<2x8x96xbf16> to vector<2x8x32xbf16>
    %21 = vector.extract_strided_slice %18 {offsets = [0, 0, 64], sizes = [2, 8, 32], strides = [1, 1, 1]} : vector<2x8x96xbf16> to vector<2x8x32xbf16>
    "tpu.trace_start"() <{level = 10 : i32, message = "bqd,bkd->bqk"}> : () -> ()
    %cst_11 = arith.constant dense<0.000000e+00> : vector<2x8x8xf32>
    %22 = tpu.matmul %19, %20, %cst_11 {dimension_numbers = #tpu.dot_dimension_numbers<[2], [2], [1], [1], [0, 0, 0, 1, 1, 1], [0], [0]>} : vector<2x8x32xbf16>, vector<2x8x32xbf16>, vector<2x8x8xf32> -> vector<2x8x8xf32>
    "tpu.trace_stop"() : () -> ()
    %cst_12 = arith.constant 0.176776692 : f32
    %23 = vector.broadcast %cst_12 : f32 to vector<2x8x8xf32>
    %24 = arith.mulf %22, %23 : vector<2x8x8xf32>
    %cst_13 = arith.constant dense<0xFF800000> : vector<2x8xf32>
    %25 = vector.multi_reduction <maximumf>, %24, %cst_13 [2] : vector<2x8x8xf32> to vector<2x8xf32>
    %26 = vector.shape_cast %25 : vector<2x8xf32> to vector<2x8x1xf32>
    %27 = vector.broadcast %26 : vector<2x8x1xf32> to vector<2x8x8xf32>
    %28 = arith.subf %24, %27 : vector<2x8x8xf32>
    %29 = math.exp %28 : vector<2x8x8xf32>
    %cst_14 = arith.constant dense<0.000000e+00> : vector<2x8xf32>
    %30 = vector.multi_reduction <add>, %29, %cst_14 [2] : vector<2x8x8xf32> to vector<2x8xf32>
    %31 = vector.shape_cast %30 : vector<2x8xf32> to vector<2x8x1xf32>
    %32 = vector.broadcast %31 : vector<2x8x1xf32> to vector<2x8x8xf32>
    %33 = arith.divf %29, %32 : vector<2x8x8xf32>
    %34 = arith.truncf %33 : vector<2x8x8xf32> to vector<2x8x8xbf16>
    "tpu.trace_start"() <{level = 10 : i32, message = "bqk,bkd->bqd"}> : () -> ()
    %cst_15 = arith.constant dense<0.000000e+00> : vector<2x8x32xf32>
    %35 = tpu.matmul %34, %21, %cst_15 {dimension_numbers = #tpu.dot_dimension_numbers<[2], [1], [1], [2], [0, 0, 0, 1, 1, 2], [0], [0]>} : vector<2x8x8xbf16>, vector<2x8x32xbf16>, vector<2x8x32xf32> -> vector<2x8x32xf32>
    "tpu.trace_stop"() : () -> ()
    %36 = vector.shape_cast %35 : vector<2x8x32xf32> to vector<16x32xf32>
    %37 = arith.truncf %36 : vector<16x32xf32> to vector<16x32xbf16>
    %cst_16 = arith.constant dense<0.000000e+00> : vector<16x128xf32>
    %38 = tpu.matmul %37, %11, %cst_16 {dimension_numbers = #tpu.dot_dimension_numbers<[1], [0], [0], [1], [0, 0, 1, 1], [], []>} : vector<16x32xbf16>, vector<32x128xbf16>, vector<16x128xf32> -> vector<16x128xf32>
    %39 = vector.broadcast %12 : vector<1x128xf32> to vector<16x128xf32>
    %40 = arith.addf %38, %39 : vector<16x128xf32>
    %41 = vector.broadcast %0 : vector<1x1xf32> to vector<16x128xf32>
    %42 = arith.mulf %41, %8 : vector<16x128xf32>
    %43 = arith.addf %40, %42 : vector<16x128xf32>
    %c0_17 = arith.constant 0 : index
    %c0_18 = arith.constant 0 : index
    %44 = vector.load %arg1[%c0_17, %c0_18] : memref<16x80xf32, #tpu.memory_space<vmem>>, vector<16x80xf32>
    %45 = arith.truncf %44 : vector<16x80xf32> to vector<16x80xbf16>
    %c8 = arith.constant 8 : index
    %c0_19 = arith.constant 0 : index
    %46 = vector.load %arg2[%c8, %c0_19] : memref<984x128xbf16, #tpu.memory_space<vmem>>, vector<80x64xbf16>
    %cst_20 = arith.constant dense<0.000000e+00> : vector<16x64xf32>
    %47 = tpu.matmul %45, %46, %cst_20 {dimension_numbers = #tpu.dot_dimension_numbers<[1], [0], [0], [1], [0, 0, 1, 1], [], []>} : vector<16x80xbf16>, vector<80x64xbf16>, vector<16x64xf32> -> vector<16x64xf32>
    %c1 = arith.constant 1 : index
    %c0_21 = arith.constant 0 : index
    %48 = vector.load %arg4[%c1, %c0_21] : memref<24x384xf32, #tpu.memory_space<vmem>>, vector<1x64xf32>
    %49 = vector.broadcast %48 : vector<1x64xf32> to vector<16x64xf32>
    %50 = arith.addf %47, %49 : vector<16x64xf32>
    %51 = arith.truncf %50 : vector<16x64xf32> to vector<16x64xbf16>
    %c88 = arith.constant 88 : index
    %c0_22 = arith.constant 0 : index
    %52 = vector.load %arg2[%c88, %c0_22] : memref<984x128xbf16, #tpu.memory_space<vmem>>, vector<64x128xbf16>
    %cst_23 = arith.constant dense<0.000000e+00> : vector<16x128xf32>
    %53 = tpu.matmul %51, %52, %cst_23 {dimension_numbers = #tpu.dot_dimension_numbers<[1], [0], [0], [1], [0, 0, 1, 1], [], []>} : vector<16x64xbf16>, vector<64x128xbf16>, vector<16x128xf32> -> vector<16x128xf32>
    %c2 = arith.constant 2 : index
    %c0_24 = arith.constant 0 : index
    %54 = vector.load %arg4[%c2, %c0_24] : memref<24x384xf32, #tpu.memory_space<vmem>>, vector<1x128xf32>
    %55 = vector.broadcast %54 : vector<1x128xf32> to vector<16x128xf32>
    %56 = arith.addf %53, %55 : vector<16x128xf32>
    %57 = math.tanh %56 : vector<16x128xf32>
    %c312 = arith.constant 312 : index
    %c0_25 = arith.constant 0 : index
    %58 = vector.load %arg2[%c312, %c0_25] : memref<984x128xbf16, #tpu.memory_space<vmem>>, vector<128x96xbf16>
    %c5 = arith.constant 5 : index
    %c0_26 = arith.constant 0 : index
    %59 = vector.load %arg4[%c5, %c0_26] : memref<24x384xf32, #tpu.memory_space<vmem>>, vector<1x96xf32>
    %c440 = arith.constant 440 : index
    %c0_27 = arith.constant 0 : index
    %60 = vector.load %arg2[%c440, %c0_27] : memref<984x128xbf16, #tpu.memory_space<vmem>>, vector<32x128xbf16>
    %c6 = arith.constant 6 : index
    %c0_28 = arith.constant 0 : index
    %61 = vector.load %arg4[%c6, %c0_28] : memref<24x384xf32, #tpu.memory_space<vmem>>, vector<1x128xf32>
    %62 = arith.truncf %57 : vector<16x128xf32> to vector<16x128xbf16>
    %cst_29 = arith.constant dense<0.000000e+00> : vector<16x96xf32>
    %63 = tpu.matmul %62, %58, %cst_29 {dimension_numbers = #tpu.dot_dimension_numbers<[1], [0], [0], [1], [0, 0, 1, 1], [], []>} : vector<16x128xbf16>, vector<128x96xbf16>, vector<16x96xf32> -> vector<16x96xf32>
    %64 = vector.broadcast %59 : vector<1x96xf32> to vector<16x96xf32>
    %65 = arith.addf %63, %64 : vector<16x96xf32>
    %66 = arith.truncf %65 : vector<16x96xf32> to vector<16x96xbf16>
    %67 = vector.shape_cast %66 : vector<16x96xbf16> to vector<2x8x96xbf16>
    %68 = vector.extract_strided_slice %67 {offsets = [0, 0, 0], sizes = [2, 8, 32], strides = [1, 1, 1]} : vector<2x8x96xbf16> to vector<2x8x32xbf16>
    %69 = vector.extract_strided_slice %67 {offsets = [0, 0, 32], sizes = [2, 8, 32], strides = [1, 1, 1]} : vector<2x8x96xbf16> to vector<2x8x32xbf16>
    %70 = vector.extract_strided_slice %67 {offsets = [0, 0, 64], sizes = [2, 8, 32], strides = [1, 1, 1]} : vector<2x8x96xbf16> to vector<2x8x32xbf16>
    "tpu.trace_start"() <{level = 10 : i32, message = "bqd,bkd->bqk"}> : () -> ()
    %cst_30 = arith.constant dense<0.000000e+00> : vector<2x8x8xf32>
    %71 = tpu.matmul %68, %69, %cst_30 {dimension_numbers = #tpu.dot_dimension_numbers<[2], [2], [1], [1], [0, 0, 0, 1, 1, 1], [0], [0]>} : vector<2x8x32xbf16>, vector<2x8x32xbf16>, vector<2x8x8xf32> -> vector<2x8x8xf32>
    "tpu.trace_stop"() : () -> ()
    %cst_31 = arith.constant 0.176776692 : f32
    %72 = vector.broadcast %cst_31 : f32 to vector<2x8x8xf32>
    %73 = arith.mulf %71, %72 : vector<2x8x8xf32>
    %cst_32 = arith.constant dense<0xFF800000> : vector<2x8xf32>
    %74 = vector.multi_reduction <maximumf>, %73, %cst_32 [2] : vector<2x8x8xf32> to vector<2x8xf32>
    %75 = vector.shape_cast %74 : vector<2x8xf32> to vector<2x8x1xf32>
    %76 = vector.broadcast %75 : vector<2x8x1xf32> to vector<2x8x8xf32>
    %77 = arith.subf %73, %76 : vector<2x8x8xf32>
    %78 = math.exp %77 : vector<2x8x8xf32>
    %cst_33 = arith.constant dense<0.000000e+00> : vector<2x8xf32>
    %79 = vector.multi_reduction <add>, %78, %cst_33 [2] : vector<2x8x8xf32> to vector<2x8xf32>
    %80 = vector.shape_cast %79 : vector<2x8xf32> to vector<2x8x1xf32>
    %81 = vector.broadcast %80 : vector<2x8x1xf32> to vector<2x8x8xf32>
    %82 = arith.divf %78, %81 : vector<2x8x8xf32>
    %83 = arith.truncf %82 : vector<2x8x8xf32> to vector<2x8x8xbf16>
    "tpu.trace_start"() <{level = 10 : i32, message = "bqk,bkd->bqd"}> : () -> ()
    %cst_34 = arith.constant dense<0.000000e+00> : vector<2x8x32xf32>
    %84 = tpu.matmul %83, %70, %cst_34 {dimension_numbers = #tpu.dot_dimension_numbers<[2], [1], [1], [2], [0, 0, 0, 1, 1, 2], [0], [0]>} : vector<2x8x8xbf16>, vector<2x8x32xbf16>, vector<2x8x32xf32> -> vector<2x8x32xf32>
    "tpu.trace_stop"() : () -> ()
    %85 = vector.shape_cast %84 : vector<2x8x32xf32> to vector<16x32xf32>
    %86 = arith.truncf %85 : vector<16x32xf32> to vector<16x32xbf16>
    %cst_35 = arith.constant dense<0.000000e+00> : vector<16x128xf32>
    %87 = tpu.matmul %86, %60, %cst_35 {dimension_numbers = #tpu.dot_dimension_numbers<[1], [0], [0], [1], [0, 0, 1, 1], [], []>} : vector<16x32xbf16>, vector<32x128xbf16>, vector<16x128xf32> -> vector<16x128xf32>
    %88 = vector.broadcast %61 : vector<1x128xf32> to vector<16x128xf32>
    %89 = arith.addf %87, %88 : vector<16x128xf32>
    %90 = vector.broadcast %1 : vector<1x1xf32> to vector<16x128xf32>
    %91 = arith.mulf %90, %57 : vector<16x128xf32>
    %92 = arith.addf %89, %91 : vector<16x128xf32>
    %93 = arith.truncf %43 : vector<16x128xf32> to vector<16x128xbf16>
    %94 = arith.truncf %92 : vector<16x128xf32> to vector<16x128xbf16>
    %c0_36 = arith.constant 0 : index
    %c0_37 = arith.constant 0 : index
    %c0_38 = arith.constant 0 : index
    %95 = vector.load %arg3[%c0_36, %c0_37, %c0_38] : memref<2x128x384xbf16, #tpu.memory_space<vmem>>, vector<1x128x384xbf16>
    %96 = vector.shape_cast %95 : vector<1x128x384xbf16> to vector<128x384xbf16>
    %cst_39 = arith.constant dense<0.000000e+00> : vector<16x384xf32>
    %97 = tpu.matmul %93, %96, %cst_39 {dimension_numbers = #tpu.dot_dimension_numbers<[1], [0], [0], [1], [0, 0, 1, 1], [], []>} : vector<16x128xbf16>, vector<128x384xbf16>, vector<16x384xf32> -> vector<16x384xf32>
    %c7 = arith.constant 7 : index
    %c0_40 = arith.constant 0 : index
    %98 = vector.load %arg4[%c7, %c0_40] : memref<24x384xf32, #tpu.memory_space<vmem>>, vector<1x384xf32>
    %99 = vector.broadcast %98 : vector<1x384xf32> to vector<16x384xf32>
    %100 = arith.addf %97, %99 : vector<16x384xf32>
    %cst_41 = arith.constant 0.000000e+00 : f32
    %101 = vector.broadcast %cst_41 : f32 to vector<16x384xf32>
    %102 = arith.maximumf %100, %101 : vector<16x384xf32>
    %c1_42 = arith.constant 1 : index
    %c0_43 = arith.constant 0 : index
    %c0_44 = arith.constant 0 : index
    %103 = vector.load %arg3[%c1_42, %c0_43, %c0_44] : memref<2x128x384xbf16, #tpu.memory_space<vmem>>, vector<1x128x384xbf16>
    %104 = vector.shape_cast %103 : vector<1x128x384xbf16> to vector<128x384xbf16>
    %cst_45 = arith.constant dense<0.000000e+00> : vector<16x384xf32>
    %105 = tpu.matmul %94, %104, %cst_45 {dimension_numbers = #tpu.dot_dimension_numbers<[1], [0], [0], [1], [0, 0, 1, 1], [], []>} : vector<16x128xbf16>, vector<128x384xbf16>, vector<16x384xf32> -> vector<16x384xf32>
    %c8_46 = arith.constant 8 : index
    %c0_47 = arith.constant 0 : index
    %106 = vector.load %arg4[%c8_46, %c0_47] : memref<24x384xf32, #tpu.memory_space<vmem>>, vector<1x384xf32>
    %107 = vector.broadcast %106 : vector<1x384xf32> to vector<16x384xf32>
    %108 = arith.addf %105, %107 : vector<16x384xf32>
    %cst_48 = arith.constant 0.000000e+00 : f32
    %109 = vector.broadcast %cst_48 : f32 to vector<16x384xf32>
    %110 = arith.maximumf %108, %109 : vector<16x384xf32>
    %111 = arith.truncf %102 : vector<16x384xf32> to vector<16x384xbf16>
    %112 = vector.shape_cast %111 : vector<16x384xbf16> to vector<2x8x384xbf16>
    %113 = arith.truncf %110 : vector<16x384xf32> to vector<16x384xbf16>
    %114 = vector.shape_cast %113 : vector<16x384xbf16> to vector<2x8x384xbf16>
    %115 = vector.extract_strided_slice %114 {offsets = [0, 0, 0], sizes = [2, 8, 128], strides = [1, 1, 1]} : vector<2x8x384xbf16> to vector<2x8x128xbf16>
    %116 = vector.extract_strided_slice %112 {offsets = [0, 0, 0], sizes = [2, 8, 128], strides = [1, 1, 1]} : vector<2x8x384xbf16> to vector<2x8x128xbf16>
    %117 = vector.extract_strided_slice %112 {offsets = [0, 0, 128], sizes = [2, 8, 128], strides = [1, 1, 1]} : vector<2x8x384xbf16> to vector<2x8x128xbf16>
    %118 = vector.extract_strided_slice %115 {offsets = [0, 0, 0], sizes = [2, 8, 16], strides = [1, 1, 1]} : vector<2x8x128xbf16> to vector<2x8x16xbf16>
    %119 = vector.extract_strided_slice %116 {offsets = [0, 0, 0], sizes = [2, 8, 16], strides = [1, 1, 1]} : vector<2x8x128xbf16> to vector<2x8x16xbf16>
    "tpu.trace_start"() <{level = 10 : i32, message = "bqd,bkd->bqk"}> : () -> ()
    %cst_49 = arith.constant dense<0.000000e+00> : vector<2x8x8xf32>
    %120 = tpu.matmul %118, %119, %cst_49 {dimension_numbers = #tpu.dot_dimension_numbers<[2], [2], [1], [1], [0, 0, 0, 1, 1, 1], [0], [0]>} : vector<2x8x16xbf16>, vector<2x8x16xbf16>, vector<2x8x8xf32> -> vector<2x8x8xf32>
    "tpu.trace_stop"() : () -> ()
    %cst_50 = arith.constant 2.500000e-01 : f32
    %121 = vector.broadcast %cst_50 : f32 to vector<2x8x8xf32>
    %122 = arith.mulf %120, %121 : vector<2x8x8xf32>
    %cst_51 = arith.constant dense<0xFF800000> : vector<2x8xf32>
    %123 = vector.multi_reduction <maximumf>, %122, %cst_51 [2] : vector<2x8x8xf32> to vector<2x8xf32>
    %124 = vector.shape_cast %123 : vector<2x8xf32> to vector<2x8x1xf32>
    %125 = vector.broadcast %124 : vector<2x8x1xf32> to vector<2x8x8xf32>
    %126 = arith.subf %122, %125 : vector<2x8x8xf32>
    %127 = math.exp %126 : vector<2x8x8xf32>
    %cst_52 = arith.constant dense<0.000000e+00> : vector<2x8xf32>
    %128 = vector.multi_reduction <add>, %127, %cst_52 [2] : vector<2x8x8xf32> to vector<2x8xf32>
    %129 = vector.shape_cast %128 : vector<2x8xf32> to vector<2x8x1xf32>
    %130 = vector.broadcast %129 : vector<2x8x1xf32> to vector<2x8x8xf32>
    %131 = arith.divf %127, %130 : vector<2x8x8xf32>
    %132 = arith.truncf %131 : vector<2x8x8xf32> to vector<2x8x8xbf16>
    %133 = vector.extract_strided_slice %117 {offsets = [0, 0, 0], sizes = [2, 8, 16], strides = [1, 1, 1]} : vector<2x8x128xbf16> to vector<2x8x16xbf16>
    "tpu.trace_start"() <{level = 10 : i32, message = "bqk,bkd->bqd"}> : () -> ()
    %cst_53 = arith.constant dense<0.000000e+00> : vector<2x8x16xf32>
    %134 = tpu.matmul %132, %133, %cst_53 {dimension_numbers = #tpu.dot_dimension_numbers<[2], [1], [1], [2], [0, 0, 0, 1, 1, 2], [0], [0]>} : vector<2x8x8xbf16>, vector<2x8x16xbf16>, vector<2x8x16xf32> -> vector<2x8x16xf32>
    "tpu.trace_stop"() : () -> ()
    %135 = vector.extract_strided_slice %115 {offsets = [0, 0, 16], sizes = [2, 8, 16], strides = [1, 1, 1]} : vector<2x8x128xbf16> to vector<2x8x16xbf16>
    %136 = vector.extract_strided_slice %116 {offsets = [0, 0, 16], sizes = [2, 8, 16], strides = [1, 1, 1]} : vector<2x8x128xbf16> to vector<2x8x16xbf16>
    "tpu.trace_start"() <{level = 10 : i32, message = "bqd,bkd->bqk"}> : () -> ()
    %cst_54 = arith.constant dense<0.000000e+00> : vector<2x8x8xf32>
    %137 = tpu.matmul %135, %136, %cst_54 {dimension_numbers = #tpu.dot_dimension_numbers<[2], [2], [1], [1], [0, 0, 0, 1, 1, 1], [0], [0]>} : vector<2x8x16xbf16>, vector<2x8x16xbf16>, vector<2x8x8xf32> -> vector<2x8x8xf32>
    "tpu.trace_stop"() : () -> ()
    %cst_55 = arith.constant 2.500000e-01 : f32
    %138 = vector.broadcast %cst_55 : f32 to vector<2x8x8xf32>
    %139 = arith.mulf %137, %138 : vector<2x8x8xf32>
    %cst_56 = arith.constant dense<0xFF800000> : vector<2x8xf32>
    %140 = vector.multi_reduction <maximumf>, %139, %cst_56 [2] : vector<2x8x8xf32> to vector<2x8xf32>
    %141 = vector.shape_cast %140 : vector<2x8xf32> to vector<2x8x1xf32>
    %142 = vector.broadcast %141 : vector<2x8x1xf32> to vector<2x8x8xf32>
    %143 = arith.subf %139, %142 : vector<2x8x8xf32>
    %144 = math.exp %143 : vector<2x8x8xf32>
    %cst_57 = arith.constant dense<0.000000e+00> : vector<2x8xf32>
    %145 = vector.multi_reduction <add>, %144, %cst_57 [2] : vector<2x8x8xf32> to vector<2x8xf32>
    %146 = vector.shape_cast %145 : vector<2x8xf32> to vector<2x8x1xf32>
    %147 = vector.broadcast %146 : vector<2x8x1xf32> to vector<2x8x8xf32>
    %148 = arith.divf %144, %147 : vector<2x8x8xf32>
    %149 = arith.truncf %148 : vector<2x8x8xf32> to vector<2x8x8xbf16>
    %150 = vector.extract_strided_slice %117 {offsets = [0, 0, 16], sizes = [2, 8, 16], strides = [1, 1, 1]} : vector<2x8x128xbf16> to vector<2x8x16xbf16>
    "tpu.trace_start"() <{level = 10 : i32, message = "bqk,bkd->bqd"}> : () -> ()
    %cst_58 = arith.constant dense<0.000000e+00> : vector<2x8x16xf32>
    %151 = tpu.matmul %149, %150, %cst_58 {dimension_numbers = #tpu.dot_dimension_numbers<[2], [1], [1], [2], [0, 0, 0, 1, 1, 2], [0], [0]>} : vector<2x8x8xbf16>, vector<2x8x16xbf16>, vector<2x8x16xf32> -> vector<2x8x16xf32>
    "tpu.trace_stop"() : () -> ()
    %152 = vector.extract_strided_slice %115 {offsets = [0, 0, 32], sizes = [2, 8, 16], strides = [1, 1, 1]} : vector<2x8x128xbf16> to vector<2x8x16xbf16>
    %153 = vector.extract_strided_slice %116 {offsets = [0, 0, 32], sizes = [2, 8, 16], strides = [1, 1, 1]} : vector<2x8x128xbf16> to vector<2x8x16xbf16>
    "tpu.trace_start"() <{level = 10 : i32, message = "bqd,bkd->bqk"}> : () -> ()
    %cst_59 = arith.constant dense<0.000000e+00> : vector<2x8x8xf32>
    %154 = tpu.matmul %152, %153, %cst_59 {dimension_numbers = #tpu.dot_dimension_numbers<[2], [2], [1], [1], [0, 0, 0, 1, 1, 1], [0], [0]>} : vector<2x8x16xbf16>, vector<2x8x16xbf16>, vector<2x8x8xf32> -> vector<2x8x8xf32>
    "tpu.trace_stop"() : () -> ()
    %cst_60 = arith.constant 2.500000e-01 : f32
    %155 = vector.broadcast %cst_60 : f32 to vector<2x8x8xf32>
    %156 = arith.mulf %154, %155 : vector<2x8x8xf32>
    %cst_61 = arith.constant dense<0xFF800000> : vector<2x8xf32>
    %157 = vector.multi_reduction <maximumf>, %156, %cst_61 [2] : vector<2x8x8xf32> to vector<2x8xf32>
    %158 = vector.shape_cast %157 : vector<2x8xf32> to vector<2x8x1xf32>
    %159 = vector.broadcast %158 : vector<2x8x1xf32> to vector<2x8x8xf32>
    %160 = arith.subf %156, %159 : vector<2x8x8xf32>
    %161 = math.exp %160 : vector<2x8x8xf32>
    %cst_62 = arith.constant dense<0.000000e+00> : vector<2x8xf32>
    %162 = vector.multi_reduction <add>, %161, %cst_62 [2] : vector<2x8x8xf32> to vector<2x8xf32>
    %163 = vector.shape_cast %162 : vector<2x8xf32> to vector<2x8x1xf32>
    %164 = vector.broadcast %163 : vector<2x8x1xf32> to vector<2x8x8xf32>
    %165 = arith.divf %161, %164 : vector<2x8x8xf32>
    %166 = arith.truncf %165 : vector<2x8x8xf32> to vector<2x8x8xbf16>
    %167 = vector.extract_strided_slice %117 {offsets = [0, 0, 32], sizes = [2, 8, 16], strides = [1, 1, 1]} : vector<2x8x128xbf16> to vector<2x8x16xbf16>
    "tpu.trace_start"() <{level = 10 : i32, message = "bqk,bkd->bqd"}> : () -> ()
    %cst_63 = arith.constant dense<0.000000e+00> : vector<2x8x16xf32>
    %168 = tpu.matmul %166, %167, %cst_63 {dimension_numbers = #tpu.dot_dimension_numbers<[2], [1], [1], [2], [0, 0, 0, 1, 1, 2], [0], [0]>} : vector<2x8x8xbf16>, vector<2x8x16xbf16>, vector<2x8x16xf32> -> vector<2x8x16xf32>
    "tpu.trace_stop"() : () -> ()
    %169 = vector.extract_strided_slice %115 {offsets = [0, 0, 48], sizes = [2, 8, 16], strides = [1, 1, 1]} : vector<2x8x128xbf16> to vector<2x8x16xbf16>
    %170 = vector.extract_strided_slice %116 {offsets = [0, 0, 48], sizes = [2, 8, 16], strides = [1, 1, 1]} : vector<2x8x128xbf16> to vector<2x8x16xbf16>
    "tpu.trace_start"() <{level = 10 : i32, message = "bqd,bkd->bqk"}> : () -> ()
    %cst_64 = arith.constant dense<0.000000e+00> : vector<2x8x8xf32>
    %171 = tpu.matmul %169, %170, %cst_64 {dimension_numbers = #tpu.dot_dimension_numbers<[2], [2], [1], [1], [0, 0, 0, 1, 1, 1], [0], [0]>} : vector<2x8x16xbf16>, vector<2x8x16xbf16>, vector<2x8x8xf32> -> vector<2x8x8xf32>
    "tpu.trace_stop"() : () -> ()
    %cst_65 = arith.constant 2.500000e-01 : f32
    %172 = vector.broadcast %cst_65 : f32 to vector<2x8x8xf32>
    %173 = arith.mulf %171, %172 : vector<2x8x8xf32>
    %cst_66 = arith.constant dense<0xFF800000> : vector<2x8xf32>
    %174 = vector.multi_reduction <maximumf>, %173, %cst_66 [2] : vector<2x8x8xf32> to vector<2x8xf32>
    %175 = vector.shape_cast %174 : vector<2x8xf32> to vector<2x8x1xf32>
    %176 = vector.broadcast %175 : vector<2x8x1xf32> to vector<2x8x8xf32>
    %177 = arith.subf %173, %176 : vector<2x8x8xf32>
    %178 = math.exp %177 : vector<2x8x8xf32>
    %cst_67 = arith.constant dense<0.000000e+00> : vector<2x8xf32>
    %179 = vector.multi_reduction <add>, %178, %cst_67 [2] : vector<2x8x8xf32> to vector<2x8xf32>
    %180 = vector.shape_cast %179 : vector<2x8xf32> to vector<2x8x1xf32>
    %181 = vector.broadcast %180 : vector<2x8x1xf32> to vector<2x8x8xf32>
    %182 = arith.divf %178, %181 : vector<2x8x8xf32>
    %183 = arith.truncf %182 : vector<2x8x8xf32> to vector<2x8x8xbf16>
    %184 = vector.extract_strided_slice %117 {offsets = [0, 0, 48], sizes = [2, 8, 16], strides = [1, 1, 1]} : vector<2x8x128xbf16> to vector<2x8x16xbf16>
    "tpu.trace_start"() <{level = 10 : i32, message = "bqk,bkd->bqd"}> : () -> ()
    %cst_68 = arith.constant dense<0.000000e+00> : vector<2x8x16xf32>
    %185 = tpu.matmul %183, %184, %cst_68 {dimension_numbers = #tpu.dot_dimension_numbers<[2], [1], [1], [2], [0, 0, 0, 1, 1, 2], [0], [0]>} : vector<2x8x8xbf16>, vector<2x8x16xbf16>, vector<2x8x16xf32> -> vector<2x8x16xf32>
    "tpu.trace_stop"() : () -> ()
    %186 = vector.extract_strided_slice %115 {offsets = [0, 0, 64], sizes = [2, 8, 16], strides = [1, 1, 1]} : vector<2x8x128xbf16> to vector<2x8x16xbf16>
    %187 = vector.extract_strided_slice %116 {offsets = [0, 0, 64], sizes = [2, 8, 16], strides = [1, 1, 1]} : vector<2x8x128xbf16> to vector<2x8x16xbf16>
    "tpu.trace_start"() <{level = 10 : i32, message = "bqd,bkd->bqk"}> : () -> ()
    %cst_69 = arith.constant dense<0.000000e+00> : vector<2x8x8xf32>
    %188 = tpu.matmul %186, %187, %cst_69 {dimension_numbers = #tpu.dot_dimension_numbers<[2], [2], [1], [1], [0, 0, 0, 1, 1, 1], [0], [0]>} : vector<2x8x16xbf16>, vector<2x8x16xbf16>, vector<2x8x8xf32> -> vector<2x8x8xf32>
    "tpu.trace_stop"() : () -> ()
    %cst_70 = arith.constant 2.500000e-01 : f32
    %189 = vector.broadcast %cst_70 : f32 to vector<2x8x8xf32>
    %190 = arith.mulf %188, %189 : vector<2x8x8xf32>
    %cst_71 = arith.constant dense<0xFF800000> : vector<2x8xf32>
    %191 = vector.multi_reduction <maximumf>, %190, %cst_71 [2] : vector<2x8x8xf32> to vector<2x8xf32>
    %192 = vector.shape_cast %191 : vector<2x8xf32> to vector<2x8x1xf32>
    %193 = vector.broadcast %192 : vector<2x8x1xf32> to vector<2x8x8xf32>
    %194 = arith.subf %190, %193 : vector<2x8x8xf32>
    %195 = math.exp %194 : vector<2x8x8xf32>
    %cst_72 = arith.constant dense<0.000000e+00> : vector<2x8xf32>
    %196 = vector.multi_reduction <add>, %195, %cst_72 [2] : vector<2x8x8xf32> to vector<2x8xf32>
    %197 = vector.shape_cast %196 : vector<2x8xf32> to vector<2x8x1xf32>
    %198 = vector.broadcast %197 : vector<2x8x1xf32> to vector<2x8x8xf32>
    %199 = arith.divf %195, %198 : vector<2x8x8xf32>
    %200 = arith.truncf %199 : vector<2x8x8xf32> to vector<2x8x8xbf16>
    %201 = vector.extract_strided_slice %117 {offsets = [0, 0, 64], sizes = [2, 8, 16], strides = [1, 1, 1]} : vector<2x8x128xbf16> to vector<2x8x16xbf16>
    "tpu.trace_start"() <{level = 10 : i32, message = "bqk,bkd->bqd"}> : () -> ()
    %cst_73 = arith.constant dense<0.000000e+00> : vector<2x8x16xf32>
    %202 = tpu.matmul %200, %201, %cst_73 {dimension_numbers = #tpu.dot_dimension_numbers<[2], [1], [1], [2], [0, 0, 0, 1, 1, 2], [0], [0]>} : vector<2x8x8xbf16>, vector<2x8x16xbf16>, vector<2x8x16xf32> -> vector<2x8x16xf32>
    "tpu.trace_stop"() : () -> ()
    %203 = vector.extract_strided_slice %115 {offsets = [0, 0, 80], sizes = [2, 8, 16], strides = [1, 1, 1]} : vector<2x8x128xbf16> to vector<2x8x16xbf16>
    %204 = vector.extract_strided_slice %116 {offsets = [0, 0, 80], sizes = [2, 8, 16], strides = [1, 1, 1]} : vector<2x8x128xbf16> to vector<2x8x16xbf16>
    "tpu.trace_start"() <{level = 10 : i32, message = "bqd,bkd->bqk"}> : () -> ()
    %cst_74 = arith.constant dense<0.000000e+00> : vector<2x8x8xf32>
    %205 = tpu.matmul %203, %204, %cst_74 {dimension_numbers = #tpu.dot_dimension_numbers<[2], [2], [1], [1], [0, 0, 0, 1, 1, 1], [0], [0]>} : vector<2x8x16xbf16>, vector<2x8x16xbf16>, vector<2x8x8xf32> -> vector<2x8x8xf32>
    "tpu.trace_stop"() : () -> ()
    %cst_75 = arith.constant 2.500000e-01 : f32
    %206 = vector.broadcast %cst_75 : f32 to vector<2x8x8xf32>
    %207 = arith.mulf %205, %206 : vector<2x8x8xf32>
    %cst_76 = arith.constant dense<0xFF800000> : vector<2x8xf32>
    %208 = vector.multi_reduction <maximumf>, %207, %cst_76 [2] : vector<2x8x8xf32> to vector<2x8xf32>
    %209 = vector.shape_cast %208 : vector<2x8xf32> to vector<2x8x1xf32>
    %210 = vector.broadcast %209 : vector<2x8x1xf32> to vector<2x8x8xf32>
    %211 = arith.subf %207, %210 : vector<2x8x8xf32>
    %212 = math.exp %211 : vector<2x8x8xf32>
    %cst_77 = arith.constant dense<0.000000e+00> : vector<2x8xf32>
    %213 = vector.multi_reduction <add>, %212, %cst_77 [2] : vector<2x8x8xf32> to vector<2x8xf32>
    %214 = vector.shape_cast %213 : vector<2x8xf32> to vector<2x8x1xf32>
    %215 = vector.broadcast %214 : vector<2x8x1xf32> to vector<2x8x8xf32>
    %216 = arith.divf %212, %215 : vector<2x8x8xf32>
    %217 = arith.truncf %216 : vector<2x8x8xf32> to vector<2x8x8xbf16>
    %218 = vector.extract_strided_slice %117 {offsets = [0, 0, 80], sizes = [2, 8, 16], strides = [1, 1, 1]} : vector<2x8x128xbf16> to vector<2x8x16xbf16>
    "tpu.trace_start"() <{level = 10 : i32, message = "bqk,bkd->bqd"}> : () -> ()
    %cst_78 = arith.constant dense<0.000000e+00> : vector<2x8x16xf32>
    %219 = tpu.matmul %217, %218, %cst_78 {dimension_numbers = #tpu.dot_dimension_numbers<[2], [1], [1], [2], [0, 0, 0, 1, 1, 2], [0], [0]>} : vector<2x8x8xbf16>, vector<2x8x16xbf16>, vector<2x8x16xf32> -> vector<2x8x16xf32>
    "tpu.trace_stop"() : () -> ()
    %220 = vector.extract_strided_slice %115 {offsets = [0, 0, 96], sizes = [2, 8, 16], strides = [1, 1, 1]} : vector<2x8x128xbf16> to vector<2x8x16xbf16>
    %221 = vector.extract_strided_slice %116 {offsets = [0, 0, 96], sizes = [2, 8, 16], strides = [1, 1, 1]} : vector<2x8x128xbf16> to vector<2x8x16xbf16>
    "tpu.trace_start"() <{level = 10 : i32, message = "bqd,bkd->bqk"}> : () -> ()
    %cst_79 = arith.constant dense<0.000000e+00> : vector<2x8x8xf32>
    %222 = tpu.matmul %220, %221, %cst_79 {dimension_numbers = #tpu.dot_dimension_numbers<[2], [2], [1], [1], [0, 0, 0, 1, 1, 1], [0], [0]>} : vector<2x8x16xbf16>, vector<2x8x16xbf16>, vector<2x8x8xf32> -> vector<2x8x8xf32>
    "tpu.trace_stop"() : () -> ()
    %cst_80 = arith.constant 2.500000e-01 : f32
    %223 = vector.broadcast %cst_80 : f32 to vector<2x8x8xf32>
    %224 = arith.mulf %222, %223 : vector<2x8x8xf32>
    %cst_81 = arith.constant dense<0xFF800000> : vector<2x8xf32>
    %225 = vector.multi_reduction <maximumf>, %224, %cst_81 [2] : vector<2x8x8xf32> to vector<2x8xf32>
    %226 = vector.shape_cast %225 : vector<2x8xf32> to vector<2x8x1xf32>
    %227 = vector.broadcast %226 : vector<2x8x1xf32> to vector<2x8x8xf32>
    %228 = arith.subf %224, %227 : vector<2x8x8xf32>
    %229 = math.exp %228 : vector<2x8x8xf32>
    %cst_82 = arith.constant dense<0.000000e+00> : vector<2x8xf32>
    %230 = vector.multi_reduction <add>, %229, %cst_82 [2] : vector<2x8x8xf32> to vector<2x8xf32>
    %231 = vector.shape_cast %230 : vector<2x8xf32> to vector<2x8x1xf32>
    %232 = vector.broadcast %231 : vector<2x8x1xf32> to vector<2x8x8xf32>
    %233 = arith.divf %229, %232 : vector<2x8x8xf32>
    %234 = arith.truncf %233 : vector<2x8x8xf32> to vector<2x8x8xbf16>
    %235 = vector.extract_strided_slice %117 {offsets = [0, 0, 96], sizes = [2, 8, 16], strides = [1, 1, 1]} : vector<2x8x128xbf16> to vector<2x8x16xbf16>
    "tpu.trace_start"() <{level = 10 : i32, message = "bqk,bkd->bqd"}> : () -> ()
    %cst_83 = arith.constant dense<0.000000e+00> : vector<2x8x16xf32>
    %236 = tpu.matmul %234, %235, %cst_83 {dimension_numbers = #tpu.dot_dimension_numbers<[2], [1], [1], [2], [0, 0, 0, 1, 1, 2], [0], [0]>} : vector<2x8x8xbf16>, vector<2x8x16xbf16>, vector<2x8x16xf32> -> vector<2x8x16xf32>
    "tpu.trace_stop"() : () -> ()
    %237 = vector.extract_strided_slice %115 {offsets = [0, 0, 112], sizes = [2, 8, 16], strides = [1, 1, 1]} : vector<2x8x128xbf16> to vector<2x8x16xbf16>
    %238 = vector.extract_strided_slice %116 {offsets = [0, 0, 112], sizes = [2, 8, 16], strides = [1, 1, 1]} : vector<2x8x128xbf16> to vector<2x8x16xbf16>
    "tpu.trace_start"() <{level = 10 : i32, message = "bqd,bkd->bqk"}> : () -> ()
    %cst_84 = arith.constant dense<0.000000e+00> : vector<2x8x8xf32>
    %239 = tpu.matmul %237, %238, %cst_84 {dimension_numbers = #tpu.dot_dimension_numbers<[2], [2], [1], [1], [0, 0, 0, 1, 1, 1], [0], [0]>} : vector<2x8x16xbf16>, vector<2x8x16xbf16>, vector<2x8x8xf32> -> vector<2x8x8xf32>
    "tpu.trace_stop"() : () -> ()
    %cst_85 = arith.constant 2.500000e-01 : f32
    %240 = vector.broadcast %cst_85 : f32 to vector<2x8x8xf32>
    %241 = arith.mulf %239, %240 : vector<2x8x8xf32>
    %cst_86 = arith.constant dense<0xFF800000> : vector<2x8xf32>
    %242 = vector.multi_reduction <maximumf>, %241, %cst_86 [2] : vector<2x8x8xf32> to vector<2x8xf32>
    %243 = vector.shape_cast %242 : vector<2x8xf32> to vector<2x8x1xf32>
    %244 = vector.broadcast %243 : vector<2x8x1xf32> to vector<2x8x8xf32>
    %245 = arith.subf %241, %244 : vector<2x8x8xf32>
    %246 = math.exp %245 : vector<2x8x8xf32>
    %cst_87 = arith.constant dense<0.000000e+00> : vector<2x8xf32>
    %247 = vector.multi_reduction <add>, %246, %cst_87 [2] : vector<2x8x8xf32> to vector<2x8xf32>
    %248 = vector.shape_cast %247 : vector<2x8xf32> to vector<2x8x1xf32>
    %249 = vector.broadcast %248 : vector<2x8x1xf32> to vector<2x8x8xf32>
    %250 = arith.divf %246, %249 : vector<2x8x8xf32>
    %251 = arith.truncf %250 : vector<2x8x8xf32> to vector<2x8x8xbf16>
    %252 = vector.extract_strided_slice %117 {offsets = [0, 0, 112], sizes = [2, 8, 16], strides = [1, 1, 1]} : vector<2x8x128xbf16> to vector<2x8x16xbf16>
    "tpu.trace_start"() <{level = 10 : i32, message = "bqk,bkd->bqd"}> : () -> ()
    %cst_88 = arith.constant dense<0.000000e+00> : vector<2x8x16xf32>
    %253 = tpu.matmul %251, %252, %cst_88 {dimension_numbers = #tpu.dot_dimension_numbers<[2], [1], [1], [2], [0, 0, 0, 1, 1, 2], [0], [0]>} : vector<2x8x8xbf16>, vector<2x8x16xbf16>, vector<2x8x16xf32> -> vector<2x8x16xf32>
    "tpu.trace_stop"() : () -> ()
    %254 = tpu.concatenate %134, %151, %168, %185, %202, %219, %236, %253 in 2 : vector<2x8x16xf32>, vector<2x8x16xf32>, vector<2x8x16xf32>, vector<2x8x16xf32>, vector<2x8x16xf32>, vector<2x8x16xf32>, vector<2x8x16xf32>, vector<2x8x16xf32> -> vector<2x8x128xf32>
    %255 = vector.shape_cast %254 : vector<2x8x128xf32> to vector<16x128xf32>
    %256 = arith.truncf %255 : vector<16x128xf32> to vector<16x128xbf16>
    %c472 = arith.constant 472 : index
    %c0_89 = arith.constant 0 : index
    %257 = vector.load %arg2[%c472, %c0_89] : memref<984x128xbf16, #tpu.memory_space<vmem>>, vector<128x128xbf16>
    %cst_90 = arith.constant dense<0.000000e+00> : vector<16x128xf32>
    %258 = tpu.matmul %256, %257, %cst_90 {dimension_numbers = #tpu.dot_dimension_numbers<[1], [0], [0], [1], [0, 0, 1, 1], [], []>} : vector<16x128xbf16>, vector<128x128xbf16>, vector<16x128xf32> -> vector<16x128xf32>
    %c9 = arith.constant 9 : index
    %c0_91 = arith.constant 0 : index
    %259 = vector.load %arg4[%c9, %c0_91] : memref<24x384xf32, #tpu.memory_space<vmem>>, vector<1x128xf32>
    %260 = vector.broadcast %259 : vector<1x128xf32> to vector<16x128xf32>
    %261 = arith.addf %258, %260 : vector<16x128xf32>
    %cst_92 = arith.constant 0.000000e+00 : f32
    %262 = vector.broadcast %cst_92 : f32 to vector<16x128xf32>
    %263 = arith.maximumf %261, %262 : vector<16x128xf32>
    %264 = vector.extract_strided_slice %112 {offsets = [0, 0, 256], sizes = [2, 8, 128], strides = [1, 1, 1]} : vector<2x8x384xbf16> to vector<2x8x128xbf16>
    %265 = vector.extract_strided_slice %114 {offsets = [0, 0, 128], sizes = [2, 8, 128], strides = [1, 1, 1]} : vector<2x8x384xbf16> to vector<2x8x128xbf16>
    %266 = vector.extract_strided_slice %114 {offsets = [0, 0, 256], sizes = [2, 8, 128], strides = [1, 1, 1]} : vector<2x8x384xbf16> to vector<2x8x128xbf16>
    %267 = vector.extract_strided_slice %264 {offsets = [0, 0, 0], sizes = [2, 8, 16], strides = [1, 1, 1]} : vector<2x8x128xbf16> to vector<2x8x16xbf16>
    %268 = vector.extract_strided_slice %265 {offsets = [0, 0, 0], sizes = [2, 8, 16], strides = [1, 1, 1]} : vector<2x8x128xbf16> to vector<2x8x16xbf16>
    "tpu.trace_start"() <{level = 10 : i32, message = "bqd,bkd->bqk"}> : () -> ()
    %cst_93 = arith.constant dense<0.000000e+00> : vector<2x8x8xf32>
    %269 = tpu.matmul %267, %268, %cst_93 {dimension_numbers = #tpu.dot_dimension_numbers<[2], [2], [1], [1], [0, 0, 0, 1, 1, 1], [0], [0]>} : vector<2x8x16xbf16>, vector<2x8x16xbf16>, vector<2x8x8xf32> -> vector<2x8x8xf32>
    "tpu.trace_stop"() : () -> ()
    %cst_94 = arith.constant 2.500000e-01 : f32
    %270 = vector.broadcast %cst_94 : f32 to vector<2x8x8xf32>
    %271 = arith.mulf %269, %270 : vector<2x8x8xf32>
    %cst_95 = arith.constant dense<0xFF800000> : vector<2x8xf32>
    %272 = vector.multi_reduction <maximumf>, %271, %cst_95 [2] : vector<2x8x8xf32> to vector<2x8xf32>
    %273 = vector.shape_cast %272 : vector<2x8xf32> to vector<2x8x1xf32>
    %274 = vector.broadcast %273 : vector<2x8x1xf32> to vector<2x8x8xf32>
    %275 = arith.subf %271, %274 : vector<2x8x8xf32>
    %276 = math.exp %275 : vector<2x8x8xf32>
    %cst_96 = arith.constant dense<0.000000e+00> : vector<2x8xf32>
    %277 = vector.multi_reduction <add>, %276, %cst_96 [2] : vector<2x8x8xf32> to vector<2x8xf32>
    %278 = vector.shape_cast %277 : vector<2x8xf32> to vector<2x8x1xf32>
    %279 = vector.broadcast %278 : vector<2x8x1xf32> to vector<2x8x8xf32>
    %280 = arith.divf %276, %279 : vector<2x8x8xf32>
    %281 = arith.truncf %280 : vector<2x8x8xf32> to vector<2x8x8xbf16>
    %282 = vector.extract_strided_slice %266 {offsets = [0, 0, 0], sizes = [2, 8, 16], strides = [1, 1, 1]} : vector<2x8x128xbf16> to vector<2x8x16xbf16>
    "tpu.trace_start"() <{level = 10 : i32, message = "bqk,bkd->bqd"}> : () -> ()
    %cst_97 = arith.constant dense<0.000000e+00> : vector<2x8x16xf32>
    %283 = tpu.matmul %281, %282, %cst_97 {dimension_numbers = #tpu.dot_dimension_numbers<[2], [1], [1], [2], [0, 0, 0, 1, 1, 2], [0], [0]>} : vector<2x8x8xbf16>, vector<2x8x16xbf16>, vector<2x8x16xf32> -> vector<2x8x16xf32>
    "tpu.trace_stop"() : () -> ()
    %284 = vector.extract_strided_slice %264 {offsets = [0, 0, 16], sizes = [2, 8, 16], strides = [1, 1, 1]} : vector<2x8x128xbf16> to vector<2x8x16xbf16>
    %285 = vector.extract_strided_slice %265 {offsets = [0, 0, 16], sizes = [2, 8, 16], strides = [1, 1, 1]} : vector<2x8x128xbf16> to vector<2x8x16xbf16>
    "tpu.trace_start"() <{level = 10 : i32, message = "bqd,bkd->bqk"}> : () -> ()
    %cst_98 = arith.constant dense<0.000000e+00> : vector<2x8x8xf32>
    %286 = tpu.matmul %284, %285, %cst_98 {dimension_numbers = #tpu.dot_dimension_numbers<[2], [2], [1], [1], [0, 0, 0, 1, 1, 1], [0], [0]>} : vector<2x8x16xbf16>, vector<2x8x16xbf16>, vector<2x8x8xf32> -> vector<2x8x8xf32>
    "tpu.trace_stop"() : () -> ()
    %cst_99 = arith.constant 2.500000e-01 : f32
    %287 = vector.broadcast %cst_99 : f32 to vector<2x8x8xf32>
    %288 = arith.mulf %286, %287 : vector<2x8x8xf32>
    %cst_100 = arith.constant dense<0xFF800000> : vector<2x8xf32>
    %289 = vector.multi_reduction <maximumf>, %288, %cst_100 [2] : vector<2x8x8xf32> to vector<2x8xf32>
    %290 = vector.shape_cast %289 : vector<2x8xf32> to vector<2x8x1xf32>
    %291 = vector.broadcast %290 : vector<2x8x1xf32> to vector<2x8x8xf32>
    %292 = arith.subf %288, %291 : vector<2x8x8xf32>
    %293 = math.exp %292 : vector<2x8x8xf32>
    %cst_101 = arith.constant dense<0.000000e+00> : vector<2x8xf32>
    %294 = vector.multi_reduction <add>, %293, %cst_101 [2] : vector<2x8x8xf32> to vector<2x8xf32>
    %295 = vector.shape_cast %294 : vector<2x8xf32> to vector<2x8x1xf32>
    %296 = vector.broadcast %295 : vector<2x8x1xf32> to vector<2x8x8xf32>
    %297 = arith.divf %293, %296 : vector<2x8x8xf32>
    %298 = arith.truncf %297 : vector<2x8x8xf32> to vector<2x8x8xbf16>
    %299 = vector.extract_strided_slice %266 {offsets = [0, 0, 16], sizes = [2, 8, 16], strides = [1, 1, 1]} : vector<2x8x128xbf16> to vector<2x8x16xbf16>
    "tpu.trace_start"() <{level = 10 : i32, message = "bqk,bkd->bqd"}> : () -> ()
    %cst_102 = arith.constant dense<0.000000e+00> : vector<2x8x16xf32>
    %300 = tpu.matmul %298, %299, %cst_102 {dimension_numbers = #tpu.dot_dimension_numbers<[2], [1], [1], [2], [0, 0, 0, 1, 1, 2], [0], [0]>} : vector<2x8x8xbf16>, vector<2x8x16xbf16>, vector<2x8x16xf32> -> vector<2x8x16xf32>
    "tpu.trace_stop"() : () -> ()
    %301 = vector.extract_strided_slice %264 {offsets = [0, 0, 32], sizes = [2, 8, 16], strides = [1, 1, 1]} : vector<2x8x128xbf16> to vector<2x8x16xbf16>
    %302 = vector.extract_strided_slice %265 {offsets = [0, 0, 32], sizes = [2, 8, 16], strides = [1, 1, 1]} : vector<2x8x128xbf16> to vector<2x8x16xbf16>
    "tpu.trace_start"() <{level = 10 : i32, message = "bqd,bkd->bqk"}> : () -> ()
    %cst_103 = arith.constant dense<0.000000e+00> : vector<2x8x8xf32>
    %303 = tpu.matmul %301, %302, %cst_103 {dimension_numbers = #tpu.dot_dimension_numbers<[2], [2], [1], [1], [0, 0, 0, 1, 1, 1], [0], [0]>} : vector<2x8x16xbf16>, vector<2x8x16xbf16>, vector<2x8x8xf32> -> vector<2x8x8xf32>
    "tpu.trace_stop"() : () -> ()
    %cst_104 = arith.constant 2.500000e-01 : f32
    %304 = vector.broadcast %cst_104 : f32 to vector<2x8x8xf32>
    %305 = arith.mulf %303, %304 : vector<2x8x8xf32>
    %cst_105 = arith.constant dense<0xFF800000> : vector<2x8xf32>
    %306 = vector.multi_reduction <maximumf>, %305, %cst_105 [2] : vector<2x8x8xf32> to vector<2x8xf32>
    %307 = vector.shape_cast %306 : vector<2x8xf32> to vector<2x8x1xf32>
    %308 = vector.broadcast %307 : vector<2x8x1xf32> to vector<2x8x8xf32>
    %309 = arith.subf %305, %308 : vector<2x8x8xf32>
    %310 = math.exp %309 : vector<2x8x8xf32>
    %cst_106 = arith.constant dense<0.000000e+00> : vector<2x8xf32>
    %311 = vector.multi_reduction <add>, %310, %cst_106 [2] : vector<2x8x8xf32> to vector<2x8xf32>
    %312 = vector.shape_cast %311 : vector<2x8xf32> to vector<2x8x1xf32>
    %313 = vector.broadcast %312 : vector<2x8x1xf32> to vector<2x8x8xf32>
    %314 = arith.divf %310, %313 : vector<2x8x8xf32>
    %315 = arith.truncf %314 : vector<2x8x8xf32> to vector<2x8x8xbf16>
    %316 = vector.extract_strided_slice %266 {offsets = [0, 0, 32], sizes = [2, 8, 16], strides = [1, 1, 1]} : vector<2x8x128xbf16> to vector<2x8x16xbf16>
    "tpu.trace_start"() <{level = 10 : i32, message = "bqk,bkd->bqd"}> : () -> ()
    %cst_107 = arith.constant dense<0.000000e+00> : vector<2x8x16xf32>
    %317 = tpu.matmul %315, %316, %cst_107 {dimension_numbers = #tpu.dot_dimension_numbers<[2], [1], [1], [2], [0, 0, 0, 1, 1, 2], [0], [0]>} : vector<2x8x8xbf16>, vector<2x8x16xbf16>, vector<2x8x16xf32> -> vector<2x8x16xf32>
    "tpu.trace_stop"() : () -> ()
    %318 = vector.extract_strided_slice %264 {offsets = [0, 0, 48], sizes = [2, 8, 16], strides = [1, 1, 1]} : vector<2x8x128xbf16> to vector<2x8x16xbf16>
    %319 = vector.extract_strided_slice %265 {offsets = [0, 0, 48], sizes = [2, 8, 16], strides = [1, 1, 1]} : vector<2x8x128xbf16> to vector<2x8x16xbf16>
    "tpu.trace_start"() <{level = 10 : i32, message = "bqd,bkd->bqk"}> : () -> ()
    %cst_108 = arith.constant dense<0.000000e+00> : vector<2x8x8xf32>
    %320 = tpu.matmul %318, %319, %cst_108 {dimension_numbers = #tpu.dot_dimension_numbers<[2], [2], [1], [1], [0, 0, 0, 1, 1, 1], [0], [0]>} : vector<2x8x16xbf16>, vector<2x8x16xbf16>, vector<2x8x8xf32> -> vector<2x8x8xf32>
    "tpu.trace_stop"() : () -> ()
    %cst_109 = arith.constant 2.500000e-01 : f32
    %321 = vector.broadcast %cst_109 : f32 to vector<2x8x8xf32>
    %322 = arith.mulf %320, %321 : vector<2x8x8xf32>
    %cst_110 = arith.constant dense<0xFF800000> : vector<2x8xf32>
    %323 = vector.multi_reduction <maximumf>, %322, %cst_110 [2] : vector<2x8x8xf32> to vector<2x8xf32>
    %324 = vector.shape_cast %323 : vector<2x8xf32> to vector<2x8x1xf32>
    %325 = vector.broadcast %324 : vector<2x8x1xf32> to vector<2x8x8xf32>
    %326 = arith.subf %322, %325 : vector<2x8x8xf32>
    %327 = math.exp %326 : vector<2x8x8xf32>
    %cst_111 = arith.constant dense<0.000000e+00> : vector<2x8xf32>
    %328 = vector.multi_reduction <add>, %327, %cst_111 [2] : vector<2x8x8xf32> to vector<2x8xf32>
    %329 = vector.shape_cast %328 : vector<2x8xf32> to vector<2x8x1xf32>
    %330 = vector.broadcast %329 : vector<2x8x1xf32> to vector<2x8x8xf32>
    %331 = arith.divf %327, %330 : vector<2x8x8xf32>
    %332 = arith.truncf %331 : vector<2x8x8xf32> to vector<2x8x8xbf16>
    %333 = vector.extract_strided_slice %266 {offsets = [0, 0, 48], sizes = [2, 8, 16], strides = [1, 1, 1]} : vector<2x8x128xbf16> to vector<2x8x16xbf16>
    "tpu.trace_start"() <{level = 10 : i32, message = "bqk,bkd->bqd"}> : () -> ()
    %cst_112 = arith.constant dense<0.000000e+00> : vector<2x8x16xf32>
    %334 = tpu.matmul %332, %333, %cst_112 {dimension_numbers = #tpu.dot_dimension_numbers<[2], [1], [1], [2], [0, 0, 0, 1, 1, 2], [0], [0]>} : vector<2x8x8xbf16>, vector<2x8x16xbf16>, vector<2x8x16xf32> -> vector<2x8x16xf32>
    "tpu.trace_stop"() : () -> ()
    %335 = vector.extract_strided_slice %264 {offsets = [0, 0, 64], sizes = [2, 8, 16], strides = [1, 1, 1]} : vector<2x8x128xbf16> to vector<2x8x16xbf16>
    %336 = vector.extract_strided_slice %265 {offsets = [0, 0, 64], sizes = [2, 8, 16], strides = [1, 1, 1]} : vector<2x8x128xbf16> to vector<2x8x16xbf16>
    "tpu.trace_start"() <{level = 10 : i32, message = "bqd,bkd->bqk"}> : () -> ()
    %cst_113 = arith.constant dense<0.000000e+00> : vector<2x8x8xf32>
    %337 = tpu.matmul %335, %336, %cst_113 {dimension_numbers = #tpu.dot_dimension_numbers<[2], [2], [1], [1], [0, 0, 0, 1, 1, 1], [0], [0]>} : vector<2x8x16xbf16>, vector<2x8x16xbf16>, vector<2x8x8xf32> -> vector<2x8x8xf32>
    "tpu.trace_stop"() : () -> ()
    %cst_114 = arith.constant 2.500000e-01 : f32
    %338 = vector.broadcast %cst_114 : f32 to vector<2x8x8xf32>
    %339 = arith.mulf %337, %338 : vector<2x8x8xf32>
    %cst_115 = arith.constant dense<0xFF800000> : vector<2x8xf32>
    %340 = vector.multi_reduction <maximumf>, %339, %cst_115 [2] : vector<2x8x8xf32> to vector<2x8xf32>
    %341 = vector.shape_cast %340 : vector<2x8xf32> to vector<2x8x1xf32>
    %342 = vector.broadcast %341 : vector<2x8x1xf32> to vector<2x8x8xf32>
    %343 = arith.subf %339, %342 : vector<2x8x8xf32>
    %344 = math.exp %343 : vector<2x8x8xf32>
    %cst_116 = arith.constant dense<0.000000e+00> : vector<2x8xf32>
    %345 = vector.multi_reduction <add>, %344, %cst_116 [2] : vector<2x8x8xf32> to vector<2x8xf32>
    %346 = vector.shape_cast %345 : vector<2x8xf32> to vector<2x8x1xf32>
    %347 = vector.broadcast %346 : vector<2x8x1xf32> to vector<2x8x8xf32>
    %348 = arith.divf %344, %347 : vector<2x8x8xf32>
    %349 = arith.truncf %348 : vector<2x8x8xf32> to vector<2x8x8xbf16>
    %350 = vector.extract_strided_slice %266 {offsets = [0, 0, 64], sizes = [2, 8, 16], strides = [1, 1, 1]} : vector<2x8x128xbf16> to vector<2x8x16xbf16>
    "tpu.trace_start"() <{level = 10 : i32, message = "bqk,bkd->bqd"}> : () -> ()
    %cst_117 = arith.constant dense<0.000000e+00> : vector<2x8x16xf32>
    %351 = tpu.matmul %349, %350, %cst_117 {dimension_numbers = #tpu.dot_dimension_numbers<[2], [1], [1], [2], [0, 0, 0, 1, 1, 2], [0], [0]>} : vector<2x8x8xbf16>, vector<2x8x16xbf16>, vector<2x8x16xf32> -> vector<2x8x16xf32>
    "tpu.trace_stop"() : () -> ()
    %352 = vector.extract_strided_slice %264 {offsets = [0, 0, 80], sizes = [2, 8, 16], strides = [1, 1, 1]} : vector<2x8x128xbf16> to vector<2x8x16xbf16>
    %353 = vector.extract_strided_slice %265 {offsets = [0, 0, 80], sizes = [2, 8, 16], strides = [1, 1, 1]} : vector<2x8x128xbf16> to vector<2x8x16xbf16>
    "tpu.trace_start"() <{level = 10 : i32, message = "bqd,bkd->bqk"}> : () -> ()
    %cst_118 = arith.constant dense<0.000000e+00> : vector<2x8x8xf32>
    %354 = tpu.matmul %352, %353, %cst_118 {dimension_numbers = #tpu.dot_dimension_numbers<[2], [2], [1], [1], [0, 0, 0, 1, 1, 1], [0], [0]>} : vector<2x8x16xbf16>, vector<2x8x16xbf16>, vector<2x8x8xf32> -> vector<2x8x8xf32>
    "tpu.trace_stop"() : () -> ()
    %cst_119 = arith.constant 2.500000e-01 : f32
    %355 = vector.broadcast %cst_119 : f32 to vector<2x8x8xf32>
    %356 = arith.mulf %354, %355 : vector<2x8x8xf32>
    %cst_120 = arith.constant dense<0xFF800000> : vector<2x8xf32>
    %357 = vector.multi_reduction <maximumf>, %356, %cst_120 [2] : vector<2x8x8xf32> to vector<2x8xf32>
    %358 = vector.shape_cast %357 : vector<2x8xf32> to vector<2x8x1xf32>
    %359 = vector.broadcast %358 : vector<2x8x1xf32> to vector<2x8x8xf32>
    %360 = arith.subf %356, %359 : vector<2x8x8xf32>
    %361 = math.exp %360 : vector<2x8x8xf32>
    %cst_121 = arith.constant dense<0.000000e+00> : vector<2x8xf32>
    %362 = vector.multi_reduction <add>, %361, %cst_121 [2] : vector<2x8x8xf32> to vector<2x8xf32>
    %363 = vector.shape_cast %362 : vector<2x8xf32> to vector<2x8x1xf32>
    %364 = vector.broadcast %363 : vector<2x8x1xf32> to vector<2x8x8xf32>
    %365 = arith.divf %361, %364 : vector<2x8x8xf32>
    %366 = arith.truncf %365 : vector<2x8x8xf32> to vector<2x8x8xbf16>
    %367 = vector.extract_strided_slice %266 {offsets = [0, 0, 80], sizes = [2, 8, 16], strides = [1, 1, 1]} : vector<2x8x128xbf16> to vector<2x8x16xbf16>
    "tpu.trace_start"() <{level = 10 : i32, message = "bqk,bkd->bqd"}> : () -> ()
    %cst_122 = arith.constant dense<0.000000e+00> : vector<2x8x16xf32>
    %368 = tpu.matmul %366, %367, %cst_122 {dimension_numbers = #tpu.dot_dimension_numbers<[2], [1], [1], [2], [0, 0, 0, 1, 1, 2], [0], [0]>} : vector<2x8x8xbf16>, vector<2x8x16xbf16>, vector<2x8x16xf32> -> vector<2x8x16xf32>
    "tpu.trace_stop"() : () -> ()
    %369 = vector.extract_strided_slice %264 {offsets = [0, 0, 96], sizes = [2, 8, 16], strides = [1, 1, 1]} : vector<2x8x128xbf16> to vector<2x8x16xbf16>
    %370 = vector.extract_strided_slice %265 {offsets = [0, 0, 96], sizes = [2, 8, 16], strides = [1, 1, 1]} : vector<2x8x128xbf16> to vector<2x8x16xbf16>
    "tpu.trace_start"() <{level = 10 : i32, message = "bqd,bkd->bqk"}> : () -> ()
    %cst_123 = arith.constant dense<0.000000e+00> : vector<2x8x8xf32>
    %371 = tpu.matmul %369, %370, %cst_123 {dimension_numbers = #tpu.dot_dimension_numbers<[2], [2], [1], [1], [0, 0, 0, 1, 1, 1], [0], [0]>} : vector<2x8x16xbf16>, vector<2x8x16xbf16>, vector<2x8x8xf32> -> vector<2x8x8xf32>
    "tpu.trace_stop"() : () -> ()
    %cst_124 = arith.constant 2.500000e-01 : f32
    %372 = vector.broadcast %cst_124 : f32 to vector<2x8x8xf32>
    %373 = arith.mulf %371, %372 : vector<2x8x8xf32>
    %cst_125 = arith.constant dense<0xFF800000> : vector<2x8xf32>
    %374 = vector.multi_reduction <maximumf>, %373, %cst_125 [2] : vector<2x8x8xf32> to vector<2x8xf32>
    %375 = vector.shape_cast %374 : vector<2x8xf32> to vector<2x8x1xf32>
    %376 = vector.broadcast %375 : vector<2x8x1xf32> to vector<2x8x8xf32>
    %377 = arith.subf %373, %376 : vector<2x8x8xf32>
    %378 = math.exp %377 : vector<2x8x8xf32>
    %cst_126 = arith.constant dense<0.000000e+00> : vector<2x8xf32>
    %379 = vector.multi_reduction <add>, %378, %cst_126 [2] : vector<2x8x8xf32> to vector<2x8xf32>
    %380 = vector.shape_cast %379 : vector<2x8xf32> to vector<2x8x1xf32>
    %381 = vector.broadcast %380 : vector<2x8x1xf32> to vector<2x8x8xf32>
    %382 = arith.divf %378, %381 : vector<2x8x8xf32>
    %383 = arith.truncf %382 : vector<2x8x8xf32> to vector<2x8x8xbf16>
    %384 = vector.extract_strided_slice %266 {offsets = [0, 0, 96], sizes = [2, 8, 16], strides = [1, 1, 1]} : vector<2x8x128xbf16> to vector<2x8x16xbf16>
    "tpu.trace_start"() <{level = 10 : i32, message = "bqk,bkd->bqd"}> : () -> ()
    %cst_127 = arith.constant dense<0.000000e+00> : vector<2x8x16xf32>
    %385 = tpu.matmul %383, %384, %cst_127 {dimension_numbers = #tpu.dot_dimension_numbers<[2], [1], [1], [2], [0, 0, 0, 1, 1, 2], [0], [0]>} : vector<2x8x8xbf16>, vector<2x8x16xbf16>, vector<2x8x16xf32> -> vector<2x8x16xf32>
    "tpu.trace_stop"() : () -> ()
    %386 = vector.extract_strided_slice %264 {offsets = [0, 0, 112], sizes = [2, 8, 16], strides = [1, 1, 1]} : vector<2x8x128xbf16> to vector<2x8x16xbf16>
    %387 = vector.extract_strided_slice %265 {offsets = [0, 0, 112], sizes = [2, 8, 16], strides = [1, 1, 1]} : vector<2x8x128xbf16> to vector<2x8x16xbf16>
    "tpu.trace_start"() <{level = 10 : i32, message = "bqd,bkd->bqk"}> : () -> ()
    %cst_128 = arith.constant dense<0.000000e+00> : vector<2x8x8xf32>
    %388 = tpu.matmul %386, %387, %cst_128 {dimension_numbers = #tpu.dot_dimension_numbers<[2], [2], [1], [1], [0, 0, 0, 1, 1, 1], [0], [0]>} : vector<2x8x16xbf16>, vector<2x8x16xbf16>, vector<2x8x8xf32> -> vector<2x8x8xf32>
    "tpu.trace_stop"() : () -> ()
    %cst_129 = arith.constant 2.500000e-01 : f32
    %389 = vector.broadcast %cst_129 : f32 to vector<2x8x8xf32>
    %390 = arith.mulf %388, %389 : vector<2x8x8xf32>
    %cst_130 = arith.constant dense<0xFF800000> : vector<2x8xf32>
    %391 = vector.multi_reduction <maximumf>, %390, %cst_130 [2] : vector<2x8x8xf32> to vector<2x8xf32>
    %392 = vector.shape_cast %391 : vector<2x8xf32> to vector<2x8x1xf32>
    %393 = vector.broadcast %392 : vector<2x8x1xf32> to vector<2x8x8xf32>
    %394 = arith.subf %390, %393 : vector<2x8x8xf32>
    %395 = math.exp %394 : vector<2x8x8xf32>
    %cst_131 = arith.constant dense<0.000000e+00> : vector<2x8xf32>
    %396 = vector.multi_reduction <add>, %395, %cst_131 [2] : vector<2x8x8xf32> to vector<2x8xf32>
    %397 = vector.shape_cast %396 : vector<2x8xf32> to vector<2x8x1xf32>
    %398 = vector.broadcast %397 : vector<2x8x1xf32> to vector<2x8x8xf32>
    %399 = arith.divf %395, %398 : vector<2x8x8xf32>
    %400 = arith.truncf %399 : vector<2x8x8xf32> to vector<2x8x8xbf16>
    %401 = vector.extract_strided_slice %266 {offsets = [0, 0, 112], sizes = [2, 8, 16], strides = [1, 1, 1]} : vector<2x8x128xbf16> to vector<2x8x16xbf16>
    "tpu.trace_start"() <{level = 10 : i32, message = "bqk,bkd->bqd"}> : () -> ()
    %cst_132 = arith.constant dense<0.000000e+00> : vector<2x8x16xf32>
    %402 = tpu.matmul %400, %401, %cst_132 {dimension_numbers = #tpu.dot_dimension_numbers<[2], [1], [1], [2], [0, 0, 0, 1, 1, 2], [0], [0]>} : vector<2x8x8xbf16>, vector<2x8x16xbf16>, vector<2x8x16xf32> -> vector<2x8x16xf32>
    "tpu.trace_stop"() : () -> ()
    %403 = tpu.concatenate %283, %300, %317, %334, %351, %368, %385, %402 in 2 : vector<2x8x16xf32>, vector<2x8x16xf32>, vector<2x8x16xf32>, vector<2x8x16xf32>, vector<2x8x16xf32>, vector<2x8x16xf32>, vector<2x8x16xf32>, vector<2x8x16xf32> -> vector<2x8x128xf32>
    %404 = vector.shape_cast %403 : vector<2x8x128xf32> to vector<16x128xf32>
    %405 = arith.truncf %404 : vector<16x128xf32> to vector<16x128xbf16>
    %c600 = arith.constant 600 : index
    %c0_133 = arith.constant 0 : index
    %406 = vector.load %arg2[%c600, %c0_133] : memref<984x128xbf16, #tpu.memory_space<vmem>>, vector<128x128xbf16>
    %cst_134 = arith.constant dense<0.000000e+00> : vector<16x128xf32>
    %407 = tpu.matmul %405, %406, %cst_134 {dimension_numbers = #tpu.dot_dimension_numbers<[1], [0], [0], [1], [0, 0, 1, 1], [], []>} : vector<16x128xbf16>, vector<128x128xbf16>, vector<16x128xf32> -> vector<16x128xf32>
    %c10 = arith.constant 10 : index
    %c0_135 = arith.constant 0 : index
    %408 = vector.load %arg4[%c10, %c0_135] : memref<24x384xf32, #tpu.memory_space<vmem>>, vector<1x128xf32>
    %409 = vector.broadcast %408 : vector<1x128xf32> to vector<16x128xf32>
    %410 = arith.addf %407, %409 : vector<16x128xf32>
    %cst_136 = arith.constant 0.000000e+00 : f32
    %411 = vector.broadcast %cst_136 : f32 to vector<16x128xf32>
    %412 = arith.maximumf %410, %411 : vector<16x128xf32>
    %413 = arith.addf %43, %263 : vector<16x128xf32>
    %414 = vector.shape_cast %413 : vector<16x128xf32> to vector<2x8x128xf32>
    %415 = arith.addf %92, %412 : vector<16x128xf32>
    %416 = vector.shape_cast %415 : vector<16x128xf32> to vector<2x8x128xf32>
    %c11 = arith.constant 11 : index
    %c0_137 = arith.constant 0 : index
    %417 = vector.load %arg4[%c11, %c0_137] : memref<24x384xf32, #tpu.memory_space<vmem>>, vector<1x128xf32>
    %418 = vector.shape_cast %417 : vector<1x128xf32> to vector<1x1x128xf32>
    %c12 = arith.constant 12 : index
    %c0_138 = arith.constant 0 : index
    %419 = vector.load %arg4[%c12, %c0_138] : memref<24x384xf32, #tpu.memory_space<vmem>>, vector<1x128xf32>
    %420 = vector.shape_cast %419 : vector<1x128xf32> to vector<1x1x128xf32>
    %421 = vector.broadcast %418 : vector<1x1x128xf32> to vector<2x8x128xf32>
    %422 = arith.mulf %414, %421 : vector<2x8x128xf32>
    %423 = vector.broadcast %420 : vector<1x1x128xf32> to vector<2x8x128xf32>
    %424 = arith.mulf %416, %423 : vector<2x8x128xf32>
    %425 = arith.addf %422, %424 : vector<2x8x128xf32>
    %cst_139 = arith.constant dense<0.000000e+00> : vector<2x8xf32>
    %426 = vector.multi_reduction <add>, %425, %cst_139 [2] : vector<2x8x128xf32> to vector<2x8xf32>
    %427 = math.tanh %426 : vector<2x8xf32>
    %c14 = arith.constant 14 : index
    %c0_140 = arith.constant 0 : index
    %428 = vector.load %arg4[%c14, %c0_140] : memref<24x384xf32, #tpu.memory_space<vmem>>, vector<8x8xf32>
    %c13_141 = arith.constant 13 : index
    %c0_142 = arith.constant 0 : index
    %429 = vector.load %arg4[%c13_141, %c0_142] : memref<24x384xf32, #tpu.memory_space<vmem>>, vector<1x8xf32>
    %430 = vector.shape_cast %427 : vector<2x8xf32> to vector<2x8x1xf32>
    %431 = vector.shape_cast %428 : vector<8x8xf32> to vector<1x8x8xf32>
    %432 = vector.broadcast %430 : vector<2x8x1xf32> to vector<2x8x8xf32>
    %433 = vector.broadcast %431 : vector<1x8x8xf32> to vector<2x8x8xf32>
    %434 = arith.mulf %432, %433 : vector<2x8x8xf32>
    %cst_143 = arith.constant dense<0.000000e+00> : vector<2x8xf32>
    %435 = vector.multi_reduction <add>, %434, %cst_143 [1] : vector<2x8x8xf32> to vector<2x8xf32>
    %436 = vector.broadcast %429 : vector<1x8xf32> to vector<2x8xf32>
    %437 = arith.addf %435, %436 : vector<2x8xf32>
    %cst_144 = arith.constant 0.000000e+00 : f32
    %438 = vector.broadcast %cst_144 : f32 to vector<2x8xf32>
    %439 = arith.maximumf %437, %438 : vector<2x8xf32>
    %440 = vector.shape_cast %439 : vector<2x8xf32> to vector<2x8x1xf32>
    %441 = vector.broadcast %440 : vector<2x8x1xf32> to vector<2x8x128xf32>
    %442 = arith.mulf %414, %441 : vector<2x8x128xf32>
    %cst_145 = arith.constant dense<0.000000e+00> : vector<2x128xf32>
    %443 = vector.multi_reduction <add>, %442, %cst_145 [1] : vector<2x8x128xf32> to vector<2x128xf32>
    %cst_146 = arith.constant 1.250000e-01 : f32
    %444 = vector.broadcast %cst_146 : f32 to vector<2x128xf32>
    %445 = arith.mulf %443, %444 : vector<2x128xf32>
    %446 = vector.broadcast %440 : vector<2x8x1xf32> to vector<2x8x128xf32>
    %447 = arith.mulf %416, %446 : vector<2x8x128xf32>
    %cst_147 = arith.constant dense<0.000000e+00> : vector<2x128xf32>
    %448 = vector.multi_reduction <add>, %447, %cst_147 [1] : vector<2x8x128xf32> to vector<2x128xf32>
    %cst_148 = arith.constant 1.250000e-01 : f32
    %449 = vector.broadcast %cst_148 : f32 to vector<2x128xf32>
    %450 = arith.mulf %448, %449 : vector<2x128xf32>
    %451 = tpu.concatenate %445, %450 in 1 : vector<2x128xf32>, vector<2x128xf32> -> vector<2x256xf32>
    %452 = arith.truncf %451 : vector<2x256xf32> to vector<2x256xbf16>
    %c13_149 = arith.constant 13 : index
    %c8_150 = arith.constant 8 : index
    %453 = vector.load %arg4[%c13_149, %c8_150] : memref<24x384xf32, #tpu.memory_space<vmem>>, vector<1x8xf32>
    %c728 = arith.constant 728 : index
    %c0_151 = arith.constant 0 : index
    %454 = vector.load %arg2[%c728, %c0_151] : memref<984x128xbf16, #tpu.memory_space<vmem>>, vector<256x8xbf16>
    %cst_152 = arith.constant dense<0.000000e+00> : vector<2x8xf32>
    %455 = tpu.matmul %452, %454, %cst_152 {dimension_numbers = #tpu.dot_dimension_numbers<[1], [0], [0], [1], [0, 0, 1, 1], [], []>} : vector<2x256xbf16>, vector<256x8xbf16>, vector<2x8xf32> -> vector<2x8xf32>
    %456 = vector.broadcast %453 : vector<1x8xf32> to vector<2x8xf32>
    %457 = arith.addf %455, %456 : vector<2x8xf32>
    %cst_153 = arith.constant 0.000000e+00 : f32
    %458 = vector.broadcast %cst_153 : f32 to vector<2x112xf32>
    %459 = tpu.concatenate %457, %439, %458 in 1 : vector<2x8xf32>, vector<2x8xf32>, vector<2x112xf32> -> vector<2x128xf32>
    %c0_154 = arith.constant 0 : index
    %c0_155 = arith.constant 0 : index
    %460 = vector.load %arg5[%c0_154, %c0_155] : memref<2x128xf32, #tpu.memory_space<vmem>>, vector<2x128xf32>
    tpu.vector_store %arg5[%c0_154, %c0_155], %459 {strides = array<i32>} : memref<2x128xf32, #tpu.memory_space<vmem>>, vector<2x128xf32>,
    return
  }
}

</mosaic_0001>

<bundles_post_ra>
// kernel: vaanet_erase_forward.1
= control target key start
LH: loop header
LB: loop body
LE: loop exit
PB: predicated region body
PF: predicated region fallthrough
CT: control target
= control target key end

     0   :  { %vm31_vm0 = vcmask 1043456   ;;  %v7294_v0 = vmov 0.0   ;;  %vm7295_vm1 = vmmov 0   ;;  %vm27_vm2 = vcmask 64512   ;;  %s7296_s18 = smov 96   ;;  %s7297_s19 = smov 64   ;;  %s8725_s2 = inlined_call_operand.vmem [shape: bf16[984,128], index: 2, kind: input, shape index: {}]   ;;  %s8726_s0 = inlined_call_operand.vmem [shape: f32[16,8], index: 0, kind: input, shape index: {}]   ;;  %s8727_s4 = inlined_call_operand.vmem [shape: f32[24,384], index: 4, kind: input, shape index: {}]   ;;  %s8728_s1 = inlined_call_operand.vmem [shape: f32[16,80], index: 1, kind: input, shape index: {}]   ;;  %s8729_s3 = inlined_call_operand.vmem [shape: bf16[2,128,384], index: 3, kind: input, shape index: {}]   ;;  %s8730_s5 = inlined_call_operand.vmem [shape: f32[2,128], index: 5, kind: output, shape index: {}]  }
   0x1   :  { %6329 = vmatprep.subr.bf16.mxu1 %v7294_v0  ;;  %v25_v1 = vld [vmem:[%s8725_s2] sm:$0xf]  ;;  %6331 = vmatprep.mubr.msk.bf16.mxu1 %vm7295_vm1, %v7294_v0  ;;  %v23_v3 = vld [vmem:[%s8726_s0 + $0x8] sm:$0xff]  ;;  %v7018_v8 = vld [vmem:[%s8725_s2 + $0x74] sm:$0xff]   ;;  %vm196_vm3 = vcmask 261120   ;;  %vm523_vm4 = vcmask 654336  }
   0x2   :  { %v22_v2 = vld [vmem:[%s8726_s0] sm:$0xff]  ;;  %v33_v4 = vsel %vm31_vm0, %v25_v1, 0  ;;  %6355 = vmatprep.subr.bf16.mxu0 %v7294_v0  ;;  %6357 = vmatprep.mubr.msk.bf16.mxu0 %vm7295_vm1, %v7294_v0  ;;  %v7019_v9 = vld [vmem:[%s8725_s2 + $0x6c] sm:$0xff]   ;;  %v7022_v12 = vld [vmem:[%s8725_s2 + $0x54] sm:$0xff]   ;;  %vm602_vm5 = vcmask 523264   ;;  %vm1621_vm6 = vcmask 130048  }
   0x3   :  { %v24_v5 = vpack.c.bf16 %v23_v3, %v22_v2  ;;  %6330 = vmatpush3.bf16.msra.mxu1 %v33_v4  ;;  %v7016_v6 = vld [vmem:[%s8725_s2 + $0x84] sm:$0xff]   ;;  %v7017_v7 = vld [vmem:[%s8725_s2 + $0x7c] sm:$0xff]   ;;  %v7023_v13 = vld [vmem:[%s8725_s2 + $0x4c] sm:$0xff]   ;;  %s7301_s26 = smov 112   ;;  %s7302_s27 = smov 80   ;;  %vm3466_vm7 = vcmask 392192  }
   0x4   :  { %6335 = vmatprep.subr.bf16.mxu1 %v7294_v0  ;;  %v7020_v10 = vld [vmem:[%s8725_s2 + $0x64] sm:$0xff]   ;;  %v7021_v11 = vld [vmem:[%s8725_s2 + $0x5c] sm:$0xff]   ;;  %s7303_s28 = smov 48   ;;  %s7304_s29 = smov 32   ;;  %vm3473_vm8 = vcmask 785408   ;;  %vm3476_vm9 = vcmask 916480  }
   0x5   :  { %v26_v15 = vld [vmem:[%s8727_s4] ss:$0 sm:$0xff]  ;;  %v92_v22 = vld [vmem:[%s8727_s4 + $0x3] ss:$0 sm:$0xff]  ;;  %s7305_s30 = smov 16   ;;  %vm5570_vm10 = vcmask 1041408  }
   0x6   :  { %6332 = vmatmul.mubr.msk.bf16.vlgmr.msra.gmra.mxu1 %vm27_vm2, %v24_v5  ;;  %v7024_v5 = vld [vmem:[%s8725_s2 + $0x24] sm:$0xff]   ;;  %vm5643_vm11 = vcmask 1041409  }
   0x7   :  { %6336 = vmatpush3.bf16.msra.mxu1 %v7016_v6  ;;  %6351 = vmatprep.mubr.msk.bf16.mxu1 %vm7295_vm1, %v7294_v0 }
   0x8   :  { %6337 = vmatprep.subr.bf16.mxu1 %v7294_v0 }
   0xb   :  { %6338 = vmatpush3.bf16.msra.mxu1 %v7017_v7  ;;  %v7025_v7 = vld [vmem:[%s8725_s2 + $0x1c] sm:$0xff]  }
   0xc   :  { %6339 = vmatprep.subr.bf16.mxu1 %v7294_v0 }
   0xf   :  { %6340 = vmatpush3.bf16.msra.mxu1 %v7018_v8  ;;  %v7026_v8 = vld [vmem:[%s8725_s2 + $0x14] sm:$0xff]  }
  0x10   :  { %6341 = vmatprep.subr.bf16.mxu1 %v7294_v0 }
  0x13   :  { %6342 = vmatpush3.bf16.msra.mxu1 %v7019_v9  ;;  %v7027_v9 = vld [vmem:[%s8725_s2 + $0xc] sm:$0xff]  }
  0x14   :  { %6343 = vmatprep.subr.bf16.mxu1 %v7294_v0 }
  0x17   :  { %6344 = vmatpush3.bf16.msra.mxu1 %v7020_v10  ;;  %v7028_v10 = vld [vmem:[%s8725_s2 + $0x4] sm:$0xff]  }
  0x18   :  { %6345 = vmatprep.subr.bf16.mxu1 %v7294_v0 }
  0x1b   :  { %6346 = vmatpush3.bf16.msra.mxu1 %v7021_v11  ;;  %v479_v11 = vld [vmem:[%s8728_s1] sm:$0xff] }
  0x1c   :  { %6347 = vmatprep.subr.bf16.mxu1 %v7294_v0 }
  0x1f   :  { %6348 = vmatpush3.bf16.msra.mxu1 %v7022_v12  ;;  %v480_v12 = vld [vmem:[%s8728_s1 + $0x8] sm:$0xff] }
  0x20   :  { %6349 = vmatprep.subr.bf16.mxu1 %v7294_v0 }
  0x23   :  { %6350 = vmatpush3.bf16.msra.mxu1 %v7023_v13  ;;  %v481_v13 = vpack.c.bf16 %v480_v12, %v479_v11  ;;  %v7298_v11 = vmov 17  }
  0x24   :  { %6379 = vmatprep.subr.bf16.mxu1 %v7294_v0  ;;  %6944 = vset.pattern.permute.xlu1 %v7298_v11 }
  0xc6   :  { %v69_v14 = vpop.f32.mrf.mxu1 }
  0xc7   :  { %v7393_v18 = vadd.f32 %v69_v14, %v26_v15  ;;  %v7029_v14 = vld [vmem:[%s8725_s2 + $0x94] sm:$0xff]  }
  0xc8   :  { %v6333_v16 = vpop.f32.mrf.mxu1 }
  0xca   :  { %v72_v17 = vpop.f32.mrf.mxu1 }
  0xcb   :  { %v7395_v19 = vadd.f32 %v72_v17, %v26_v15  ;;  %v7030_v15 = vld [vmem:[%s8725_s2 + $0x8c] sm:$0xff]  }
  0xcc   :  { %v6334_v20 = vpop.f32.mrf.mxu1 }
  0xcd   :  { %v98_v21 = vpack.c.bf16 %v7395_v19, %v7393_v18 }
  0xcf   :  { %6352 = vmatmul.mubr.bf16.vlgmr.msra.gmra.mxu1 %v98_v21 }
  0xd0   :  { %6383 = vmatprep.mubr.msk.bf16.mxu1 %vm7295_vm1, %v7294_v0  ;;  %6380 = vmatpush3.bf16.msra.mxu1 %v7029_v14 }
  0xd1   :  { %6381 = vmatprep.subr.bf16.mxu1 %v7294_v0 }
  0xd4   :  { %6382 = vmatpush3.bf16.msra.mxu1 %v7030_v15 }
  0xd5   :  { %6401 = vmatprep.subr.bf16.mxu1 %v7294_v0 }
 0x18f   :  { %v181_v23 = vpop.f32.mrf.mxu1 }
 0x190   :  { %v182_v24 = vadd.f32 %v181_v23, %v92_v22  ;;  %v7031_v23 = vld [vmem:[%s8725_s2 + $0x44] sm:$0xff]  }
 0x191   :  { %v6353_v25 = vpop.f32.mrf.mxu1 }
 0x192   :  { %v6074_v26 = vpack.c.bf16 %v182_v24, %v182_v24 }
 0x193   :  { %v184_v27 = vpop.f32.mrf.mxu1 }
 0x194   :  { %v185_v28 = vadd.f32 %v184_v27, %v92_v22  ;;  %194 = vrot.lane.b32.xlu0 %v6074_v26, %s7296_s18  ;;  %v7032_v27 = vld [vmem:[%s8725_s2 + $0x3c] sm:$0xff]  }
 0x195   :  { %v6354_v29 = vpop.f32.mrf.mxu1 }
 0x196   :  { %v6075_v30 = vpack.c.bf16 %v185_v28, %v185_v28  ;;  %v7033_v29 = vld [vmem:[%s8725_s2 + $0x34] sm:$0xff]  }
 0x198   :  { %243 = vrot.lane.b32.xlu0 %v6075_v30, %s7296_s18 }
 0x206   :  { %v195_v31 = vpop.permute.xlu0 %194 }
 0x207   :  { %v201_v32 = vsel %vm196_vm3, %v195_v31, 0 }
 0x208   :  { %6356 = vmatpush3.bf16.xpose.msra.mxu0 %v201_v32  ;;  %v492_v32 = vld [vmem:[%s8727_s4 + $0x1] ss:$0 sm:$0xff] }
 0x209   :  { %6361 = vmatprep.subr.bf16.mxu0 %v7294_v0 }
 0x20a   :  { %v244_v33 = vpop.permute.xlu0 %243 }
 0x20b   :  { %v249_v34 = vsel %vm196_vm3, %v244_v33, 0 }
 0x20f   :  { %6358 = vmatmul.mubr.msk.bf16.vlgmr.msra.gmra.mxu0 %vm196_vm3, %v6074_v26 }
 0x210   :  { %6362 = vmatpush3.bf16.xpose.msra.mxu0 %v249_v34  ;;  %6363 = vmatprep.mubr.msk.bf16.mxu0 %vm7295_vm1, %v7294_v0 }
 0x211   :  { %6367 = vmatprep.subr.bf16.mxu0 %v7294_v0 }
 0x217   :  { %6364 = vmatmul.mubr.msk.bf16.vlgmr.msra.gmra.mxu0 %vm196_vm3, %v6075_v30 }
 0x218   :  { %6369 = vmatprep.mubr.msk.bf16.mxu0 %vm7295_vm1, %v7294_v0 }
 0x2cf   :  { %v237_v35 = vpop.f32.mrf.mxu0 }
 0x2d0   :  { %v291_v36 = vmul.f32 0.17677669, %v237_v35 }
 0x2d1   :  { %v6359_v37 = vpop.f32.mrf.mxu0 }
 0x2d2   :  { %v293_v38 = vsel %vm27_vm2, %v291_v36, -inf }
 0x2d3   :  { %294 = vmax.xlane.f32.xlu1 %v293_v38  ;;  %v240_v39 = vpop.f32.mrf.mxu0 }
 0x2d4   :  { %v7035_v39 = vld [vmem:[%s8725_s2 + $0xd4] sm:$0xff]  }
 0x2d5   :  { %v6360_v40 = vpop.f32.mrf.mxu0 }
 0x2d6   :  { %v7036_v40 = vld [vmem:[%s8725_s2 + $0xcc] sm:$0xff]  }
 0x2d7   :  { %v285_v41 = vpop.f32.mrf.mxu0 }
 0x2d8   :  { %v292_v42 = vmul.f32 0.17677669, %v285_v41  ;;  %v7037_v41 = vld [vmem:[%s8725_s2 + $0xc4] sm:$0xff]  }
 0x2d9   :  { %v6365_v43 = vpop.f32.mrf.mxu0 }
 0x2da   :  { %v296_v44 = vsel %vm27_vm2, %v292_v42, -inf  ;;  %v7039_v43 = vld [vmem:[%s8725_s2 + $0xb4] sm:$0xff]  }
 0x2db   :  { %297 = vmax.xlane.f32.xlu1 %v296_v44  ;;  %v288_v45 = vpop.f32.mrf.mxu0  ;;  %v7040_v44 = vld [vmem:[%s8725_s2 + $0xac] sm:$0xff]  }
 0x2dc   :  { %v7041_v45 = vld [vmem:[%s8725_s2 + $0xa4] sm:$0xff]  }
 0x2dd   :  { %v6366_v46 = vpop.f32.mrf.mxu0 }
 0x2de   :  { %v7042_v46 = vld [vmem:[%s8725_s2 + $0x9c] sm:$0xff]  }
 0x2ec   :  { %317 = vrot.lane.b32.xlu1 %v6074_v26, %s7297_s19 }
 0x35c   :  { %v295_v47 = vpop.xlane.xlu1 %294 }
 0x35d   :  { %v299_v48 = vsub.f32 %v291_v36, %v295_v47 }
 0x35f   :  { %v301_v49 = vmul.f32 1.442695, %v299_v48 }
 0x361   :  { %7141 = vpow2.f32 %v301_v49 }
 0x364   :  { %v298_v50 = vpop.xlane.xlu1 %297 }
 0x365   :  { %v300_v51 = vsub.f32 %v292_v42, %v298_v50  ;;  %v7038_v42 = vld [vmem:[%s8725_s2 + $0xbc] sm:$0xff]  }
 0x367   :  { %v303_v52 = vmul.f32 1.442695, %v300_v51  ;;  %v577_v51 = vld [vmem:[%s8727_s4 + $0x2] ss:$0 sm:$0xff] }
 0x368   :  { %v318_v53 = vpop.permute.xlu1 %317 }
 0x369   :  { %7143 = vpow2.f32 %v303_v52  ;;  %v323_v54 = vsel %vm31_vm0, %v318_v53, 0 }
 0x36a   :  { %6368 = vmatpush3.bf16.msra.mxu0 %v323_v54 }
 0x36b   :  { %6373 = vmatprep.subr.bf16.mxu0 %v7294_v0 }
 0x36e   :  { %v7142_v55 = vpop.eup %7141 }
 0x36f   :  { %v305_v56 = vsel %vm27_vm2, %v7142_v55, 0.0 }
 0x370   :  { %306 = vadd.xlane.f32.xlu0 %v305_v56 }
 0x376   :  { %v7144_v57 = vpop.eup %7143 }
 0x377   :  { %v308_v58 = vsel %vm27_vm2, %v7144_v57, 0.0 }
 0x378   :  { %309 = vadd.xlane.f32.xlu1 %v308_v58 }
 0x389   :  { %365 = vrot.lane.b32.xlu1 %v6075_v30, %s7297_s19  ;;  %v7034_v30 = vld [vmem:[%s8725_s2 + $0x2c] sm:$0xff]  }
 0x3f9   :  { %v307_v59 = vpop.xlane.xlu0 %306 }
 0x3fa   :  { %7145 = vrcp.f32 %v307_v59 }
 0x401   :  { %v310_v60 = vpop.xlane.xlu1 %309 }
 0x402   :  { %7147 = vrcp.f32 %v310_v60 }
 0x405   :  { %v366_v63 = vpop.permute.xlu1 %365 }
 0x406   :  { %v371_v2 = vsel %vm31_vm0, %v366_v63, 0 }
 0x407   :  { %v7146_v61 = vpop.eup %7145 }
 0x408   :  { %v312_v62 = vmul.f32 %v7146_v61, %v7142_v55  ;;  %v665_v61 = vld [vmem:[%s8727_s4 + $0x5] ss:$0 sm:$0xff] }
 0x40a   :  { %v315_v1 = vpack.c.bf16 %v312_v62, %v312_v62 }
 0x40c   :  { %6370 = vmatmul.mubr.msk.bf16.vlgmr.msra.gmra.mxu0 %vm27_vm2, %v315_v1 }
 0x40d   :  { %6374 = vmatpush3.bf16.msra.mxu0 %v371_v2  ;;  %6375 = vmatprep.mubr.msk.bf16.mxu0 %vm7295_vm1, %v7294_v0 }
 0x40e   :  { %6387 = vmatprep.subr.bf16.mxu0 %v7294_v0 }
 0x40f   :  { %v7148_v3 = vpop.eup %7147 }
 0x410   :  { %v314_v4 = vmul.f32 %v7148_v3, %v7144_v57 }
 0x412   :  { %v316_v6 = vpack.c.bf16 %v314_v4, %v314_v4 }
 0x414   :  { %6376 = vmatmul.mubr.msk.bf16.vlgmr.msra.gmra.mxu0 %vm27_vm2, %v316_v6 }
 0x415   :  { %6388 = vmatpush3.bf16.msra.mxu0 %v7024_v5  ;;  %6397 = vmatprep.mubr.msk.bf16.mxu0 %vm7295_vm1, %v7294_v0 }
 0x416   :  { %6389 = vmatprep.subr.bf16.mxu0 %v7294_v0 }
 0x419   :  { %6390 = vmatpush3.bf16.msra.mxu0 %v7025_v7 }
 0x41a   :  { %6391 = vmatprep.subr.bf16.mxu0 %v7294_v0 }
 0x41d   :  { %6392 = vmatpush3.bf16.msra.mxu0 %v7026_v8 }
 0x41e   :  { %6393 = vmatprep.subr.bf16.mxu0 %v7294_v0 }
 0x421   :  { %6394 = vmatpush3.bf16.msra.mxu0 %v7027_v9 }
 0x422   :  { %6395 = vmatprep.subr.bf16.mxu0 %v7294_v0 }
 0x425   :  { %6396 = vmatpush3.bf16.msra.mxu0 %v7028_v10 }
 0x426   :  { %6413 = vmatprep.subr.bf16.mxu0 %v7294_v0 }
 0x428   :  { %6398 = vmatmul.mubr.msk.bf16.vlgmr.msra.gmra.mxu0 %vm523_vm4, %v481_v13 }
 0x429   :  { %6429 = vmatprep.mubr.msk.bf16.mxu0 %vm7295_vm1, %v7294_v0  ;;  %6414 = vmatpush3.bf16.msra.mxu0 %v7035_v39 }
 0x42a   :  { %6415 = vmatprep.subr.bf16.mxu0 %v7294_v0 }
 0x42d   :  { %6416 = vmatpush3.bf16.msra.mxu0 %v7036_v40 }
 0x42e   :  { %6417 = vmatprep.subr.bf16.mxu0 %v7294_v0 }
 0x431   :  { %6418 = vmatpush3.bf16.msra.mxu0 %v7037_v41 }
 0x432   :  { %6419 = vmatprep.subr.bf16.mxu0 %v7294_v0 }
 0x435   :  { %6420 = vmatpush3.bf16.msra.mxu0 %v7038_v42 }
 0x436   :  { %6421 = vmatprep.subr.bf16.mxu0 %v7294_v0 }
 0x439   :  { %6422 = vmatpush3.bf16.msra.mxu0 %v7039_v43 }
 0x43a   :  { %6423 = vmatprep.subr.bf16.mxu0 %v7294_v0 }
 0x43d   :  { %6424 = vmatpush3.bf16.msra.mxu0 %v7040_v44 }
 0x43e   :  { %6425 = vmatprep.subr.bf16.mxu0 %v7294_v0 }
 0x441   :  { %6426 = vmatpush3.bf16.msra.mxu0 %v7041_v45 }
 0x442   :  { %6427 = vmatprep.subr.bf16.mxu0 %v7294_v0 }
 0x445   :  { %6428 = vmatpush3.bf16.msra.mxu0 %v7042_v46  ;;  %v7045_v46 = vld [vmem:[%s8729_s3 + $0xac] ss:$12 sps:$4 sm:$0xff]  }
 0x446   :  { %6457 = vmatprep.subr.bf16.mxu0 %v7294_v0 }
 0x4cc   :  { %v359_v16 = vpop.f32.mrf.mxu0 }
 0x4ce   :  { %v6371_v17 = vpop.f32.mrf.mxu0 }
 0x4d0   :  { %v362_v20 = vpop.f32.mrf.mxu0 }
 0x4d2   :  { %v6372_v21 = vpop.f32.mrf.mxu0 }
 0x4d4   :  { %v407_v22 = vpop.f32.mrf.mxu0 }
 0x4d5   :  { %v413_v24 = vpack.c.bf16 %v407_v22, %v359_v16 }
 0x4d6   :  { %v6377_v25 = vpop.f32.mrf.mxu0 }
 0x4d7   :  { %6384 = vmatmul.mubr.msk.bf16.vlgmr.msra.gmra.mxu1 %vm196_vm3, %v413_v24 }
 0x4d8   :  { %v410_v26 = vpop.f32.mrf.mxu0  ;;  %6402 = vmatpush3.bf16.msra.mxu1 %v7031_v23  ;;  %6409 = vmatprep.mubr.msk.bf16.mxu1 %vm7295_vm1, %v7294_v0 }
 0x4d9   :  { %6403 = vmatprep.subr.bf16.mxu1 %v7294_v0  ;;  %v21_v26 = vld [vmem:[%s8727_s4 + $0x1d] ss:$0 sm:$0xff] }
 0x4da   :  { %v6378_v28 = vpop.f32.mrf.mxu0 }
 0x4dc   :  { %6404 = vmatpush3.bf16.msra.mxu1 %v7032_v27  ;;  %v7299_v27 = vmov 16  }
 0x4dd   :  { %6405 = vmatprep.subr.bf16.mxu1 %v7294_v0  ;;  %6943 = vset.pattern.permute.xlu0 %v7299_v27  ;;  %v7099_v27 = vld [vmem:[%s8729_s3 + $0xf4] ss:$12 sps:$4 sm:$0xff]  }
 0x4e0   :  { %6406 = vmatpush3.bf16.msra.mxu1 %v7033_v29 }
 0x4e1   :  { %6407 = vmatprep.subr.bf16.mxu1 %v7294_v0 }
 0x4e4   :  { %6408 = vmatpush3.bf16.msra.mxu1 %v7034_v30 }
 0x4e5   :  { %6433 = vmatprep.subr.bf16.mxu1 %v7294_v0 }
 0x4e8   :  { %v561_v31 = vpop.f32.mrf.mxu0 }
 0x4e9   :  { %v562_v35 = vadd.f32 %v561_v31, %v492_v32 }
 0x4ea   :  { %v6399_v33 = vpop.f32.mrf.mxu0 }
 0x4ec   :  { %v564_v34 = vpop.f32.mrf.mxu0 }
 0x4ed   :  { %v565_v36 = vadd.f32 %v564_v34, %v492_v32 }
 0x4ee   :  { %v6400_v37 = vpop.f32.mrf.mxu0 }
 0x4ef   :  { %v568_v38 = vpack.c.bf16 %v565_v36, %v562_v35 }
 0x4f1   :  { %6410 = vmatmul.mubr.msk.bf16.vlgmr.msra.gmra.mxu1 %vm602_vm5, %v568_v38 }
 0x4f2   :  { %6435 = vmatprep.mubr.msk.bf16.mxu1 %vm7295_vm1, %v7294_v0 }
 0x597   :  { %v7526_v47 = vpop.f32.mrf.mxu1 }
 0x599   :  { %v6385_v48 = vpop.f32.mrf.mxu1 }
 0x59b   :  { %v7528_v49 = vpop.f32.mrf.mxu1 }
 0x59d   :  { %v6386_v50 = vpop.f32.mrf.mxu1 }
 0x5b1   :  { %v640_v52 = vpop.f32.mrf.mxu1 }
 0x5b2   :  { %v641_v53 = vadd.f32 %v640_v52, %v577_v51  ;;  %v7043_v52 = vld [vmem:[%s8729_s3 + $0xa8] ss:$12 sps:$4 sm:$0xff]  }
 0x5b3   :  { %v6411_v54 = vpop.f32.mrf.mxu1 }
 0x5b4   :  { %7149 = vtanh.f32 %v641_v53  ;;  %v7048_v54 = vld [vmem:[%s8729_s3 + $0x94] ss:$12 sps:$4 sm:$0xff]  }
 0x5b5   :  { %v643_v55 = vpop.f32.mrf.mxu1 }
 0x5b6   :  { %v644_v56 = vadd.f32 %v643_v55, %v577_v51  ;;  %v7046_v55 = vld [vmem:[%s8729_s3 + $0x90] ss:$12 sps:$4 sm:$0xff]  }
 0x5b7   :  { %v6412_v57 = vpop.f32.mrf.mxu1 }
 0x5b8   :  { %7151 = vtanh.f32 %v644_v56  ;;  %v7300_v56 = vmov 0   ;;  %v7051_v57 = vld [vmem:[%s8729_s3 + $0x7c] ss:$12 sps:$4 sm:$0xff]  }
 0x5c1   :  { %v7533_v58 = vpop.eup %7149 }
 0x5c5   :  { %v7535_v59 = vpop.eup %7151 }
 0x5c6   :  { %v671_v60 = vpack.c.bf16 %v7535_v59, %v7533_v58 }
 0x5c8   :  { %6430 = vmatmul.mubr.bf16.vlgmr.msra.gmra.mxu0 %v671_v60  ;;  %v7049_v60 = vld [vmem:[%s8729_s3 + $0x78] ss:$12 sps:$4 sm:$0xff]  }
 0x5c9   :  { %6461 = vmatprep.mubr.msk.bf16.mxu0 %vm7295_vm1, %v7294_v0 }
 0x688   :  { %v754_v62 = vpop.f32.mrf.mxu0 }
 0x689   :  { %v755_v63 = vadd.f32 %v754_v62, %v665_v61  ;;  %v7052_v62 = vld [vmem:[%s8729_s3 + $0x60] ss:$12 sps:$4 sm:$0xff]  }
 0x68a   :  { %v6431_v1 = vpop.f32.mrf.mxu0 }
 0x68b   :  { %v6076_v2 = vpack.c.bf16 %v755_v63, %v755_v63  ;;  %v7057_v63 = vld [vmem:[%s8729_s3 + $0x4c] ss:$12 sps:$4 sm:$0xff]   ;;  %v7055_v1 = vld [vmem:[%s8729_s3 + $0x48] ss:$12 sps:$4 sm:$0xff]  }
 0x68c   :  { %v757_v3 = vpop.f32.mrf.mxu0 }
 0x68d   :  { %v758_v4 = vadd.f32 %v757_v3, %v665_v61  ;;  %767 = vrot.lane.b32.xlu1 %v6076_v2, %s7296_s18  ;;  %v7054_v61 = vld [vmem:[%s8729_s3 + $0x64] ss:$12 sps:$4 sm:$0xff]  }
 0x68e   :  { %v6432_v5 = vpop.f32.mrf.mxu0  ;;  %v7058_v3 = vld [vmem:[%s8729_s3 + $0x30] ss:$12 sps:$4 sm:$0xff]  }
 0x68f   :  { %v6077_v6 = vpack.c.bf16 %v758_v4, %v758_v4  ;;  %v7063_v4 = vld [vmem:[%s8729_s3 + $0x1c] ss:$12 sps:$4 sm:$0xff]  }
 0x691   :  { %815 = vrot.lane.b32.xlu1 %v6077_v6, %s7296_s18 }
 0x6ff   :  { %v768_v7 = vpop.permute.xlu1 %767 }
 0x700   :  { %v773_v8 = vsel %vm196_vm3, %v768_v7, 0  ;;  %v7061_v7 = vld [vmem:[%s8729_s3 + $0x18] ss:$12 sps:$4 sm:$0xff]  }
 0x701   :  { %6434 = vmatpush3.bf16.xpose.msra.mxu1 %v773_v8 }
 0x702   :  { %6439 = vmatprep.subr.bf16.mxu1 %v7294_v0 }
 0x703   :  { %v816_v9 = vpop.permute.xlu1 %815 }
 0x704   :  { %v821_v10 = vsel %vm196_vm3, %v816_v9, 0 }
 0x708   :  { %6436 = vmatmul.mubr.msk.bf16.vlgmr.msra.gmra.mxu1 %vm196_vm3, %v6076_v2 }
 0x709   :  { %6440 = vmatpush3.bf16.xpose.msra.mxu1 %v821_v10  ;;  %6441 = vmatprep.mubr.msk.bf16.mxu1 %vm7295_vm1, %v7294_v0  ;;  %v7066_v10 = vld [vmem:[%s8729_s3 + $0x4] ss:$12 sps:$4 sm:$0xff]  }
 0x70a   :  { %6445 = vmatprep.subr.bf16.mxu1 %v7294_v0 }
 0x710   :  { %6442 = vmatmul.mubr.msk.bf16.vlgmr.msra.gmra.mxu1 %vm196_vm3, %v6077_v6 }
 0x711   :  { %6447 = vmatprep.mubr.msk.bf16.mxu1 %vm7295_vm1, %v7294_v0 }
 0x7c8   :  { %v809_v12 = vpop.f32.mrf.mxu1 }
 0x7c9   :  { %v863_v13 = vmul.f32 0.17677669, %v809_v12 }
 0x7ca   :  { %v6437_v14 = vpop.f32.mrf.mxu1 }
 0x7cb   :  { %v865_v15 = vsel %vm27_vm2, %v863_v13, -inf }
 0x7cc   :  { %866 = vmax.xlane.f32.xlu0 %v865_v15  ;;  %v812_v16 = vpop.f32.mrf.mxu1 }
 0x7cd   :  { %v7079_v16 = vld [vmem:[%s8729_s3 + $0x16c] ss:$12 sps:$4 sm:$0xff]  }
 0x7ce   :  { %v6438_v17 = vpop.f32.mrf.mxu1 }
 0x7cf   :  { %v7083_v17 = vld [vmem:[%s8729_s3 + $0x154] ss:$12 sps:$4 sm:$0xff]  }
 0x7d0   :  { %v857_v20 = vpop.f32.mrf.mxu1 }
 0x7d1   :  { %v864_v21 = vmul.f32 0.17677669, %v857_v20  ;;  %v7081_v20 = vld [vmem:[%s8729_s3 + $0x150] ss:$12 sps:$4 sm:$0xff]  }
 0x7d2   :  { %v6443_v22 = vpop.f32.mrf.mxu1 }
 0x7d3   :  { %v868_v23 = vsel %vm27_vm2, %v864_v21, -inf  ;;  %v7085_v22 = vld [vmem:[%s8729_s3 + $0x138] ss:$12 sps:$4 sm:$0xff]  }
 0x7d4   :  { %869 = vmax.xlane.f32.xlu1 %v868_v23  ;;  %v860_v24 = vpop.f32.mrf.mxu1  ;;  %v7091_v23 = vld [vmem:[%s8729_s3 + $0x124] ss:$12 sps:$4 sm:$0xff]  }
 0x7d5   :  { %v7089_v24 = vld [vmem:[%s8729_s3 + $0x120] ss:$12 sps:$4 sm:$0xff]  }
 0x7d6   :  { %v6444_v25 = vpop.f32.mrf.mxu1 }
 0x7d7   :  { %v7095_v25 = vld [vmem:[%s8729_s3 + $0x10c] ss:$12 sps:$4 sm:$0xff]  }
 0x7e2   :  { %889 = vrot.lane.b32.xlu0 %v6076_v2, %s7297_s19  ;;  %v7060_v2 = vld [vmem:[%s8729_s3 + $0x34] ss:$12 sps:$4 sm:$0xff]  }
 0x7e5   :  { %1043 = vperm.xlu1 %6944, %v21_v26  }
 0x855   :  { %v867_v28 = vpop.xlane.xlu0 %866 }
 0x856   :  { %v871_v29 = vsub.f32 %v863_v13, %v867_v28  ;;  %v7064_v13 = vld [vmem:[%s8729_s3] ss:$12 sps:$4 sm:$0xff]   ;;  %v7097_v28 = vld [vmem:[%s8729_s3 + $0xf0] ss:$12 sps:$4 sm:$0xff]  }
 0x858   :  { %v873_v30 = vmul.f32 1.442695, %v871_v29 }
 0x859   :  { %v890_v31 = vpop.permute.xlu0 %889 }
 0x85a   :  { %7153 = vpow2.f32 %v873_v30  ;;  %v895_v32 = vsel %vm31_vm0, %v890_v31, 0 }
 0x85b   :  { %6446 = vmatpush3.bf16.msra.mxu1 %v895_v32 }
 0x85c   :  { %6451 = vmatprep.subr.bf16.mxu1 %v7294_v0 }
 0x85d   :  { %v870_v33 = vpop.xlane.xlu1 %869 }
 0x85e   :  { %v872_v34 = vsub.f32 %v864_v21, %v870_v33  ;;  %v7087_v21 = vld [vmem:[%s8729_s3 + $0x13c] ss:$12 sps:$4 sm:$0xff]  }
 0x860   :  { %v875_v35 = vmul.f32 1.442695, %v872_v34  ;;  %v7069_v34 = vld [vmem:[%s8729_s3 + $0xb0] ss:$12 sps:$4 sm:$0xff]  }
 0x862   :  { %7155 = vpow2.f32 %v875_v35 }
 0x867   :  { %v7154_v36 = vpop.eup %7153 }
 0x868   :  { %v877_v37 = vsel %vm27_vm2, %v7154_v36, 0.0 }
 0x869   :  { %878 = vadd.xlane.f32.xlu0 %v877_v37 }
 0x86f   :  { %v7156_v38 = vpop.eup %7155 }
 0x870   :  { %v880_v39 = vsel %vm27_vm2, %v7156_v38, 0.0 }
 0x871   :  { %881 = vadd.xlane.f32.xlu0 %v880_v39 }
 0x887   :  { %937 = vrot.lane.b32.xlu0 %v6077_v6, %s7297_s19  ;;  %v97_v6 = vld [vmem:[%s8727_s4 + $0x4] ss:$0 sm:$0xff] }
 0x888   :  { %v467_v12 = vadd.f32 %v7528_v49, %v97_v6  ;;  %v7077_v49 = vld [vmem:[%s8729_s3 + $0x168] ss:$12 sps:$4 sm:$0xff]  }
 0x88b   :  { %472 = vperm.xlu0 %6943, %v21_v26   ;;  %v7093_v26 = vld [vmem:[%s8729_s3 + $0x108] ss:$12 sps:$4 sm:$0xff]  }
 0x88f   :  { %7015 = vset.pattern.permute.xlu0 %v7298_v11  ;;  %v464_v11 = vadd.f32 %v7526_v47, %v97_v6  ;;  %v7068_v47 = vld [vmem:[%s8725_s2 + $0xdc] sm:$0xff]   ;;  %v5884_v6 = vld [vmem:[%s8727_s4 + $0x7] ss:$8 sm:$0x7] }
 0x8f2   :  { %v879_v40 = vpop.xlane.xlu0 %878 }
 0x8f3   :  { %7157 = vrcp.f32 %v879_v40  ;;  %v7071_v40 = vld [vmem:[%s8729_s3 + $0x80] ss:$12 sps:$4 sm:$0xff]  }
 0x8fa   :  { %v882_v41 = vpop.xlane.xlu0 %881 }
 0x8fb   :  { %7159 = vrcp.f32 %v882_v41  ;;  %v7072_v41 = vld [vmem:[%s8729_s3 + $0x68] ss:$12 sps:$4 sm:$0xff]  }
 0x8fe   :  { %v938_v44 = vpop.permute.xlu0 %937 }
 0x8ff   :  { %v943_v48 = vsel %vm31_vm0, %v938_v44, 0  ;;  %v7075_v44 = vld [vmem:[%s8729_s3 + $0x20] ss:$12 sps:$4 sm:$0xff]  }
 0x900   :  { %v7158_v42 = vpop.eup %7157 }
 0x901   :  { %v884_v43 = vmul.f32 %v7158_v42, %v7154_v36  ;;  %v7073_v42 = vld [vmem:[%s8729_s3 + $0x50] ss:$12 sps:$4 sm:$0xff]  }
 0x903   :  { %v887_v45 = vpack.c.bf16 %v884_v43, %v884_v43  ;;  %v7074_v43 = vld [vmem:[%s8729_s3 + $0x38] ss:$12 sps:$4 sm:$0xff]  }
 0x905   :  { %6448 = vmatmul.mubr.msk.bf16.vlgmr.msra.gmra.mxu1 %vm27_vm2, %v887_v45  ;;  %v7076_v45 = vld [vmem:[%s8729_s3 + $0x8] ss:$12 sps:$4 sm:$0xff]  }
 0x906   :  { %6452 = vmatpush3.bf16.msra.mxu1 %v943_v48  ;;  %6453 = vmatprep.mubr.msk.bf16.mxu1 %vm7295_vm1, %v7294_v0  ;;  %v473_v5 = vpop.permute.xlu0 %472  ;;  %v7084_v48 = vld [vmem:[%s8729_s3 + $0x158] ss:$12 sps:$4 sm:$0xff]  }
 0x907   :  { %1230 = vmatprep.subr.bf16.mxu1 %v7045_v46  ;;  %v475_v8 = vmul.f32 %v473_v5, %v7393_v18  ;;  %v476_v9 = vmul.f32 %v473_v5, %v7395_v19  ;;  %v7067_v19 = vld [vmem:[%s8725_s2 + $0xe4] sm:$0xff]   ;;  %v7080_v46 = vld [vmem:[%s8729_s3 + $0x170] ss:$12 sps:$4 sm:$0xff]  }
 0x908   :  { %v7160_v50 = vpop.eup %7159  ;;  %6458 = vmatpush3.bf16.msra.mxu0 %v7067_v19 }
 0x909   :  { %v886_v51 = vmul.f32 %v7160_v50, %v7156_v38  ;;  %v7627_v14 = vadd.f32 %v475_v8, %v464_v11  ;;  %v7629_v15 = vadd.f32 %v476_v9, %v467_v12  ;;  %6459 = vmatprep.subr.bf16.mxu0 %v7294_v0  ;;  %v7070_v38 = vld [vmem:[%s8729_s3 + $0x98] ss:$12 sps:$4 sm:$0xff]   ;;  %v7088_v50 = vld [vmem:[%s8729_s3 + $0x140] ss:$12 sps:$4 sm:$0xff]  }
 0x90a   :  { %v670_v12 = vld [vmem:[%s8727_s4 + $0x6] ss:$0 sm:$0xff] }
 0x90b   :  { %v888_v53 = vpack.c.bf16 %v886_v51, %v886_v51  ;;  %v7633_v18 = vpack.c.bf16 %v7629_v15, %v7627_v14  ;;  %v7092_v51 = vld [vmem:[%s8729_s3 + $0x128] ss:$12 sps:$4 sm:$0xff]  }
 0x90c   :  { %6460 = vmatpush3.bf16.msra.mxu0 %v7068_v47 }
 0x90d   :  { %6454 = vmatmul.mubr.msk.bf16.vlgmr.msra.gmra.mxu1 %vm27_vm2, %v888_v53  ;;  %6465 = vmatprep.subr.bf16.mxu0 %v7294_v0  ;;  %v7100_v53 = vld [vmem:[%s8729_s3 + $0xf8] ss:$12 sps:$4 sm:$0xff]  }
 0x90e   :  { %1231 = vmatpush1.bf16.msra.mxu1 %v7043_v52  ;;  %1262 = vmatprep.mubr.bf16.mxu1 %v7300_v56  ;;  %v7096_v52 = vld [vmem:[%s8729_s3 + $0x110] ss:$12 sps:$4 sm:$0xff]  }
 0x90f   :  { %1232 = vmatprep.subr.bf16.mxu1 %v7048_v54  ;;  %v7103_v54 = vld [vmem:[%s8729_s3 + $0xdc] ss:$12 sps:$4 sm:$0xff]  }
 0x912   :  { %1233 = vmatpush1.bf16.msra.mxu1 %v7046_v55  ;;  %v7101_v55 = vld [vmem:[%s8729_s3 + $0xd8] ss:$12 sps:$4 sm:$0xff]  }
 0x913   :  { %1234 = vmatprep.subr.bf16.mxu1 %v7051_v57  ;;  %v7107_v57 = vld [vmem:[%s8729_s3 + $0xc4] ss:$12 sps:$4 sm:$0xff]  }
 0x916   :  { %1235 = vmatpush1.bf16.msra.mxu1 %v7049_v60  ;;  %v7105_v60 = vld [vmem:[%s8729_s3 + $0xc0] ss:$12 sps:$4 sm:$0xff]  }
 0x917   :  { %1236 = vmatprep.subr.bf16.mxu1 %v7054_v61  ;;  %v7108_v61 = vld [vmem:[%s8729_s3 + $0xc8] ss:$12 sps:$4 sm:$0xff]  }
 0x91a   :  { %1237 = vmatpush1.bf16.msra.mxu1 %v7052_v62 }
 0x91b   :  { %1238 = vmatprep.subr.bf16.mxu1 %v7057_v63  ;;  %v1087_v63 = vlaneseq }
 0x91e   :  { %1239 = vmatpush1.bf16.msra.mxu1 %v7055_v1 }
 0x91f   :  { %1240 = vmatprep.subr.bf16.mxu1 %v7060_v2  ;;  %v7763_v2 = vshrl.u32 %v1087_v63, 7 }
 0x921   :  { %v7767_v5 = vsub.s32 0, %v7763_v2 }
 0x922   :  { %1241 = vmatpush1.bf16.msra.mxu1 %v7058_v3  ;;  %v1093_v3 = vsub.s32 1, %v7763_v2 }
 0x923   :  { %1242 = vmatprep.subr.bf16.mxu1 %v7063_v4  ;;  %v1090_v9 = vrot.slane %v5884_v6, %v7767_v5 }
 0x926   :  { %1243 = vmatpush1.bf16.msra.mxu1 %v7061_v7  ;;  %v1094_v7 = vrot.slane %v5884_v6, %v1093_v3 }
 0x927   :  { %1244 = vmatprep.subr.bf16.mxu1 %v7066_v10 }
 0x92a   :  { %1245 = vmatpush1.bf16.msra.mxu1 %v7064_v13 }
 0x92b   :  { %1499 = vmatprep.subr.bf16.mxu1 %v7079_v16 }
 0x92d   :  { %1263 = vmatmul.mubr.bf16.vlgmr.msra.gmra.mxu1 %v7633_v18 }
 0x92e   :  { %1531 = vmatprep.mubr.bf16.mxu1 %v7300_v56  ;;  %1500 = vmatpush1.bf16.msra.mxu1 %v7077_v49  ;;  %v7104_v56 = vld [vmem:[%s8729_s3 + $0xe0] ss:$12 sps:$4 sm:$0xff]  }
 0x92f   :  { %1501 = vmatprep.subr.bf16.mxu1 %v7083_v17 }
 0x932   :  { %1502 = vmatpush1.bf16.msra.mxu1 %v7081_v20 }
 0x933   :  { %1503 = vmatprep.subr.bf16.mxu1 %v7087_v21 }
 0x936   :  { %1504 = vmatpush1.bf16.msra.mxu1 %v7085_v22 }
 0x937   :  { %1505 = vmatprep.subr.bf16.mxu1 %v7091_v23 }
 0x93a   :  { %1506 = vmatpush1.bf16.msra.mxu1 %v7089_v24 }
 0x93b   :  { %1507 = vmatprep.subr.bf16.mxu1 %v7095_v25 }
 0x93e   :  { %1508 = vmatpush1.bf16.msra.mxu1 %v7093_v26 }
 0x93f   :  { %1509 = vmatprep.subr.bf16.mxu1 %v7099_v27 }
 0x942   :  { %1510 = vmatpush1.bf16.msra.mxu1 %v7097_v28 }
 0x943   :  { %1511 = vmatprep.subr.bf16.mxu1 %v7103_v54 }
 0x946   :  { %1512 = vmatpush1.bf16.msra.mxu1 %v7101_v55 }
 0x947   :  { %1513 = vmatprep.subr.bf16.mxu1 %v7107_v57 }
 0x94a   :  { %1514 = vmatpush1.bf16.msra.mxu1 %v7105_v60 }
 0x94b   :  { %6505 = vmatprep.subr.bf16.mxu1 %v7294_v0 }
 0x9c5   :  { %v931_v29 = vpop.f32.mrf.mxu1 }
 0x9c7   :  { %v6449_v30 = vpop.f32.mrf.mxu1 }
 0x9c9   :  { %v934_v31 = vpop.f32.mrf.mxu1 }
 0x9cb   :  { %v6450_v32 = vpop.f32.mrf.mxu1 }
 0x9cd   :  { %v979_v33 = vpop.f32.mrf.mxu1 }
 0x9ce   :  { %v985_v35 = vpack.c.bf16 %v979_v33, %v931_v29 }
 0x9cf   :  { %v6455_v36 = vpop.f32.mrf.mxu1 }
 0x9d0   :  { %6462 = vmatmul.mubr.msk.bf16.vlgmr.msra.gmra.mxu0 %vm196_vm3, %v985_v35 }
 0x9d1   :  { %6466 = vmatpush3.bf16.msra.mxu0 %v7069_v34  ;;  %v982_v37 = vpop.f32.mrf.mxu1  ;;  %6481 = vmatprep.mubr.msk.bf16.mxu0 %vm7295_vm1, %v7294_v0 }
 0x9d2   :  { %6467 = vmatprep.subr.bf16.mxu0 %v7294_v0  ;;  %v5941_v37 = vld [vmem:[%s8727_s4 + $0x18] ss:$8 sm:$0x7] }
 0x9d3   :  { %v6456_v39 = vpop.f32.mrf.mxu1 }
 0x9d4   :  { %v1363_v39 = vrot.slane %v5941_v37, %v1093_v3 }
 0x9d5   :  { %6468 = vmatpush3.bf16.msra.mxu0 %v7070_v38  ;;  %v1359_v38 = vrot.slane %v5941_v37, %v7767_v5 }
 0x9d6   :  { %6469 = vmatprep.subr.bf16.mxu0 %v7294_v0 }
 0x9d9   :  { %6470 = vmatpush3.bf16.msra.mxu0 %v7071_v40 }
 0x9da   :  { %6471 = vmatprep.subr.bf16.mxu0 %v7294_v0 }
 0x9dd   :  { %6472 = vmatpush3.bf16.msra.mxu0 %v7072_v41 }
 0x9de   :  { %6473 = vmatprep.subr.bf16.mxu0 %v7294_v0 }
 0x9e1   :  { %6474 = vmatpush3.bf16.msra.mxu0 %v7073_v42 }
 0x9e2   :  { %6475 = vmatprep.subr.bf16.mxu0 %v7294_v0 }
 0x9e5   :  { %6476 = vmatpush3.bf16.msra.mxu0 %v7074_v43  ;;  %v1097_v43 = vsub.s32 2, %v7763_v2 }
 0x9e6   :  { %6477 = vmatprep.subr.bf16.mxu0 %v7294_v0 }
 0x9e9   :  { %6478 = vmatpush3.bf16.msra.mxu0 %v7075_v44 }
 0x9ea   :  { %6479 = vmatprep.subr.bf16.mxu0 %v7294_v0 }
 0x9ed   :  { %6480 = vmatpush3.bf16.msra.mxu0 %v7076_v45  ;;  %v1264_v62 = vpop.f32.mrf.mxu1 }
 0x9ee   :  { %6485 = vmatprep.subr.bf16.mxu0 %v7294_v0  ;;  %v1265_v19 = vadd.f32 %v1264_v62, %v1090_v9 }
 0x9ef   :  { %v1266_v1 = vpop.f32.mrf.mxu1 }
 0x9f0   :  { %6482 = vmatmul.mubr.bf16.vlgmr.msra.gmra.mxu0 %v7633_v18  ;;  %v1267_v10 = vadd.f32 %v1266_v1, %v1094_v7  ;;  %v1044_v18 = vpop.permute.xlu1 %1043  ;;  %v7778_v24 = vmax.f32 %v1265_v19, 0.0 }
 0x9f1   :  { %6486 = vmatpush3.bf16.msra.mxu0 %v7080_v46  ;;  %6501 = vmatprep.mubr.msk.bf16.mxu0 %vm7295_vm1, %v7294_v0  ;;  %v1268_v4 = vpop.f32.mrf.mxu1  ;;  %v1046_v21 = vmul.f32 %v7533_v58, %v1044_v18  ;;  %v1047_v23 = vmul.f32 %v7535_v59, %v1044_v18 }
 0x9f2   :  { %6487 = vmatprep.subr.bf16.mxu0 %v7294_v0  ;;  %v1269_v47 = vadd.f32 %v1268_v4, %v1090_v9  ;;  %v1315_v16 = vmax.f32 %v1267_v10, 0.0 }
 0x9f3   :  { %v1270_v8 = vpop.f32.mrf.mxu1 }
 0x9f4   :  { %v1271_v11 = vadd.f32 %v1270_v8, %v1094_v7  ;;  %v7780_v25 = vmax.f32 %v1269_v47, 0.0  ;;  %v7783_v28 = vpack.c.bf16 %v1315_v16, %v7778_v24 }
 0x9f5   :  { %6488 = vmatpush3.bf16.msra.mxu0 %v7084_v48  ;;  %v7817_v48 = vrot.slane %v5941_v37, %v1097_v43 }
 0x9f6   :  { %6489 = vmatprep.subr.bf16.mxu0 %v7294_v0  ;;  %v1318_v17 = vmax.f32 %v1271_v11, 0.0  ;;  %v1626_v59 = vsel %vm1621_vm6, %v7783_v28, 0  ;;  %v1740_v55 = vrot.slane %v7783_v28, 4  ;;  %v7843_v16 = vpack.c.bf16 %v7780_v25, %v7780_v25 }
 0x9f8   :  { %v7786_v29 = vpack.c.bf16 %v1318_v17, %v7780_v25  ;;  %v1745_v3 = vsel %vm31_vm0, %v1740_v55, 0 }
 0x9f9   :  { %6490 = vmatpush3.bf16.msra.mxu0 %v7088_v50 }
 0x9fa   :  { %6491 = vmatprep.subr.bf16.mxu0 %v7294_v0  ;;  %v1672_v32 = vsel %vm1621_vm6, %v7786_v29, 0  ;;  %v1787_v4 = vrot.slane %v7786_v29, 4 }
 0x9fc   :  { %v1792_v7 = vsel %vm31_vm0, %v1787_v4, 0 }
 0x9fd   :  { %6492 = vmatpush3.bf16.msra.mxu0 %v7092_v51 }
 0x9fe   :  { %6493 = vmatprep.subr.bf16.mxu0 %v7294_v0 }
 0xa01   :  { %6494 = vmatpush3.bf16.msra.mxu0 %v7096_v52 }
 0xa02   :  { %6495 = vmatprep.subr.bf16.mxu0 %v7294_v0 }
 0xa05   :  { %6496 = vmatpush3.bf16.msra.mxu0 %v7100_v53 }
 0xa06   :  { %6497 = vmatprep.subr.bf16.mxu0 %v7294_v0 }
 0xa09   :  { %6498 = vmatpush3.bf16.msra.mxu0 %v7104_v56 }
 0xa0a   :  { %6499 = vmatprep.subr.bf16.mxu0 %v7294_v0 }
 0xa0d   :  { %6500 = vmatpush3.bf16.msra.mxu0 %v7108_v61 }
 0xa0e   :  { %6511 = vmatprep.subr.bf16.mxu0 %v7294_v0 }
 0xa90   :  { %v1035_v13 = vpop.f32.mrf.mxu0 }
 0xa91   :  { %v1036_v20 = vadd.f32 %v1035_v13, %v670_v12 }
 0xa92   :  { %v6463_v49 = vpop.f32.mrf.mxu0 }
 0xa93   :  { %v7788_v30 = vadd.f32 %v1046_v21, %v1036_v20  ;;  %v7850_v21 = vpack.c.bf16 %v7778_v24, %v7778_v24 }
 0xa94   :  { %v1038_v22 = vpop.f32.mrf.mxu0 }
 0xa95   :  { %v1039_v26 = vadd.f32 %v1038_v22, %v670_v12 }
 0xa96   :  { %v6464_v27 = vpop.f32.mrf.mxu0 }
 0xa97   :  { %v7790_v31 = vadd.f32 %v1047_v23, %v1039_v26 }
 0xa99   :  { %v1051_v58 = vpack.c.bf16 %v7790_v31, %v7788_v30 }
 0xa9b   :  { %1532 = vmatmul.mubr.bf16.vlgmr.msra.gmra.mxu1 %v1051_v58  ;;  %6502 = vmatmul.mubr.bf16.vlgmr.msra.gmra.mxu0 %v1051_v58 }
 0xa9c   :  { %6506 = vmatpush3.bf16.xpose.msra.mxu1 %v1626_v59  ;;  %6512 = vmatpush3.bf16.xpose.msra.mxu0 %v1672_v32 }
 0xa9d   :  { %6507 = vmatprep.mubr.msk.bf16.mxu1 %vm7295_vm1, %v7294_v0  ;;  %6517 = vmatprep.subr.bf16.mxu1 %v7294_v0 }
 0xa9e   :  { %6513 = vmatprep.mubr.msk.bf16.mxu0 %vm7295_vm1, %v7294_v0  ;;  %6523 = vmatprep.subr.bf16.mxu0 %v7294_v0 }
 0xab0   :  { %v7804_v33 = vpop.f32.mrf.mxu0 }
 0xab2   :  { %v6483_v34 = vpop.f32.mrf.mxu0 }
 0xab4   :  { %v7806_v35 = vpop.f32.mrf.mxu0 }
 0xab6   :  { %v6484_v36 = vpop.f32.mrf.mxu0 }
 0xb5b   :  { %v1533_v40 = vpop.f32.mrf.mxu1  ;;  %v7812_v41 = vpop.f32.mrf.mxu0 }
 0xb5c   :  { %v1534_v42 = vadd.f32 %v1533_v40, %v1359_v38  ;;  %v1577_v2 = vadd.f32 %v7812_v41, %v7817_v48 }
 0xb5d   :  { %v1535_v44 = vpop.f32.mrf.mxu1  ;;  %v6503_v45 = vpop.f32.mrf.mxu0 }
 0xb5e   :  { %v1536_v46 = vadd.f32 %v1535_v44, %v1363_v39  ;;  %v1583_v52 = vmax.f32 %v1534_v42, 0.0 }
 0xb5f   :  { %v1537_v50 = vpop.f32.mrf.mxu1  ;;  %v1579_v51 = vpop.f32.mrf.mxu0 }
 0xb60   :  { %v1584_v53 = vmax.f32 %v1536_v46, 0.0  ;;  %v1538_v54 = vadd.f32 %v1537_v50, %v1359_v38  ;;  %v7821_v56 = vadd.f32 %v1579_v51, %v7817_v48  ;;  %v7860_v38 = vpack.c.bf16 %v1583_v52, %v1583_v52 }
 0xb61   :  { %v1539_v57 = vpop.f32.mrf.mxu1  ;;  %v6504_v60 = vpop.f32.mrf.mxu0 }
 0xb62   :  { %v7823_v61 = vpack.c.bf16 %v1584_v53, %v1583_v52  ;;  %v1540_v62 = vadd.f32 %v1539_v57, %v1363_v39  ;;  %v1586_v63 = vmax.f32 %v1538_v54, 0.0 }
 0xb64   :  { %v1587_v1 = vmax.f32 %v1540_v62, 0.0  ;;  %6508 = vmatmul.mubr.msk.bf16.vlgmr.msra.gmra.mxu1 %vm1621_vm6, %v7823_v61  ;;  %v7855_v58 = vpack.c.bf16 %v1586_v63, %v1586_v63 }
 0xb65   :  { %6518 = vmatpush3.bf16.msra.mxu1 %v1745_v3  ;;  %6519 = vmatprep.mubr.msk.bf16.mxu1 %vm7295_vm1, %v7294_v0 }
 0xb66   :  { %v7831_v6 = vpack.c.bf16 %v1587_v1, %v1586_v63  ;;  %6529 = vmatprep.subr.bf16.mxu1 %v7294_v0 }
 0xb68   :  { %6514 = vmatmul.mubr.msk.bf16.vlgmr.msra.gmra.mxu0 %vm1621_vm6, %v7831_v6 }
 0xb69   :  { %6524 = vmatpush3.bf16.msra.mxu0 %v1792_v7  ;;  %6525 = vmatprep.mubr.msk.bf16.mxu0 %vm7295_vm1, %v7294_v0 }
 0xb6a   :  { %6535 = vmatprep.subr.bf16.mxu0 %v7294_v0 }
 0xc24   :  { %v1662_v8 = vpop.f32.mrf.mxu1 }
 0xc25   :  { %v1714_v17 = vmul.f32 0.25, %v1662_v8 }
 0xc26   :  { %v6509_v9 = vpop.f32.mrf.mxu1 }
 0xc27   :  { %v1716_v20 = vsel %vm27_vm2, %v1714_v17, -inf }
 0xc28   :  { %v1665_v10 = vpop.f32.mrf.mxu1  ;;  %v1708_v11 = vpop.f32.mrf.mxu0 }
 0xc29   :  { %v1715_v12 = vmul.f32 0.25, %v1708_v11 }
 0xc2a   :  { %v6510_v13 = vpop.f32.mrf.mxu1  ;;  %v6515_v18 = vpop.f32.mrf.mxu0 }
 0xc2b   :  { %v1719_v19 = vsel %vm27_vm2, %v1715_v12, -inf }
 0xc2c   :  { %1720 = vmax.xlane.f32.xlu0 %v1719_v19  ;;  %v1711_v47 = vpop.f32.mrf.mxu0 }
 0xc2e   :  { %v6516_v49 = vpop.f32.mrf.mxu0 }
 0xc42   :  { %1890 = vrot.lane.b32.xlu0 %v7843_v16, %s7301_s26 }
 0xc61   :  { %1717 = vmax.xlane.f32.xlu0 %v1716_v20 }
 0xc77   :  { %1838 = vrot.lane.b32.xlu0 %v7850_v21, %s7301_s26 }
 0xcb5   :  { %v1721_v22 = vpop.xlane.xlu0 %1720 }
 0xcb6   :  { %v1723_v23 = vsub.f32 %v1715_v12, %v1721_v22 }
 0xcb8   :  { %v1726_v26 = vmul.f32 1.442695, %v1723_v23 }
 0xcb9   :  { %v1891_v59 = vpop.permute.xlu0 %1890 }
 0xcba   :  { %7161 = vpow2.f32 %v1726_v26  ;;  %v1896_v45 = vsel %vm1621_vm6, %v1891_v59, 0 }
 0xcc7   :  { %v7162_v25 = vpop.eup %7161 }
 0xcc8   :  { %v1731_v27 = vsel %vm27_vm2, %v7162_v25, 0.0 }
 0xcc9   :  { %1732 = vadd.xlane.f32.xlu1 %v1731_v27 }
 0xcda   :  { %1887 = vrot.lane.b32.xlu1 %v7855_v58, %s7301_s26 }
 0xcea   :  { %v1718_v32 = vpop.xlane.xlu0 %1717 }
 0xceb   :  { %v1722_v24 = vsub.f32 %v1714_v17, %v1718_v32 }
 0xced   :  { %v1724_v34 = vmul.f32 1.442695, %v1722_v24 }
 0xcee   :  { %v1839_v53 = vpop.permute.xlu0 %1838 }
 0xcef   :  { %7163 = vpow2.f32 %v1724_v34  ;;  %v1844_v55 = vsel %vm1621_vm6, %v1839_v53, 0 }
 0xcfc   :  { %v7164_v36 = vpop.eup %7163 }
 0xcfd   :  { %v1728_v37 = vsel %vm27_vm2, %v7164_v36, 0.0 }
 0xcfe   :  { %1729 = vadd.xlane.f32.xlu1 %v1728_v37 }
 0xd0f   :  { %1835 = vrot.lane.b32.xlu1 %v7860_v38, %s7301_s26 }
 0xd52   :  { %v1733_v39 = vpop.xlane.xlu1 %1732 }
 0xd53   :  { %7165 = vrcp.f32 %v1733_v39 }
 0xd56   :  { %v1888_v46 = vpop.permute.xlu1 %1887 }
 0xd60   :  { %v7166_v40 = vpop.eup %7165 }
 0xd61   :  { %v1737_v42 = vmul.f32 %v7166_v40, %v7162_v25 }
 0xd63   :  { %v1739_v44 = vpack.c.bf16 %v1737_v42, %v1737_v42 }
 0xd65   :  { %6526 = vmatmul.mubr.msk.bf16.vlgmr.msra.gmra.mxu0 %vm27_vm2, %v1739_v44 }
 0xd66   :  { %6536 = vmatpush3.bf16.xpose.msra.mxu0 %v1896_v45  ;;  %6537 = vmatprep.mubr.msk.bf16.mxu0 %vm7295_vm1, %v7294_v0 }
 0xd67   :  { %6547 = vmatprep.subr.bf16.mxu0 %v7294_v0 }
 0xd6d   :  { %6538 = vmatmul.mubr.msk.bf16.vlgmr.msra.gmra.mxu0 %vm1621_vm6, %v1888_v46 }
 0xd6e   :  { %6549 = vmatprep.mubr.msk.bf16.mxu0 %vm7295_vm1, %v7294_v0 }
 0xd87   :  { %v1730_v50 = vpop.xlane.xlu1 %1729 }
 0xd88   :  { %7167 = vrcp.f32 %v1730_v50 }
 0xd8b   :  { %v1836_v57 = vpop.permute.xlu1 %1835 }
 0xd95   :  { %v7168_v51 = vpop.eup %7167 }
 0xd96   :  { %v1735_v52 = vmul.f32 %v7168_v51, %v7164_v36 }
 0xd98   :  { %v1738_v54 = vpack.c.bf16 %v1735_v52, %v1735_v52 }
 0xd9a   :  { %6520 = vmatmul.mubr.msk.bf16.vlgmr.msra.gmra.mxu1 %vm27_vm2, %v1738_v54 }
 0xd9b   :  { %6530 = vmatpush3.bf16.xpose.msra.mxu1 %v1844_v55  ;;  %6531 = vmatprep.mubr.msk.bf16.mxu1 %vm7295_vm1, %v7294_v0 }
 0xd9c   :  { %6541 = vmatprep.subr.bf16.mxu1 %v7294_v0 }
 0xda2   :  { %6532 = vmatmul.mubr.msk.bf16.vlgmr.msra.gmra.mxu1 %vm1621_vm6, %v1836_v57 }
 0xda3   :  { %6543 = vmatprep.mubr.msk.bf16.mxu1 %vm7295_vm1, %v7294_v0 }
 0xe25   :  { %v7880_v60 = vpop.f32.mrf.mxu0 }
 0xe27   :  { %v6527_v62 = vpop.f32.mrf.mxu0 }
 0xe29   :  { %v1831_v63 = vpop.f32.mrf.mxu0 }
 0xe2b   :  { %v6528_v1 = vpop.f32.mrf.mxu0 }
 0xe2d   :  { %v1932_v3 = vpop.f32.mrf.mxu0 }
 0xe2e   :  { %v1939_v4 = vmul.f32 0.25, %v1932_v3 }
 0xe2f   :  { %v6539_v7 = vpop.f32.mrf.mxu0 }
 0xe30   :  { %v1943_v8 = vsel %vm27_vm2, %v1939_v4, -inf }
 0xe31   :  { %v1935_v9 = vpop.f32.mrf.mxu0  ;;  %1944 = vmax.xlane.f32.xlu0 %v1943_v8 }
 0xe33   :  { %v6540_v10 = vpop.f32.mrf.mxu0 }
 0xe47   :  { %2013 = vrot.lane.b32.xlu0 %v7786_v29, %s7301_s26 }
 0xe4b   :  { %2112 = vrot.lane.b32.xlu0 %v7855_v58, %s7296_s18 }
 0xe5a   :  { %v7887_v11 = vpop.f32.mrf.mxu1 }
 0xe5c   :  { %v6521_v12 = vpop.f32.mrf.mxu1 }
 0xe5e   :  { %v1784_v13 = vpop.f32.mrf.mxu1 }
 0xe60   :  { %v6522_v18 = vpop.f32.mrf.mxu1 }
 0xe62   :  { %v1880_v19 = vpop.f32.mrf.mxu1 }
 0xe63   :  { %v1938_v49 = vmul.f32 0.25, %v1880_v19 }
 0xe64   :  { %v6533_v47 = vpop.f32.mrf.mxu1 }
 0xe65   :  { %v1940_v22 = vsel %vm27_vm2, %v1938_v49, -inf }
 0xe66   :  { %v1883_v17 = vpop.f32.mrf.mxu1 }
 0xe68   :  { %v6534_v20 = vpop.f32.mrf.mxu1 }
 0xe6a   :  { %1941 = vmax.xlane.f32.xlu0 %v1940_v22 }
 0xe80   :  { %1964 = vrot.lane.b32.xlu0 %v7783_v28, %s7301_s26 }
 0xe84   :  { %2062 = vrot.lane.b32.xlu0 %v7860_v38, %s7296_s18 }
 0xeba   :  { %v1945_v23 = vpop.xlane.xlu0 %1944 }
 0xebb   :  { %v1947_v26 = vsub.f32 %v1939_v4, %v1945_v23 }
 0xebd   :  { %v1950_v25 = vmul.f32 1.442695, %v1947_v26 }
 0xebe   :  { %v2014_v27 = vpop.permute.xlu0 %2013 }
 0xebf   :  { %7169 = vpow2.f32 %v1950_v25  ;;  %v2015_v59 = vrot.slane %v2014_v27, 4 }
 0xec1   :  { %v2020_v32 = vsel %vm31_vm0, %v2015_v59, 0 }
 0xec2   :  { %6548 = vmatpush3.bf16.msra.mxu0 %v2020_v32  ;;  %v2113_v36 = vpop.permute.xlu0 %2112 }
 0xec3   :  { %6559 = vmatprep.subr.bf16.mxu0 %v7294_v0 }
 0xecc   :  { %v7170_v24 = vpop.eup %7169 }
 0xecd   :  { %v1955_v34 = vsel %vm27_vm2, %v7170_v24, 0.0 }
 0xece   :  { %1956 = vadd.xlane.f32.xlu1 %v1955_v34 }
 0xedf   :  { %2114 = vrot.lane.b32.xlu1 %v7843_v16, %s7296_s18 }
 0xef3   :  { %v1942_v37 = vpop.xlane.xlu0 %1941 }
 0xef4   :  { %v1946_v39 = vsub.f32 %v1938_v49, %v1942_v37 }
 0xef6   :  { %v1948_v40 = vmul.f32 1.442695, %v1946_v39 }
 0xef7   :  { %v1965_v42 = vpop.permute.xlu0 %1964 }
 0xef8   :  { %7171 = vpow2.f32 %v1948_v40  ;;  %v1966_v44 = vrot.slane %v1965_v42, 4 }
 0xefa   :  { %v1971_v45 = vsel %vm31_vm0, %v1966_v44, 0 }
 0xefb   :  { %6542 = vmatpush3.bf16.msra.mxu1 %v1971_v45  ;;  %v2063_v8 = vpop.permute.xlu0 %2062 }
 0xefc   :  { %6553 = vmatprep.subr.bf16.mxu1 %v7294_v0 }
 0xf05   :  { %v7172_v46 = vpop.eup %7171 }
 0xf06   :  { %v1952_v50 = vsel %vm27_vm2, %v7172_v46, 0.0 }
 0xf07   :  { %1953 = vadd.xlane.f32.xlu1 %v1952_v50 }
 0xf18   :  { %2064 = vrot.lane.b32.xlu1 %v7850_v21, %s7296_s18 }
 0xf57   :  { %v1957_v51 = vpop.xlane.xlu1 %1956 }
 0xf58   :  { %7173 = vrcp.f32 %v1957_v51 }
 0xf5b   :  { %v2115_v54 = vpop.permute.xlu1 %2114 }
 0xf5c   :  { %v2120_v57 = vsel %vm1621_vm6, %v2115_v54, 0 }
 0xf65   :  { %v7174_v52 = vpop.eup %7173 }
 0xf66   :  { %v1961_v53 = vmul.f32 %v7174_v52, %v7170_v24 }
 0xf68   :  { %v1963_v55 = vpack.c.bf16 %v1961_v53, %v1961_v53 }
 0xf6a   :  { %6550 = vmatmul.mubr.msk.bf16.vlgmr.msra.gmra.mxu0 %vm27_vm2, %v1963_v55 }
 0xf6b   :  { %6560 = vmatpush3.bf16.xpose.msra.mxu0 %v2120_v57  ;;  %6561 = vmatprep.mubr.msk.bf16.mxu0 %vm7295_vm1, %v7294_v0 }
 0xf6c   :  { %6571 = vmatprep.subr.bf16.mxu0 %v7294_v0 }
 0xf72   :  { %6562 = vmatmul.mubr.msk.bf16.vlgmr.msra.gmra.mxu0 %vm1621_vm6, %v2113_v36 }
 0xf73   :  { %6573 = vmatprep.mubr.msk.bf16.mxu0 %vm7295_vm1, %v7294_v0 }
 0xf90   :  { %v1954_v62 = vpop.xlane.xlu1 %1953 }
 0xf91   :  { %7175 = vrcp.f32 %v1954_v62 }
 0xf94   :  { %v2065_v3 = vpop.permute.xlu1 %2064 }
 0xf95   :  { %v2070_v7 = vsel %vm1621_vm6, %v2065_v3, 0 }
 0xf9e   :  { %v7176_v63 = vpop.eup %7175 }
 0xf9f   :  { %v1959_v1 = vmul.f32 %v7176_v63, %v7172_v46 }
 0xfa1   :  { %v1962_v4 = vpack.c.bf16 %v1959_v1, %v1959_v1 }
 0xfa3   :  { %6544 = vmatmul.mubr.msk.bf16.vlgmr.msra.gmra.mxu1 %vm27_vm2, %v1962_v4 }
 0xfa4   :  { %6554 = vmatpush3.bf16.xpose.msra.mxu1 %v2070_v7  ;;  %6555 = vmatprep.mubr.msk.bf16.mxu1 %vm7295_vm1, %v7294_v0 }
 0xfa5   :  { %6565 = vmatprep.subr.bf16.mxu1 %v7294_v0 }
 0xfab   :  { %6556 = vmatmul.mubr.msk.bf16.vlgmr.msra.gmra.mxu1 %vm1621_vm6, %v2063_v8 }
 0xfac   :  { %6567 = vmatprep.mubr.msk.bf16.mxu1 %vm7295_vm1, %v7294_v0 }
0x102a   :  { %v7920_v9 = vpop.f32.mrf.mxu0 }
0x102c   :  { %v6551_v10 = vpop.f32.mrf.mxu0 }
0x102e   :  { %v2059_v12 = vpop.f32.mrf.mxu0 }
0x1030   :  { %v6552_v13 = vpop.f32.mrf.mxu0 }
0x1032   :  { %v2156_v18 = vpop.f32.mrf.mxu0 }
0x1033   :  { %v2163_v19 = vmul.f32 0.25, %v2156_v18 }
0x1034   :  { %v6563_v47 = vpop.f32.mrf.mxu0 }
0x1035   :  { %v2167_v49 = vsel %vm27_vm2, %v2163_v19, -inf }
0x1036   :  { %v2159_v17 = vpop.f32.mrf.mxu0  ;;  %2168 = vmax.xlane.f32.xlu0 %v2167_v49 }
0x1038   :  { %v6564_v20 = vpop.f32.mrf.mxu0 }
0x104c   :  { %2237 = vrot.lane.b32.xlu0 %v7786_v29, %s7296_s18 }
0x1050   :  { %2336 = vrot.lane.b32.xlu0 %v7855_v58, %s7302_s27 }
0x1063   :  { %v7927_v22 = vpop.f32.mrf.mxu1 }
0x1064   :  { %v6945_v23 = vpack.i.bf16 %v7920_v9, %v7927_v22  ;;  %v7109_v22 = vld [vmem:[%s8725_s2 + $0x124] sm:$0xff]  }
0x1065   :  { %v6545_v26 = vpop.f32.mrf.mxu1 }
0x1067   :  { %v2010_v25 = vpop.f32.mrf.mxu1 }
0x1069   :  { %v6546_v27 = vpop.f32.mrf.mxu1 }
0x106b   :  { %v2106_v59 = vpop.f32.mrf.mxu1 }
0x106c   :  { %v2162_v50 = vmul.f32 0.25, %v2106_v59 }
0x106d   :  { %v6557_v32 = vpop.f32.mrf.mxu1 }
0x106e   :  { %v2164_v51 = vsel %vm27_vm2, %v2162_v50, -inf }
0x106f   :  { %v2109_v24 = vpop.f32.mrf.mxu1 }
0x1071   :  { %v6558_v34 = vpop.f32.mrf.mxu1 }
0x10bf   :  { %v2169_v36 = vpop.xlane.xlu0 %2168 }
0x10c0   :  { %v2171_v37 = vsub.f32 %v2163_v19, %v2169_v36 }
0x10c2   :  { %v2174_v39 = vmul.f32 1.442695, %v2171_v37 }
0x10c3   :  { %v2238_v40 = vpop.permute.xlu0 %2237 }
0x10c4   :  { %7177 = vpow2.f32 %v2174_v39  ;;  %v2239_v42 = vrot.slane %v2238_v40, 4 }
0x10c6   :  { %v2244_v44 = vsel %vm31_vm0, %v2239_v42, 0 }
0x10c7   :  { %6572 = vmatpush3.bf16.msra.mxu0 %v2244_v44  ;;  %v2337_v63 = vpop.permute.xlu0 %2336 }
0x10c8   :  { %6583 = vmatprep.subr.bf16.mxu0 %v7294_v0 }
0x10d1   :  { %v7178_v45 = vpop.eup %7177 }
0x10d2   :  { %v2179_v46 = vsel %vm27_vm2, %v7178_v45, 0.0 }
0x10d3   :  { %2180 = vadd.xlane.f32.xlu1 %v2179_v46 }
0x10e4   :  { %2338 = vrot.lane.b32.xlu1 %v7843_v16, %s7302_s27 }
0x1108   :  { %2165 = vmax.xlane.f32.xlu1 %v2164_v51 }
0x1119   :  { %2288 = vrot.lane.b32.xlu1 %v7850_v21, %s7302_s27 }
0x111d   :  { %2286 = vrot.lane.b32.xlu1 %v7860_v38, %s7302_s27 }
0x115c   :  { %v2181_v52 = vpop.xlane.xlu1 %2180 }
0x115d   :  { %7179 = vrcp.f32 %v2181_v52 }
0x1160   :  { %v2339_v55 = vpop.permute.xlu1 %2338 }
0x1161   :  { %v2344_v62 = vsel %vm1621_vm6, %v2339_v55, 0 }
0x116a   :  { %v7180_v53 = vpop.eup %7179 }
0x116b   :  { %v2185_v54 = vmul.f32 %v7180_v53, %v7178_v45 }
0x116d   :  { %v2187_v57 = vpack.c.bf16 %v2185_v54, %v2185_v54 }
0x116f   :  { %6574 = vmatmul.mubr.msk.bf16.vlgmr.msra.gmra.mxu0 %vm27_vm2, %v2187_v57 }
0x1170   :  { %6584 = vmatpush3.bf16.xpose.msra.mxu0 %v2344_v62  ;;  %6585 = vmatprep.mubr.msk.bf16.mxu0 %vm7295_vm1, %v7294_v0 }
0x1171   :  { %6595 = vmatprep.subr.bf16.mxu0 %v7294_v0 }
0x1177   :  { %6586 = vmatmul.mubr.msk.bf16.vlgmr.msra.gmra.mxu0 %vm1621_vm6, %v2337_v63 }
0x1178   :  { %6597 = vmatprep.mubr.msk.bf16.mxu0 %vm7295_vm1, %v7294_v0 }
0x1191   :  { %v2166_v1 = vpop.xlane.xlu1 %2165 }
0x1192   :  { %v2170_v3 = vsub.f32 %v2162_v50, %v2166_v1 }
0x1194   :  { %v2172_v4 = vmul.f32 1.442695, %v2170_v3 }
0x1195   :  { %v2289_v36 = vpop.permute.xlu1 %2288 }
0x1196   :  { %7181 = vpow2.f32 %v2172_v4  ;;  %v2294_v39 = vsel %vm1621_vm6, %v2289_v36, 0 }
0x1199   :  { %v2287_v40 = vpop.permute.xlu1 %2286 }
0x11a3   :  { %v7182_v7 = vpop.eup %7181 }
0x11a4   :  { %v2176_v8 = vsel %vm27_vm2, %v7182_v7, 0.0 }
0x11a5   :  { %2177 = vadd.xlane.f32.xlu0 %v2176_v8 }
0x11bb   :  { %2188 = vrot.lane.b32.xlu0 %v7783_v28, %s7296_s18 }
0x122e   :  { %v2178_v10 = vpop.xlane.xlu0 %2177 }
0x122f   :  { %7183 = vrcp.f32 %v2178_v10  ;;  %v7952_v12 = vpop.f32.mrf.mxu0 }
0x1231   :  { %v6575_v13 = vpop.f32.mrf.mxu0 }
0x1232   :  { %v2189_v18 = vpop.permute.xlu0 %2188 }
0x1233   :  { %v2190_v19 = vrot.slane %v2189_v18, 4  ;;  %v2283_v47 = vpop.f32.mrf.mxu0 }
0x1235   :  { %v6576_v49 = vpop.f32.mrf.mxu0  ;;  %v2195_v17 = vsel %vm31_vm0, %v2190_v19, 0 }
0x1236   :  { %6566 = vmatpush3.bf16.msra.mxu1 %v2195_v17 }
0x1237   :  { %v2380_v20 = vpop.f32.mrf.mxu0  ;;  %6577 = vmatprep.subr.bf16.mxu1 %v7294_v0 }
0x1238   :  { %v2387_v26 = vmul.f32 0.25, %v2380_v20 }
0x1239   :  { %v6587_v25 = vpop.f32.mrf.mxu0 }
0x123a   :  { %v2391_v27 = vsel %vm27_vm2, %v2387_v26, -inf }
0x123b   :  { %v2383_v59 = vpop.f32.mrf.mxu0  ;;  %2392 = vmax.xlane.f32.xlu0 %v2391_v27 }
0x123c   :  { %v7184_v32 = vpop.eup %7183 }
0x123d   :  { %v6588_v24 = vpop.f32.mrf.mxu0  ;;  %v2183_v34 = vmul.f32 %v7184_v32, %v7182_v7 }
0x123f   :  { %v2186_v37 = vpack.c.bf16 %v2183_v34, %v2183_v34 }
0x1241   :  { %6568 = vmatmul.mubr.msk.bf16.vlgmr.msra.gmra.mxu1 %vm27_vm2, %v2186_v37 }
0x1242   :  { %6578 = vmatpush3.bf16.xpose.msra.mxu1 %v2294_v39  ;;  %6579 = vmatprep.mubr.msk.bf16.mxu1 %vm7295_vm1, %v7294_v0 }
0x1243   :  { %6589 = vmatprep.subr.bf16.mxu1 %v7294_v0 }
0x1249   :  { %6580 = vmatmul.mubr.msk.bf16.vlgmr.msra.gmra.mxu1 %vm1621_vm6, %v2287_v40 }
0x124a   :  { %6591 = vmatprep.mubr.msk.bf16.mxu1 %vm7295_vm1, %v7294_v0 }
0x1251   :  { %2461 = vrot.lane.b32.xlu0 %v7786_v29, %s7302_s27 }
0x1255   :  { %2560 = vrot.lane.b32.xlu0 %v7855_v58, %s7297_s19 }
0x12c4   :  { %v2393_v42 = vpop.xlane.xlu0 %2392 }
0x12c5   :  { %v2395_v44 = vsub.f32 %v2387_v26, %v2393_v42 }
0x12c7   :  { %v2398_v45 = vmul.f32 1.442695, %v2395_v44 }
0x12c8   :  { %v2462_v46 = vpop.permute.xlu0 %2461 }
0x12c9   :  { %7185 = vpow2.f32 %v2398_v45  ;;  %v2463_v50 = vrot.slane %v2462_v46, 4 }
0x12cb   :  { %v2468_v51 = vsel %vm31_vm0, %v2463_v50, 0 }
0x12cc   :  { %6596 = vmatpush3.bf16.msra.mxu0 %v2468_v51  ;;  %v2561_v17 = vpop.permute.xlu0 %2560 }
0x12cd   :  { %6607 = vmatprep.subr.bf16.mxu0 %v7294_v0 }
0x12d6   :  { %v7186_v52 = vpop.eup %7185 }
0x12d7   :  { %v2403_v53 = vsel %vm27_vm2, %v7186_v52, 0.0 }
0x12d8   :  { %2404 = vadd.xlane.f32.xlu1 %v2403_v53 }
0x12e9   :  { %2562 = vrot.lane.b32.xlu1 %v7843_v16, %s7297_s19 }
0x1301   :  { %v7974_v54 = vpop.f32.mrf.mxu1 }
0x1303   :  { %v6569_v55 = vpop.f32.mrf.mxu1 }
0x1305   :  { %v2234_v57 = vpop.f32.mrf.mxu1 }
0x1307   :  { %v6570_v62 = vpop.f32.mrf.mxu1 }
0x1309   :  { %v2330_v63 = vpop.f32.mrf.mxu1 }
0x130a   :  { %v2386_v1 = vmul.f32 0.25, %v2330_v63 }
0x130b   :  { %v6581_v3 = vpop.f32.mrf.mxu1 }
0x130c   :  { %v2388_v4 = vsel %vm27_vm2, %v2386_v1, -inf }
0x130d   :  { %2389 = vmax.xlane.f32.xlu1 %v2388_v4  ;;  %v2333_v7 = vpop.f32.mrf.mxu1 }
0x130f   :  { %v6582_v8 = vpop.f32.mrf.mxu1 }
0x131e   :  { %2512 = vrot.lane.b32.xlu1 %v7850_v21, %s7297_s19 }
0x1322   :  { %2510 = vrot.lane.b32.xlu1 %v7860_v38, %s7297_s19 }
0x1361   :  { %v2405_v10 = vpop.xlane.xlu1 %2404 }
0x1362   :  { %7187 = vrcp.f32 %v2405_v10 }
0x1365   :  { %v2563_v19 = vpop.permute.xlu1 %2562 }
0x1366   :  { %v2568_v49 = vsel %vm1621_vm6, %v2563_v19, 0 }
0x136f   :  { %v7188_v13 = vpop.eup %7187 }
0x1370   :  { %v2409_v18 = vmul.f32 %v7188_v13, %v7186_v52 }
0x1372   :  { %v2411_v47 = vpack.c.bf16 %v2409_v18, %v2409_v18 }
0x1374   :  { %6598 = vmatmul.mubr.msk.bf16.vlgmr.msra.gmra.mxu0 %vm27_vm2, %v2411_v47 }
0x1375   :  { %6608 = vmatpush3.bf16.xpose.msra.mxu0 %v2568_v49  ;;  %6609 = vmatprep.mubr.msk.bf16.mxu0 %vm7295_vm1, %v7294_v0 }
0x1376   :  { %6619 = vmatprep.subr.bf16.mxu0 %v7294_v0 }
0x137c   :  { %6610 = vmatmul.mubr.msk.bf16.vlgmr.msra.gmra.mxu0 %vm1621_vm6, %v2561_v17 }
0x137d   :  { %6621 = vmatprep.mubr.msk.bf16.mxu0 %vm7295_vm1, %v7294_v0 }
0x1396   :  { %v2390_v20 = vpop.xlane.xlu1 %2389 }
0x1397   :  { %v2394_v26 = vsub.f32 %v2386_v1, %v2390_v20 }
0x1399   :  { %v2396_v25 = vmul.f32 1.442695, %v2394_v26 }
0x139a   :  { %v2513_v57 = vpop.permute.xlu1 %2512 }
0x139b   :  { %7189 = vpow2.f32 %v2396_v25  ;;  %v2518_v63 = vsel %vm1621_vm6, %v2513_v57, 0 }
0x139e   :  { %v2511_v1 = vpop.permute.xlu1 %2510 }
0x13a8   :  { %v7190_v27 = vpop.eup %7189 }
0x13a9   :  { %v2400_v59 = vsel %vm27_vm2, %v7190_v27, 0.0 }
0x13aa   :  { %2401 = vadd.xlane.f32.xlu0 %v2400_v59 }
0x13c0   :  { %2412 = vrot.lane.b32.xlu0 %v7783_v28, %s7302_s27 }
0x1433   :  { %v2402_v32 = vpop.xlane.xlu0 %2401 }
0x1434   :  { %7191 = vrcp.f32 %v2402_v32  ;;  %v7992_v24 = vpop.f32.mrf.mxu0 }
0x1436   :  { %v6599_v34 = vpop.f32.mrf.mxu0 }
0x1437   :  { %v2413_v36 = vpop.permute.xlu0 %2412 }
0x1438   :  { %v2414_v37 = vrot.slane %v2413_v36, 4  ;;  %v2507_v39 = vpop.f32.mrf.mxu0 }
0x143a   :  { %v6600_v40 = vpop.f32.mrf.mxu0  ;;  %v2419_v42 = vsel %vm31_vm0, %v2414_v37, 0 }
0x143b   :  { %6590 = vmatpush3.bf16.msra.mxu1 %v2419_v42 }
0x143c   :  { %v2604_v44 = vpop.f32.mrf.mxu0  ;;  %6601 = vmatprep.subr.bf16.mxu1 %v7294_v0 }
0x143d   :  { %v2611_v45 = vmul.f32 0.25, %v2604_v44 }
0x143e   :  { %v6611_v46 = vpop.f32.mrf.mxu0 }
0x143f   :  { %v2615_v50 = vsel %vm27_vm2, %v2611_v45, -inf }
0x1440   :  { %v2607_v51 = vpop.f32.mrf.mxu0  ;;  %2616 = vmax.xlane.f32.xlu0 %v2615_v50 }
0x1441   :  { %v7192_v52 = vpop.eup %7191 }
0x1442   :  { %v6612_v53 = vpop.f32.mrf.mxu0  ;;  %v2407_v55 = vmul.f32 %v7192_v52, %v7190_v27 }
0x1444   :  { %v2410_v62 = vpack.c.bf16 %v2407_v55, %v2407_v55 }
0x1446   :  { %6592 = vmatmul.mubr.msk.bf16.vlgmr.msra.gmra.mxu1 %vm27_vm2, %v2410_v62 }
0x1447   :  { %6602 = vmatpush3.bf16.xpose.msra.mxu1 %v2518_v63  ;;  %6603 = vmatprep.mubr.msk.bf16.mxu1 %vm7295_vm1, %v7294_v0 }
0x1448   :  { %6613 = vmatprep.subr.bf16.mxu1 %v7294_v0 }
0x144e   :  { %6604 = vmatmul.mubr.msk.bf16.vlgmr.msra.gmra.mxu1 %vm1621_vm6, %v2511_v1 }
0x144f   :  { %6615 = vmatprep.mubr.msk.bf16.mxu1 %vm7295_vm1, %v7294_v0 }
0x1456   :  { %2685 = vrot.lane.b32.xlu0 %v7786_v29, %s7297_s19 }
0x145a   :  { %2784 = vrot.lane.b32.xlu0 %v7855_v58, %s7303_s28 }
0x14c9   :  { %v2617_v3 = vpop.xlane.xlu0 %2616 }
0x14ca   :  { %v2619_v4 = vsub.f32 %v2611_v45, %v2617_v3 }
0x14cc   :  { %v2622_v7 = vmul.f32 1.442695, %v2619_v4 }
0x14cd   :  { %v2686_v8 = vpop.permute.xlu0 %2685 }
0x14ce   :  { %7193 = vpow2.f32 %v2622_v7  ;;  %v2687_v10 = vrot.slane %v2686_v8, 4 }
0x14d0   :  { %v2692_v13 = vsel %vm31_vm0, %v2687_v10, 0 }
0x14d1   :  { %6620 = vmatpush3.bf16.msra.mxu0 %v2692_v13  ;;  %v2785_v45 = vpop.permute.xlu0 %2784 }
0x14d2   :  { %6631 = vmatprep.subr.bf16.mxu0 %v7294_v0 }
0x14db   :  { %v7194_v18 = vpop.eup %7193 }
0x14dc   :  { %v2627_v19 = vsel %vm27_vm2, %v7194_v18, 0.0 }
0x14dd   :  { %2628 = vadd.xlane.f32.xlu1 %v2627_v19 }
0x14ee   :  { %2786 = vrot.lane.b32.xlu1 %v7843_v16, %s7303_s28 }
0x1506   :  { %v8014_v47 = vpop.f32.mrf.mxu1 }
0x1508   :  { %v6593_v49 = vpop.f32.mrf.mxu1 }
0x150a   :  { %v2458_v17 = vpop.f32.mrf.mxu1 }
0x150c   :  { %v6594_v20 = vpop.f32.mrf.mxu1 }
0x150e   :  { %v2554_v26 = vpop.f32.mrf.mxu1 }
0x150f   :  { %v2610_v25 = vmul.f32 0.25, %v2554_v26 }
0x1510   :  { %v6605_v27 = vpop.f32.mrf.mxu1 }
0x1511   :  { %v2612_v59 = vsel %vm27_vm2, %v2610_v25, -inf }
0x1512   :  { %2613 = vmax.xlane.f32.xlu1 %v2612_v59  ;;  %v2557_v32 = vpop.f32.mrf.mxu1 }
0x1514   :  { %v6606_v34 = vpop.f32.mrf.mxu1 }
0x1523   :  { %2736 = vrot.lane.b32.xlu1 %v7850_v21, %s7303_s28 }
0x1527   :  { %2734 = vrot.lane.b32.xlu1 %v7860_v38, %s7303_s28 }
0x1566   :  { %v2629_v36 = vpop.xlane.xlu1 %2628 }
0x1567   :  { %7195 = vrcp.f32 %v2629_v36 }
0x156a   :  { %v2787_v40 = vpop.permute.xlu1 %2786 }
0x156b   :  { %v2792_v44 = vsel %vm1621_vm6, %v2787_v40, 0 }
0x1574   :  { %v7196_v37 = vpop.eup %7195 }
0x1575   :  { %v2633_v39 = vmul.f32 %v7196_v37, %v7194_v18 }
0x1577   :  { %v2635_v42 = vpack.c.bf16 %v2633_v39, %v2633_v39 }
0x1579   :  { %6622 = vmatmul.mubr.msk.bf16.vlgmr.msra.gmra.mxu0 %vm27_vm2, %v2635_v42 }
0x157a   :  { %6632 = vmatpush3.bf16.xpose.msra.mxu0 %v2792_v44  ;;  %6633 = vmatprep.mubr.msk.bf16.mxu0 %vm7295_vm1, %v7294_v0 }
0x157b   :  { %6643 = vmatprep.subr.bf16.mxu0 %v7294_v0 }
0x1581   :  { %6634 = vmatmul.mubr.msk.bf16.vlgmr.msra.gmra.mxu0 %vm1621_vm6, %v2785_v45 }
0x1582   :  { %6645 = vmatprep.mubr.msk.bf16.mxu0 %vm7295_vm1, %v7294_v0 }
0x159b   :  { %v2614_v46 = vpop.xlane.xlu1 %2613 }
0x159c   :  { %v2618_v50 = vsub.f32 %v2610_v25, %v2614_v46 }
0x159e   :  { %v2620_v51 = vmul.f32 1.442695, %v2618_v50 }
0x159f   :  { %v2737_v26 = vpop.permute.xlu1 %2736 }
0x15a0   :  { %7197 = vpow2.f32 %v2620_v51  ;;  %v2742_v27 = vsel %vm1621_vm6, %v2737_v26, 0 }
0x15a3   :  { %v2735_v59 = vpop.permute.xlu1 %2734 }
0x15ad   :  { %v7198_v52 = vpop.eup %7197 }
0x15ae   :  { %v2624_v53 = vsel %vm27_vm2, %v7198_v52, 0.0 }
0x15af   :  { %2625 = vadd.xlane.f32.xlu0 %v2624_v53 }
0x15c5   :  { %2636 = vrot.lane.b32.xlu0 %v7783_v28, %s7297_s19 }
0x1638   :  { %v2626_v55 = vpop.xlane.xlu0 %2625 }
0x1639   :  { %7199 = vrcp.f32 %v2626_v55  ;;  %v8032_v57 = vpop.f32.mrf.mxu0 }
0x163b   :  { %v6623_v62 = vpop.f32.mrf.mxu0 }
0x163c   :  { %v2637_v63 = vpop.permute.xlu0 %2636 }
0x163d   :  { %v2638_v1 = vrot.slane %v2637_v63, 4  ;;  %v2731_v3 = vpop.f32.mrf.mxu0 }
0x163f   :  { %v6624_v4 = vpop.f32.mrf.mxu0  ;;  %v2643_v7 = vsel %vm31_vm0, %v2638_v1, 0 }
0x1640   :  { %6614 = vmatpush3.bf16.msra.mxu1 %v2643_v7 }
0x1641   :  { %v2828_v8 = vpop.f32.mrf.mxu0  ;;  %6625 = vmatprep.subr.bf16.mxu1 %v7294_v0 }
0x1642   :  { %v2835_v10 = vmul.f32 0.25, %v2828_v8 }
0x1643   :  { %v6635_v13 = vpop.f32.mrf.mxu0 }
0x1644   :  { %v2839_v18 = vsel %vm27_vm2, %v2835_v10, -inf }
0x1645   :  { %v2831_v19 = vpop.f32.mrf.mxu0  ;;  %2840 = vmax.xlane.f32.xlu0 %v2839_v18 }
0x1646   :  { %v7200_v49 = vpop.eup %7199 }
0x1647   :  { %v6636_v17 = vpop.f32.mrf.mxu0  ;;  %v2631_v20 = vmul.f32 %v7200_v49, %v7198_v52 }
0x1649   :  { %v2634_v25 = vpack.c.bf16 %v2631_v20, %v2631_v20 }
0x164b   :  { %6616 = vmatmul.mubr.msk.bf16.vlgmr.msra.gmra.mxu1 %vm27_vm2, %v2634_v25 }
0x164c   :  { %6626 = vmatpush3.bf16.xpose.msra.mxu1 %v2742_v27  ;;  %6627 = vmatprep.mubr.msk.bf16.mxu1 %vm7295_vm1, %v7294_v0 }
0x164d   :  { %6637 = vmatprep.subr.bf16.mxu1 %v7294_v0 }
0x1653   :  { %6628 = vmatmul.mubr.msk.bf16.vlgmr.msra.gmra.mxu1 %vm1621_vm6, %v2735_v59 }
0x1654   :  { %6639 = vmatprep.mubr.msk.bf16.mxu1 %vm7295_vm1, %v7294_v0 }
0x165b   :  { %2909 = vrot.lane.b32.xlu0 %v7786_v29, %s7303_s28 }
0x165f   :  { %3008 = vrot.lane.b32.xlu0 %v7855_v58, %s7304_s29 }
0x16ce   :  { %v2841_v32 = vpop.xlane.xlu0 %2840 }
0x16cf   :  { %v2843_v34 = vsub.f32 %v2835_v10, %v2841_v32 }
0x16d1   :  { %v2846_v36 = vmul.f32 1.442695, %v2843_v34 }
0x16d2   :  { %v2910_v37 = vpop.permute.xlu0 %2909 }
0x16d3   :  { %7201 = vpow2.f32 %v2846_v36  ;;  %v2911_v39 = vrot.slane %v2910_v37, 4 }
0x16d5   :  { %v2916_v40 = vsel %vm31_vm0, %v2911_v39, 0 }
0x16d6   :  { %6644 = vmatpush3.bf16.msra.mxu0 %v2916_v40  ;;  %v3009_v18 = vpop.permute.xlu0 %3008 }
0x16d7   :  { %6655 = vmatprep.subr.bf16.mxu0 %v7294_v0 }
0x16e0   :  { %v7202_v42 = vpop.eup %7201 }
0x16e1   :  { %v2851_v44 = vsel %vm27_vm2, %v7202_v42, 0.0 }
0x16e2   :  { %2852 = vadd.xlane.f32.xlu1 %v2851_v44 }
0x16f3   :  { %3010 = vrot.lane.b32.xlu1 %v7843_v16, %s7304_s29 }
0x170b   :  { %v8054_v45 = vpop.f32.mrf.mxu1 }
0x170d   :  { %v6617_v46 = vpop.f32.mrf.mxu1 }
0x170f   :  { %v2682_v50 = vpop.f32.mrf.mxu1 }
0x1711   :  { %v6618_v51 = vpop.f32.mrf.mxu1 }
0x1713   :  { %v2778_v52 = vpop.f32.mrf.mxu1 }
0x1714   :  { %v2834_v53 = vmul.f32 0.25, %v2778_v52 }
0x1715   :  { %v6629_v55 = vpop.f32.mrf.mxu1 }
0x1716   :  { %v2836_v62 = vsel %vm27_vm2, %v2834_v53, -inf }
0x1717   :  { %2837 = vmax.xlane.f32.xlu1 %v2836_v62  ;;  %v2781_v63 = vpop.f32.mrf.mxu1 }
0x1719   :  { %v6630_v1 = vpop.f32.mrf.mxu1 }
0x1728   :  { %2960 = vrot.lane.b32.xlu1 %v7850_v21, %s7304_s29 }
0x172c   :  { %2958 = vrot.lane.b32.xlu1 %v7860_v38, %s7304_s29 }
0x176b   :  { %v2853_v3 = vpop.xlane.xlu1 %2852 }
0x176c   :  { %7203 = vrcp.f32 %v2853_v3 }
0x176f   :  { %v3011_v8 = vpop.permute.xlu1 %3010 }
0x1770   :  { %v3016_v13 = vsel %vm1621_vm6, %v3011_v8, 0 }
0x1779   :  { %v7204_v4 = vpop.eup %7203 }
0x177a   :  { %v2857_v7 = vmul.f32 %v7204_v4, %v7202_v42 }
0x177c   :  { %v2859_v10 = vpack.c.bf16 %v2857_v7, %v2857_v7 }
0x177e   :  { %6646 = vmatmul.mubr.msk.bf16.vlgmr.msra.gmra.mxu0 %vm27_vm2, %v2859_v10 }
0x177f   :  { %6656 = vmatpush3.bf16.xpose.msra.mxu0 %v3016_v13  ;;  %6657 = vmatprep.mubr.msk.bf16.mxu0 %vm7295_vm1, %v7294_v0 }
0x1780   :  { %6667 = vmatprep.subr.bf16.mxu0 %v7294_v0 }
0x1786   :  { %6658 = vmatmul.mubr.msk.bf16.vlgmr.msra.gmra.mxu0 %vm1621_vm6, %v3009_v18 }
0x1787   :  { %6669 = vmatprep.mubr.msk.bf16.mxu0 %vm7295_vm1, %v7294_v0 }
0x17a0   :  { %v2838_v19 = vpop.xlane.xlu1 %2837 }
0x17a1   :  { %v2842_v49 = vsub.f32 %v2834_v53, %v2838_v19 }
0x17a3   :  { %v2844_v17 = vmul.f32 1.442695, %v2842_v49 }
0x17a4   :  { %v2961_v55 = vpop.permute.xlu1 %2960 }
0x17a5   :  { %7205 = vpow2.f32 %v2844_v17  ;;  %v2966_v63 = vsel %vm1621_vm6, %v2961_v55, 0 }
0x17a8   :  { %v2959_v1 = vpop.permute.xlu1 %2958 }
0x17b2   :  { %v7206_v20 = vpop.eup %7205 }
0x17b3   :  { %v2848_v26 = vsel %vm27_vm2, %v7206_v20, 0.0 }
0x17b4   :  { %2849 = vadd.xlane.f32.xlu0 %v2848_v26 }
0x17ca   :  { %2860 = vrot.lane.b32.xlu0 %v7783_v28, %s7303_s28 }
0x183d   :  { %v2850_v25 = vpop.xlane.xlu0 %2849 }
0x183e   :  { %7207 = vrcp.f32 %v2850_v25  ;;  %v8072_v27 = vpop.f32.mrf.mxu0 }
0x1840   :  { %v6647_v59 = vpop.f32.mrf.mxu0 }
0x1841   :  { %v2861_v32 = vpop.permute.xlu0 %2860 }
0x1842   :  { %v2862_v34 = vrot.slane %v2861_v32, 4  ;;  %v2955_v36 = vpop.f32.mrf.mxu0 }
0x1844   :  { %v6648_v37 = vpop.f32.mrf.mxu0  ;;  %v2867_v39 = vsel %vm31_vm0, %v2862_v34, 0 }
0x1845   :  { %6638 = vmatpush3.bf16.msra.mxu1 %v2867_v39 }
0x1846   :  { %v3052_v40 = vpop.f32.mrf.mxu0  ;;  %6649 = vmatprep.subr.bf16.mxu1 %v7294_v0 }
0x1847   :  { %v3059_v42 = vmul.f32 0.25, %v3052_v40 }
0x1848   :  { %v6659_v44 = vpop.f32.mrf.mxu0 }
0x1849   :  { %v3063_v46 = vsel %vm27_vm2, %v3059_v42, -inf }
0x184a   :  { %v3055_v50 = vpop.f32.mrf.mxu0  ;;  %3064 = vmax.xlane.f32.xlu0 %v3063_v46 }
0x184b   :  { %v7208_v51 = vpop.eup %7207 }
0x184c   :  { %v6660_v52 = vpop.f32.mrf.mxu0  ;;  %v2855_v53 = vmul.f32 %v7208_v51, %v7206_v20 }
0x184e   :  { %v2858_v62 = vpack.c.bf16 %v2855_v53, %v2855_v53 }
0x1850   :  { %6640 = vmatmul.mubr.msk.bf16.vlgmr.msra.gmra.mxu1 %vm27_vm2, %v2858_v62 }
0x1851   :  { %6650 = vmatpush3.bf16.xpose.msra.mxu1 %v2966_v63  ;;  %6651 = vmatprep.mubr.msk.bf16.mxu1 %vm7295_vm1, %v7294_v0 }
0x1852   :  { %6661 = vmatprep.subr.bf16.mxu1 %v7294_v0 }
0x1858   :  { %6652 = vmatmul.mubr.msk.bf16.vlgmr.msra.gmra.mxu1 %vm1621_vm6, %v2959_v1 }
0x1859   :  { %6663 = vmatprep.mubr.msk.bf16.mxu1 %vm7295_vm1, %v7294_v0 }
0x1860   :  { %3133 = vrot.lane.b32.xlu0 %v7786_v29, %s7304_s29 }
0x1864   :  { %3232 = vrot.lane.b32.xlu0 %v7855_v58, %s7305_s30 }
0x18d3   :  { %v3065_v3 = vpop.xlane.xlu0 %3064 }
0x18d4   :  { %v3067_v4 = vsub.f32 %v3059_v42, %v3065_v3 }
0x18d6   :  { %v3070_v7 = vmul.f32 1.442695, %v3067_v4 }
0x18d7   :  { %v3134_v8 = vpop.permute.xlu0 %3133 }
0x18d8   :  { %7209 = vpow2.f32 %v3070_v7  ;;  %v3135_v10 = vrot.slane %v3134_v8, 4 }
0x18da   :  { %v3140_v13 = vsel %vm31_vm0, %v3135_v10, 0 }
0x18db   :  { %6668 = vmatpush3.bf16.msra.mxu0 %v3140_v13 }
0x18dc   :  { %6679 = vmatprep.subr.bf16.mxu0 %v7294_v0 }
0x18e5   :  { %v7210_v18 = vpop.eup %7209 }
0x18e6   :  { %v3075_v19 = vsel %vm27_vm2, %v7210_v18, 0.0 }
0x18e7   :  { %3076 = vadd.xlane.f32.xlu1 %v3075_v19 }
0x18f8   :  { %3234 = vrot.lane.b32.xlu1 %v7843_v16, %s7305_s30 }
0x1910   :  { %v8094_v49 = vpop.f32.mrf.mxu1 }
0x1912   :  { %v6641_v58 = vpop.f32.mrf.mxu1 }
0x1914   :  { %v2906_v17 = vpop.f32.mrf.mxu1 }
0x1916   :  { %v6642_v20 = vpop.f32.mrf.mxu1 }
0x1918   :  { %v3002_v26 = vpop.f32.mrf.mxu1 }
0x1919   :  { %v3058_v25 = vmul.f32 0.25, %v3002_v26 }
0x191a   :  { %v6653_v59 = vpop.f32.mrf.mxu1 }
0x191b   :  { %v3060_v32 = vsel %vm27_vm2, %v3058_v25, -inf }
0x191c   :  { %3061 = vmax.xlane.f32.xlu1 %v3060_v32  ;;  %v3005_v34 = vpop.f32.mrf.mxu1 }
0x191e   :  { %v6654_v36 = vpop.f32.mrf.mxu1 }
0x192d   :  { %3184 = vrot.lane.b32.xlu1 %v7850_v21, %s7305_s30  ;;  %v3233_v21 = vpop.permute.xlu0 %3232 }
0x1931   :  { %3182 = vrot.lane.b32.xlu1 %v7860_v38, %s7305_s30 }
0x1970   :  { %v3077_v16 = vpop.xlane.xlu1 %3076 }
0x1971   :  { %7211 = vrcp.f32 %v3077_v16 }
0x1974   :  { %v3235_v40 = vpop.permute.xlu1 %3234 }
0x1975   :  { %v3240_v44 = vsel %vm1621_vm6, %v3235_v40, 0 }
0x197e   :  { %v7212_v37 = vpop.eup %7211 }
0x197f   :  { %v3081_v39 = vmul.f32 %v7212_v37, %v7210_v18 }
0x1981   :  { %v3083_v42 = vpack.c.bf16 %v3081_v39, %v3081_v39 }
0x1983   :  { %6670 = vmatmul.mubr.msk.bf16.vlgmr.msra.gmra.mxu0 %vm27_vm2, %v3083_v42 }
0x1984   :  { %6680 = vmatpush3.bf16.xpose.msra.mxu0 %v3240_v44  ;;  %6681 = vmatprep.mubr.msk.bf16.mxu0 %vm7295_vm1, %v7294_v0 }
0x1985   :  { %6691 = vmatprep.subr.bf16.mxu0 %v7294_v0 }
0x198b   :  { %6682 = vmatmul.mubr.msk.bf16.vlgmr.msra.gmra.mxu0 %vm1621_vm6, %v3233_v21 }
0x198c   :  { %6693 = vmatprep.mubr.msk.bf16.mxu0 %vm7295_vm1, %v7294_v0 }
0x19a5   :  { %v3062_v38 = vpop.xlane.xlu1 %3061 }
0x19a6   :  { %v3066_v46 = vsub.f32 %v3058_v25, %v3062_v38 }
0x19a8   :  { %v3068_v50 = vmul.f32 1.442695, %v3066_v46 }
0x19a9   :  { %v3185_v26 = vpop.permute.xlu1 %3184 }
0x19aa   :  { %7213 = vpow2.f32 %v3068_v50  ;;  %v3190_v59 = vsel %vm1621_vm6, %v3185_v26, 0 }
0x19ad   :  { %v3183_v32 = vpop.permute.xlu1 %3182 }
0x19b7   :  { %v7214_v51 = vpop.eup %7213 }
0x19b8   :  { %v3072_v52 = vsel %vm27_vm2, %v7214_v51, 0.0 }
0x19b9   :  { %3073 = vadd.xlane.f32.xlu0 %v3072_v52 }
0x19cf   :  { %3084 = vrot.lane.b32.xlu0 %v7783_v28, %s7304_s29 }
0x1a42   :  { %v3074_v53 = vpop.xlane.xlu0 %3073 }
0x1a43   :  { %7215 = vrcp.f32 %v3074_v53  ;;  %v8112_v55 = vpop.f32.mrf.mxu0 }
0x1a45   :  { %v6671_v62 = vpop.f32.mrf.mxu0 }
0x1a46   :  { %v3085_v63 = vpop.permute.xlu0 %3084 }
0x1a47   :  { %v3086_v1 = vrot.slane %v3085_v63, 4  ;;  %v3179_v3 = vpop.f32.mrf.mxu0 }
0x1a48   :  { %v7293_v3 = vld [vmem:[%s8727_s4 + $0x7] ss:$8 sm:$0x7] }
0x1a49   :  { %v6672_v4 = vpop.f32.mrf.mxu0  ;;  %v3091_v7 = vsel %vm31_vm0, %v3086_v1, 0 }
0x1a4a   :  { %6662 = vmatpush3.bf16.msra.mxu1 %v3091_v7  ;;  %v1098_v4 = vrot.slane %v7293_v3, %v1097_v43  ;;  %v3635_v43 = vrot.slane %v7831_v6, 4 }
0x1a4b   :  { %v3276_v8 = vpop.f32.mrf.mxu0  ;;  %6673 = vmatprep.subr.bf16.mxu1 %v7294_v0 }
0x1a4c   :  { %v3283_v10 = vmul.f32 0.25, %v3276_v8  ;;  %v3640_v26 = vsel %vm1621_vm6, %v3635_v43, 0  ;;  %v6965_v43 = vpack.i.bf16 %v8072_v27, %v8094_v49  ;;  %v7112_v27 = vld [vmem:[%s8725_s2 + $0x10c] sm:$0xff]   ;;  %v7113_v49 = vld [vmem:[%s8725_s2 + $0x104] sm:$0xff]  }
0x1a4d   :  { %v6683_v13 = vpop.f32.mrf.mxu0 }
0x1a4e   :  { %v3287_v18 = vsel %vm27_vm2, %v3283_v10, -inf  ;;  %v1308_v13 = vadd.f32 %v7804_v33, %v1098_v4  ;;  %v1311_v33 = vadd.f32 %v7806_v35, %v1098_v4 }
0x1a4f   :  { %v3279_v19 = vpop.f32.mrf.mxu0  ;;  %3288 = vmax.xlane.f32.xlu0 %v3287_v18 }
0x1a50   :  { %v7216_v58 = vpop.eup %7215 }
0x1a51   :  { %v6684_v17 = vpop.f32.mrf.mxu0  ;;  %v3079_v20 = vmul.f32 %v7216_v58, %v7214_v51  ;;  %v1316_v58 = vmax.f32 %v1308_v13, 0.0 }
0x1a53   :  { %v3082_v25 = vpack.c.bf16 %v3079_v20, %v3079_v20  ;;  %v8148_v17 = vpack.c.bf16 %v1316_v58, %v1316_v58  ;;  %v1585_v20 = vmax.f32 %v1577_v2, 0.0  ;;  %v6955_v58 = vpack.i.bf16 %v7992_v24, %v8014_v47 }
0x1a54   :  { %v6960_v2 = vpack.i.bf16 %v8032_v57, %v8054_v45  ;;  %v7111_v45 = vld [vmem:[%s8725_s2 + $0x114] sm:$0xff]  }
0x1a55   :  { %6664 = vmatmul.mubr.msk.bf16.vlgmr.msra.gmra.mxu1 %vm27_vm2, %v3082_v25  ;;  %v1319_v25 = vmax.f32 %v1311_v33, 0.0  ;;  %v8157_v41 = vpack.c.bf16 %v1585_v20, %v1585_v20  ;;  %v7116_v33 = vld [vmem:[%s8725_s2 + $0xec] sm:$0xff]  }
0x1a56   :  { %6674 = vmatpush3.bf16.xpose.msra.mxu1 %v3190_v59  ;;  %6675 = vmatprep.mubr.msk.bf16.mxu1 %vm7295_vm1, %v7294_v0 }
0x1a57   :  { %6685 = vmatprep.subr.bf16.mxu1 %v7294_v0  ;;  %v8159_v48 = vpack.c.bf16 %v1319_v25, %v1319_v25  ;;  %v3712_v35 = vsel %vm31_vm0, %v8157_v41, 0 }
0x1a5d   :  { %6676 = vmatmul.mubr.msk.bf16.vlgmr.msra.gmra.mxu1 %vm1621_vm6, %v3183_v32 }
0x1a5e   :  { %6687 = vmatprep.mubr.msk.bf16.mxu1 %vm7295_vm1, %v7294_v0 }
0x1a65   :  { %3357 = vrot.lane.b32.xlu0 %v7786_v29, %s7305_s30 }
0x1ad8   :  { %v3289_v34 = vpop.xlane.xlu0 %3288 }
0x1ad9   :  { %v3291_v36 = vsub.f32 %v3283_v10, %v3289_v34  ;;  %v3588_v10 = vrot.slane %v7823_v61, 4 }
0x1adb   :  { %v3294_v16 = vmul.f32 1.442695, %v3291_v36  ;;  %v3593_v19 = vsel %vm1621_vm6, %v3588_v10, 0 }
0x1adc   :  { %v3358_v37 = vpop.permute.xlu0 %3357 }
0x1add   :  { %7217 = vpow2.f32 %v3294_v16  ;;  %v3359_v39 = vrot.slane %v3358_v37, 4 }
0x1adf   :  { %v3364_v40 = vsel %vm31_vm0, %v3359_v39, 0 }
0x1ae0   :  { %6692 = vmatpush3.bf16.msra.mxu0 %v3364_v40 }
0x1ae1   :  { %6717 = vmatprep.subr.bf16.mxu0 %v7294_v0 }
0x1aea   :  { %v7218_v42 = vpop.eup %7217 }
0x1aeb   :  { %v3299_v44 = vsel %vm27_vm2, %v7218_v42, 0.0 }
0x1aec   :  { %3300 = vadd.xlane.f32.xlu1 %v3299_v44 }
0x1b15   :  { %v8130_v21 = vpop.f32.mrf.mxu1 }
0x1b16   :  { %v6970_v9 = vpack.i.bf16 %v8112_v55, %v8130_v21  ;;  %v7114_v55 = vld [vmem:[%s8725_s2 + $0xfc] sm:$0xff]   ;;  %v7115_v21 = vld [vmem:[%s8725_s2 + $0xf4] sm:$0xff]  }
0x1b17   :  { %v6665_v38 = vpop.f32.mrf.mxu1 }
0x1b19   :  { %v3130_v46 = vpop.f32.mrf.mxu1 }
0x1b1b   :  { %v6666_v29 = vpop.f32.mrf.mxu1 }
0x1b1d   :  { %v3226_v50 = vpop.f32.mrf.mxu1 }
0x1b1e   :  { %v3282_v51 = vmul.f32 0.25, %v3226_v50 }
0x1b1f   :  { %v6677_v52 = vpop.f32.mrf.mxu1 }
0x1b20   :  { %v3284_v53 = vsel %vm27_vm2, %v3282_v51, -inf }
0x1b21   :  { %3285 = vmax.xlane.f32.xlu1 %v3284_v53  ;;  %v3229_v62 = vpop.f32.mrf.mxu1 }
0x1b23   :  { %v6678_v63 = vpop.f32.mrf.mxu1 }
0x1b75   :  { %v3301_v1 = vpop.xlane.xlu1 %3300 }
0x1b76   :  { %7219 = vrcp.f32 %v3301_v1 }
0x1b83   :  { %v7220_v7 = vpop.eup %7219 }
0x1b84   :  { %v3305_v8 = vmul.f32 %v7220_v7, %v7218_v42 }
0x1b86   :  { %v3307_v18 = vpack.c.bf16 %v3305_v8, %v3305_v8 }
0x1b88   :  { %6694 = vmatmul.mubr.msk.bf16.vlgmr.msra.gmra.mxu0 %vm27_vm2, %v3307_v18 }
0x1b89   :  { %6718 = vmatpush3.bf16.xpose.msra.mxu0 %v3593_v19  ;;  %6719 = vmatprep.mubr.msk.bf16.mxu0 %vm7295_vm1, %v7294_v0  ;;  %v6950_v19 = vpack.i.bf16 %v7952_v12, %v7974_v54 }
0x1b8a   :  { %6723 = vmatprep.subr.bf16.mxu0 %v7294_v0 }
0x1b90   :  { %6720 = vmatmul.mubr.msk.bf16.vlgmr.msra.gmra.mxu0 %vm1621_vm6, %v8148_v17 }
0x1b91   :  { %6724 = vmatpush3.bf16.xpose.msra.mxu0 %v3640_v26  ;;  %6725 = vmatprep.mubr.msk.bf16.mxu0 %vm7295_vm1, %v7294_v0 }
0x1b92   :  { %6729 = vmatprep.subr.bf16.mxu0 %v7294_v0 }
0x1b98   :  { %6726 = vmatmul.mubr.msk.bf16.vlgmr.msra.gmra.mxu0 %vm1621_vm6, %v8159_v48 }
0x1b99   :  { %6730 = vmatpush3.bf16.msra.mxu0 %v3712_v35  ;;  %6731 = vmatprep.mubr.msk.bf16.mxu0 %vm7295_vm1, %v7294_v0 }
0x1b9a   :  { %6735 = vmatprep.subr.bf16.mxu0 %v7294_v0 }
0x1baa   :  { %v3286_v59 = vpop.xlane.xlu1 %3285 }
0x1bab   :  { %v3290_v32 = vsub.f32 %v3282_v51, %v3286_v59 }
0x1bad   :  { %v3292_v34 = vmul.f32 1.442695, %v3290_v32 }
0x1baf   :  { %7221 = vpow2.f32 %v3292_v34 }
0x1bbc   :  { %v7222_v36 = vpop.eup %7221 }
0x1bbd   :  { %v3296_v16 = vsel %vm27_vm2, %v7222_v36, 0.0 }
0x1bbe   :  { %3297 = vadd.xlane.f32.xlu1 %v3296_v16 }
0x1bcf   :  { %3308 = vrot.lane.b32.xlu1 %v7783_v28, %s7305_s30 }
0x1c47   :  { %v3298_v37 = vpop.xlane.xlu1 %3297 }
0x1c48   :  { %7223 = vrcp.f32 %v3298_v37  ;;  %v8171_v39 = vpop.f32.mrf.mxu0 }
0x1c4a   :  { %v6695_v40 = vpop.f32.mrf.mxu0 }
0x1c4b   :  { %v3309_v42 = vpop.permute.xlu1 %3308 }
0x1c4c   :  { %v3310_v44 = vrot.slane %v3309_v42, 4  ;;  %v3403_v38 = vpop.f32.mrf.mxu0 }
0x1c4e   :  { %v3315_v46 = vsel %vm31_vm0, %v3310_v44, 0  ;;  %v6696_v29 = vpop.f32.mrf.mxu0 }
0x1c4f   :  { %6686 = vmatpush3.bf16.msra.mxu1 %v3315_v46 }
0x1c50   :  { %v3629_v50 = vpop.f32.mrf.mxu0  ;;  %6697 = vmatprep.subr.bf16.mxu1 %v7294_v0 }
0x1c51   :  { %v3682_v51 = vmul.f32 0.25, %v3629_v50  ;;  %v1588_v50 = vmax.f32 %v7821_v56, 0.0 }
0x1c52   :  { %v6721_v52 = vpop.f32.mrf.mxu0 }
0x1c53   :  { %v3684_v53 = vsel %vm27_vm2, %v3682_v51, -inf }
0x1c54   :  { %3685 = vmax.xlane.f32.xlu0 %v3684_v53  ;;  %v3632_v28 = vpop.f32.mrf.mxu0 }
0x1c55   :  { %v7224_v62 = vpop.eup %7223 }
0x1c56   :  { %v6722_v63 = vpop.f32.mrf.mxu0  ;;  %v3303_v1 = vmul.f32 %v7224_v62, %v7222_v36 }
0x1c57   :  { %v8249_v63 = vpack.c.bf16 %v1588_v50, %v1588_v50 }
0x1c58   :  { %v3676_v3 = vpop.f32.mrf.mxu0  ;;  %v3306_v4 = vpack.c.bf16 %v3303_v1, %v3303_v1 }
0x1c59   :  { %v3683_v7 = vmul.f32 0.25, %v3676_v3 }
0x1c5a   :  { %6688 = vmatmul.mubr.msk.bf16.vlgmr.msra.gmra.mxu1 %vm27_vm2, %v3306_v4  ;;  %v6727_v8 = vpop.f32.mrf.mxu0 }
0x1c5b   :  { %v3687_v10 = vsel %vm27_vm2, %v3683_v7, -inf  ;;  %6713 = vmatprep.mubr.msk.bf16.mxu1 %vm7295_vm1, %v7294_v0  ;;  %6698 = vmatpush3.bf16.msra.mxu1 %v7109_v22 }
0x1c5c   :  { %v3679_v13 = vpop.f32.mrf.mxu0  ;;  %3688 = vmax.xlane.f32.xlu1 %v3687_v10  ;;  %6699 = vmatprep.subr.bf16.mxu1 %v7294_v0 }
0x1c5e   :  { %v6728_v18 = vpop.f32.mrf.mxu0 }
0x1c6a   :  { %6946 = vrot.lane.b32.xlu0 %v6945_v23, %s7305_s30  ;;  %v7110_v23 = vld [vmem:[%s8725_s2 + $0x11c] sm:$0xff]  }
0x1c6b   :  { %6700 = vmatpush3.bf16.msra.mxu1 %v7110_v23 }
0x1c6c   :  { %6701 = vmatprep.subr.bf16.mxu1 %v7294_v0 }
0x1c6d   :  { %6951 = vrot.lane.b32.xlu1 %v6950_v19, %s7304_s29 }
0x1c6e   :  { %6956 = vrot.lane.b32.xlu0 %v6955_v58, %s7303_s28 }
0x1c6f   :  { %6702 = vmatpush3.bf16.msra.mxu1 %v7111_v45 }
0x1c70   :  { %6703 = vmatprep.subr.bf16.mxu1 %v7294_v0 }
0x1c71   :  { %6961 = vrot.lane.b32.xlu1 %v6960_v2, %s7297_s19  ;;  %v3758_v2 = vsel %vm31_vm0, %v8249_v63, 0 }
0x1c72   :  { %6966 = vrot.lane.b32.xlu0 %v6965_v43, %s7302_s27 }
0x1c73   :  { %6704 = vmatpush3.bf16.msra.mxu1 %v7112_v27 }
0x1c74   :  { %6705 = vmatprep.subr.bf16.mxu1 %v7294_v0 }
0x1c75   :  { %6971 = vrot.lane.b32.xlu1 %v6970_v9, %s7296_s18 }
0x1c77   :  { %6706 = vmatpush3.bf16.msra.mxu1 %v7113_v49 }
0x1c78   :  { %6707 = vmatprep.subr.bf16.mxu1 %v7294_v0 }
0x1c79   :  { %3800 = vrot.lane.b32.xlu1 %v7823_v61, %s7301_s26 }
0x1c7b   :  { %6708 = vmatpush3.bf16.msra.mxu1 %v7114_v55 }
0x1c7c   :  { %6709 = vmatprep.subr.bf16.mxu1 %v7294_v0 }
0x1c7d   :  { %3803 = vrot.lane.b32.xlu1 %v8148_v17, %s7301_s26 }
0x1c7f   :  { %6710 = vmatpush3.bf16.msra.mxu1 %v7115_v21 }
0x1c80   :  { %6711 = vmatprep.subr.bf16.mxu1 %v7294_v0 }
0x1c83   :  { %6712 = vmatpush3.bf16.msra.mxu1 %v7116_v33 }
0x1c84   :  { %6741 = vmatprep.subr.bf16.mxu1 %v7294_v0 }
0x1cdd   :  { %v3686_v12 = vpop.xlane.xlu0 %3685 }
0x1cde   :  { %v3690_v54 = vsub.f32 %v3682_v51, %v3686_v12 }
0x1ce0   :  { %v3692_v24 = vmul.f32 1.442695, %v3690_v54 }
0x1ce2   :  { %7225 = vpow2.f32 %v3692_v24 }
0x1ce5   :  { %v3689_v59 = vpop.xlane.xlu1 %3688 }
0x1ce6   :  { %v3691_v34 = vsub.f32 %v3683_v7, %v3689_v59 }
0x1ce8   :  { %v3694_v36 = vmul.f32 1.442695, %v3691_v34 }
0x1ce9   :  { %v6952_v38 = vpop.permute.xlu1 %6951 }
0x1cea   :  { %7227 = vpow2.f32 %v3694_v36  ;;  %v6954_v52 = vunpack.i.h.bf16 %v6952_v38  ;;  %v6953_v53 = vunpack.i.l.bf16 %v6952_v38 }
0x1ced   :  { %v6962_v46 = vpop.permute.xlu1 %6961 }
0x1cee   :  { %v6964_v8 = vunpack.i.h.bf16 %v6962_v46  ;;  %v6963_v56 = vunpack.i.l.bf16 %v6962_v46 }
0x1cef   :  { %v7226_v47 = vpop.eup %7225 }
0x1cf0   :  { %v3696_v57 = vsel %vm27_vm2, %v7226_v47, 0.0 }
0x1cf1   :  { %3697 = vadd.xlane.f32.xlu0 %v3696_v57  ;;  %v6972_v4 = vpop.permute.xlu1 %6971 }
0x1cf2   :  { %v6974_v9 = vunpack.i.h.bf16 %v6972_v4  ;;  %v6973_v22 = vunpack.i.l.bf16 %v6972_v4 }
0x1cf5   :  { %v3801_v54 = vpop.permute.xlu1 %3800 }
0x1cf6   :  { %v3802_v21 = vrot.slane %v3801_v54, 4 }
0x1cf7   :  { %v8238_v16 = vpop.eup %7227 }
0x1cf8   :  { %v3699_v37 = vsel %vm27_vm2, %v8238_v16, 0.0 }
0x1d1a   :  { %v3351_v20 = vpop.f32.mrf.mxu1 }
0x1d1b   :  { %v6975_v26 = vpack.i.bf16 %v8171_v39, %v3351_v20  ;;  %v6947_v39 = vpop.permute.xlu0 %6946 }
0x1d1c   :  { %v6689_v25 = vpop.f32.mrf.mxu1  ;;  %v6949_v29 = vunpack.i.h.bf16 %v6947_v39  ;;  %v6948_v51 = vunpack.i.l.bf16 %v6947_v39 }
0x1d1d   :  { %6976 = vrot.lane.b32.xlu0 %v6975_v26, %s7301_s26  ;;  %v3809_v25 = vsel %vm1621_vm6, %v3802_v21, 0 }
0x1d1e   :  { %v3354_v35 = vpop.f32.mrf.mxu1  ;;  %v3463_v28 = vsel %vm1621_vm6, %v7880_v60, %v6949_v29  ;;  %v3462_v1 = vsel %vm1621_vm6, %v7887_v11, %v6948_v51 }
0x1d1f   :  { %v6957_v40 = vpop.permute.xlu0 %6956  ;;  %v3465_v3 = vsel %vm196_vm3, %v3463_v28, %v6954_v52  ;;  %v3464_v7 = vsel %vm196_vm3, %v3462_v1, %v6953_v53  ;;  %v3804_v35 = vpop.permute.xlu1 %3803 }
0x1d20   :  { %v6690_v32 = vpop.f32.mrf.mxu1  ;;  %v6959_v13 = vunpack.i.h.bf16 %v6957_v40  ;;  %v6958_v18 = vunpack.i.l.bf16 %v6957_v40 }
0x1d22   :  { %v3467_v60 = vsel %vm3466_vm7, %v3464_v7, %v6958_v18  ;;  %v3468_v58 = vsel %vm3466_vm7, %v3465_v3, %v6959_v13 }
0x1d23   :  { %v6967_v42 = vpop.permute.xlu0 %6966  ;;  %v3469_v11 = vsel %vm602_vm5, %v3467_v60, %v6963_v56  ;;  %v3470_v43 = vsel %vm602_vm5, %v3468_v58, %v6964_v8 }
0x1d24   :  { %v6969_v23 = vunpack.i.h.bf16 %v6967_v42  ;;  %v6968_v12 = vunpack.i.l.bf16 %v6967_v42 }
0x1d26   :  { %v3472_v57 = vsel %vm523_vm4, %v3470_v43, %v6969_v23 }
0x1d27   :  { %v3475_v55 = vsel %vm3473_vm8, %v3472_v57, %v6974_v9 }
0x1d3c   :  { %3700 = vadd.xlane.f32.xlu0 %v3699_v37 }
0x1d52   :  { %3851 = vrot.lane.b32.xlu0 %v7831_v6, %s7301_s26 }
0x1d56   :  { %3854 = vrot.lane.b32.xlu0 %v8159_v48, %s7301_s26 }
0x1d7a   :  { %v3698_v44 = vpop.xlane.xlu0 %3697 }
0x1d7b   :  { %7229 = vrcp.f32 %v3698_v44 }
0x1d88   :  { %v7230_v62 = vpop.eup %7229 }
0x1d89   :  { %v3703_v10 = vmul.f32 %v7230_v62, %v7226_v47  ;;  %v3471_v47 = vsel %vm523_vm4, %v3469_v11, %v6968_v12 }
0x1d8a   :  { %v3474_v49 = vsel %vm3473_vm8, %v3471_v47, %v6973_v22 }
0x1d8b   :  { %v3706_v19 = vpack.c.bf16 %v3703_v10, %v3703_v10 }
0x1d8d   :  { %6732 = vmatmul.mubr.msk.bf16.vlgmr.msra.gmra.mxu0 %vm27_vm2, %v3706_v19 }
0x1d8e   :  { %6736 = vmatpush3.bf16.msra.mxu0 %v3758_v2  ;;  %6737 = vmatprep.mubr.msk.bf16.mxu0 %vm7295_vm1, %v7294_v0 }
0x1d8f   :  { %v6977_v24 = vpop.permute.xlu0 %6976  ;;  %6747 = vmatprep.subr.bf16.mxu0 %v7294_v0 }
0x1d90   :  { %v6979_v45 = vunpack.i.h.bf16 %v6977_v24  ;;  %v6978_v27 = vunpack.i.l.bf16 %v6977_v24 }
0x1d92   :  { %v3478_v33 = vsel %vm3476_vm9, %v3475_v55, %v6979_v45  ;;  %v3477_v20 = vsel %vm3476_vm9, %v3474_v49, %v6978_v27 }
0x1d93   :  { %v3479_v26 = vpack.c.bf16 %v3478_v33, %v3477_v20 }
0x1d95   :  { %6714 = vmatmul.mubr.bf16.vlgmr.msra.gmra.mxu1 %v3479_v26 }
0x1d96   :  { %6742 = vmatpush3.bf16.xpose.msra.mxu1 %v3809_v25  ;;  %6743 = vmatprep.mubr.msk.bf16.mxu1 %vm7295_vm1, %v7294_v0 }
0x1d97   :  { %6753 = vmatprep.subr.bf16.mxu1 %v7294_v0 }
0x1d9d   :  { %6744 = vmatmul.mubr.msk.bf16.vlgmr.msra.gmra.mxu1 %vm1621_vm6, %v3804_v35 }
0x1d9e   :  { %6755 = vmatprep.mubr.msk.bf16.mxu1 %vm7295_vm1, %v7294_v0 }
0x1dc5   :  { %v3701_v59 = vpop.xlane.xlu0 %3700 }
0x1dc6   :  { %7231 = vrcp.f32 %v3701_v59 }
0x1dc9   :  { %v3852_v32 = vpop.permute.xlu0 %3851 }
0x1dca   :  { %v3853_v37 = vrot.slane %v3852_v32, 4 }
0x1dcc   :  { %v3860_v40 = vsel %vm1621_vm6, %v3853_v37, 0 }
0x1dcd   :  { %v3855_v42 = vpop.permute.xlu0 %3854 }
0x1dd3   :  { %v7232_v34 = vpop.eup %7231 }
0x1dd4   :  { %v3705_v36 = vmul.f32 %v7232_v34, %v8238_v16 }
0x1dd6   :  { %v3707_v39 = vpack.c.bf16 %v3705_v36, %v3705_v36 }
0x1dd8   :  { %6738 = vmatmul.mubr.msk.bf16.vlgmr.msra.gmra.mxu0 %vm27_vm2, %v3707_v39 }
0x1dd9   :  { %6748 = vmatpush3.bf16.xpose.msra.mxu0 %v3860_v40  ;;  %6749 = vmatprep.mubr.msk.bf16.mxu0 %vm7295_vm1, %v7294_v0 }
0x1dda   :  { %6759 = vmatprep.subr.bf16.mxu0 %v7294_v0 }
0x1de0   :  { %6750 = vmatmul.mubr.msk.bf16.vlgmr.msra.gmra.mxu0 %vm1621_vm6, %v3855_v42 }
0x1de1   :  { %6761 = vmatprep.mubr.msk.bf16.mxu0 %vm7295_vm1, %v7294_v0 }
0x1e4d   :  { %v8287_v44 = vpop.f32.mrf.mxu0 }
0x1e4f   :  { %v6733_v16 = vpop.f32.mrf.mxu0 }
0x1e51   :  { %v3751_v38 = vpop.f32.mrf.mxu0 }
0x1e53   :  { %v6734_v46 = vpop.f32.mrf.mxu0 }
0x1e55   :  { %v8289_v29 = vpop.f32.mrf.mxu1 }
0x1e57   :  { %v6715_v50 = vpop.f32.mrf.mxu1 }
0x1e59   :  { %v8291_v51 = vpop.f32.mrf.mxu1 }
0x1e5b   :  { %v6716_v52 = vpop.f32.mrf.mxu1 }
0x1e5d   :  { %v3845_v53 = vpop.f32.mrf.mxu1 }
0x1e5e   :  { %v3902_v28 = vmul.f32 0.25, %v3845_v53 }
0x1e5f   :  { %v6745_v62 = vpop.f32.mrf.mxu1 }
0x1e60   :  { %v3904_v1 = vsel %vm27_vm2, %v3902_v28, -inf }
0x1e61   :  { %3905 = vmax.xlane.f32.xlu1 %v3904_v1  ;;  %v3848_v3 = vpop.f32.mrf.mxu1 }
0x1e63   :  { %v6746_v4 = vpop.f32.mrf.mxu1 }
0x1e72   :  { %3976 = vrot.lane.b32.xlu1 %v8249_v63, %s7301_s26 }
0x1e98   :  { %v8296_v7 = vpop.f32.mrf.mxu0 }
0x1e9a   :  { %v6739_v8 = vpop.f32.mrf.mxu0 }
0x1e9c   :  { %v3797_v56 = vpop.f32.mrf.mxu0 }
0x1e9e   :  { %v6740_v10 = vpop.f32.mrf.mxu0 }
0x1ea0   :  { %v3896_v13 = vpop.f32.mrf.mxu0 }
0x1ea1   :  { %v3903_v18 = vmul.f32 0.25, %v3896_v13 }
0x1ea2   :  { %v6751_v19 = vpop.f32.mrf.mxu0 }
0x1ea3   :  { %v3907_v60 = vsel %vm27_vm2, %v3903_v18, -inf }
0x1ea4   :  { %3908 = vmax.xlane.f32.xlu0 %v3907_v60  ;;  %v3899_v58 = vpop.f32.mrf.mxu0 }
0x1ea6   :  { %v6752_v2 = vpop.f32.mrf.mxu0 }
0x1eea   :  { %v3906_v11 = vpop.xlane.xlu1 %3905 }
0x1eeb   :  { %v3910_v43 = vsub.f32 %v3902_v28, %v3906_v11 }
0x1eed   :  { %v3912_v9 = vmul.f32 1.442695, %v3910_v43 }
0x1eee   :  { %v3977_v22 = vpop.permute.xlu1 %3976 }
0x1eef   :  { %7233 = vpow2.f32 %v3912_v9  ;;  %v3982_v23 = vsel %vm31_vm0, %v3977_v22, 0 }
0x1ef0   :  { %6760 = vmatpush3.bf16.msra.mxu0 %v3982_v23 }
0x1ef1   :  { %6771 = vmatprep.subr.bf16.mxu0 %v7294_v0 }
0x1efc   :  { %v7234_v12 = vpop.eup %7233 }
0x1efd   :  { %v3916_v54 = vsel %vm27_vm2, %v7234_v12, 0.0 }
0x1efe   :  { %3917 = vadd.xlane.f32.xlu0 %v3916_v54 }
0x1f14   :  { %3928 = vrot.lane.b32.xlu0 %v8157_v41, %s7301_s26 }
0x1f18   :  { %4075 = vrot.lane.b32.xlu0 %v7831_v6, %s7296_s18 }
0x1f1c   :  { %4078 = vrot.lane.b32.xlu0 %v8159_v48, %s7296_s18 }
0x1f2d   :  { %v3909_v24 = vpop.xlane.xlu0 %3908 }
0x1f2e   :  { %v3911_v47 = vsub.f32 %v3903_v18, %v3909_v24 }
0x1f30   :  { %v3914_v57 = vmul.f32 1.442695, %v3911_v47 }
0x1f32   :  { %7235 = vpow2.f32 %v3914_v57 }
0x1f3f   :  { %v7236_v45 = vpop.eup %7235 }
0x1f40   :  { %v3919_v27 = vsel %vm27_vm2, %v7236_v45, 0.0 }
0x1f41   :  { %3920 = vadd.xlane.f32.xlu1 %v3919_v27 }
0x1f52   :  { %4024 = vrot.lane.b32.xlu1 %v7823_v61, %s7296_s18 }
0x1f56   :  { %4027 = vrot.lane.b32.xlu1 %v8148_v17, %s7296_s18 }
0x1f87   :  { %v3918_v49 = vpop.xlane.xlu0 %3917 }
0x1f88   :  { %7237 = vrcp.f32 %v3918_v49 }
0x1f8b   :  { %v3929_v55 = vpop.permute.xlu0 %3928 }
0x1f8c   :  { %v3934_v21 = vsel %vm31_vm0, %v3929_v55, 0 }
0x1f8d   :  { %6754 = vmatpush3.bf16.msra.mxu1 %v3934_v21 }
0x1f8e   :  { %6765 = vmatprep.subr.bf16.mxu1 %v7294_v0 }
0x1f8f   :  { %v4076_v34 = vpop.permute.xlu0 %4075 }
0x1f90   :  { %v4077_v39 = vrot.slane %v4076_v34, 4 }
0x1f92   :  { %v4084_v16 = vsel %vm1621_vm6, %v4077_v39, 0 }
0x1f93   :  { %v4079_v38 = vpop.permute.xlu0 %4078 }
0x1f95   :  { %v7238_v33 = vpop.eup %7237 }
0x1f96   :  { %v3923_v20 = vmul.f32 %v7238_v33, %v7234_v12 }
0x1f98   :  { %v3926_v26 = vpack.c.bf16 %v3923_v20, %v3923_v20 }
0x1f9a   :  { %6756 = vmatmul.mubr.msk.bf16.vlgmr.msra.gmra.mxu1 %vm27_vm2, %v3926_v26 }
0x1f9b   :  { %6767 = vmatprep.mubr.msk.bf16.mxu1 %vm7295_vm1, %v7294_v0 }
0x1fca   :  { %v3921_v25 = vpop.xlane.xlu1 %3920 }
0x1fcb   :  { %7239 = vrcp.f32 %v3921_v25 }
0x1fce   :  { %v4025_v35 = vpop.permute.xlu1 %4024 }
0x1fcf   :  { %v4026_v59 = vrot.slane %v4025_v35, 4 }
0x1fd1   :  { %v4033_v32 = vsel %vm1621_vm6, %v4026_v59, 0 }
0x1fd2   :  { %6766 = vmatpush3.bf16.xpose.msra.mxu1 %v4033_v32  ;;  %v4028_v37 = vpop.permute.xlu1 %4027 }
0x1fd3   :  { %6777 = vmatprep.subr.bf16.mxu1 %v7294_v0 }
0x1fd8   :  { %v7240_v36 = vpop.eup %7239 }
0x1fd9   :  { %v3925_v40 = vmul.f32 %v7240_v36, %v7236_v45  ;;  %6768 = vmatmul.mubr.msk.bf16.vlgmr.msra.gmra.mxu1 %vm1621_vm6, %v4028_v37 }
0x1fda   :  { %6779 = vmatprep.mubr.msk.bf16.mxu1 %vm7295_vm1, %v7294_v0 }
0x1fdb   :  { %v3927_v42 = vpack.c.bf16 %v3925_v40, %v3925_v40 }
0x1fdd   :  { %6762 = vmatmul.mubr.msk.bf16.vlgmr.msra.gmra.mxu0 %vm27_vm2, %v3927_v42 }
0x1fde   :  { %6772 = vmatpush3.bf16.xpose.msra.mxu0 %v4084_v16  ;;  %6773 = vmatprep.mubr.msk.bf16.mxu0 %vm7295_vm1, %v7294_v0 }
0x1fdf   :  { %6783 = vmatprep.subr.bf16.mxu0 %v7294_v0 }
0x1fe5   :  { %6774 = vmatmul.mubr.msk.bf16.vlgmr.msra.gmra.mxu0 %vm1621_vm6, %v4079_v38 }
0x1fe6   :  { %6785 = vmatprep.mubr.msk.bf16.mxu0 %vm7295_vm1, %v7294_v0 }
0x205a   :  { %v8331_v46 = vpop.f32.mrf.mxu1 }
0x205c   :  { %v6757_v50 = vpop.f32.mrf.mxu1 }
0x205e   :  { %v3973_v52 = vpop.f32.mrf.mxu1 }
0x2060   :  { %v6758_v53 = vpop.f32.mrf.mxu1 }
0x2099   :  { %v4069_v28 = vpop.f32.mrf.mxu1 }
0x209a   :  { %v4126_v62 = vmul.f32 0.25, %v4069_v28 }
0x209b   :  { %v6769_v1 = vpop.f32.mrf.mxu1 }
0x209c   :  { %v4128_v3 = vsel %vm27_vm2, %v4126_v62, -inf }
0x209d   :  { %v8334_v4 = vpop.f32.mrf.mxu0  ;;  %4129 = vmax.xlane.f32.xlu1 %v4128_v3  ;;  %v4072_v8 = vpop.f32.mrf.mxu1 }
0x209f   :  { %v6763_v56 = vpop.f32.mrf.mxu0  ;;  %v6770_v10 = vpop.f32.mrf.mxu1 }
0x20a1   :  { %v4021_v13 = vpop.f32.mrf.mxu0 }
0x20a3   :  { %v6764_v18 = vpop.f32.mrf.mxu0 }
0x20a5   :  { %v4120_v19 = vpop.f32.mrf.mxu0 }
0x20a6   :  { %v4127_v60 = vmul.f32 0.25, %v4120_v19 }
0x20a7   :  { %v6775_v58 = vpop.f32.mrf.mxu0 }
0x20a8   :  { %v4131_v2 = vsel %vm27_vm2, %v4127_v60, -inf }
0x20a9   :  { %4132 = vmax.xlane.f32.xlu0 %v4131_v2  ;;  %v4123_v11 = vpop.f32.mrf.mxu0 }
0x20ab   :  { %v6776_v43 = vpop.f32.mrf.mxu0 }
0x20ae   :  { %4200 = vrot.lane.b32.xlu1 %v8249_v63, %s7296_s18 }
0x2126   :  { %v4130_v9 = vpop.xlane.xlu1 %4129 }
0x2127   :  { %v4134_v22 = vsub.f32 %v4126_v62, %v4130_v9 }
0x2129   :  { %v4136_v23 = vmul.f32 1.442695, %v4134_v22 }
0x212a   :  { %v4201_v12 = vpop.permute.xlu1 %4200 }
0x212b   :  { %7241 = vpow2.f32 %v4136_v23  ;;  %v4206_v54 = vsel %vm31_vm0, %v4201_v12, 0 }
0x212c   :  { %6784 = vmatpush3.bf16.msra.mxu0 %v4206_v54 }
0x212d   :  { %6795 = vmatprep.subr.bf16.mxu0 %v7294_v0 }
0x2132   :  { %v4133_v24 = vpop.xlane.xlu0 %4132 }
0x2133   :  { %v4135_v47 = vsub.f32 %v4127_v60, %v4133_v24 }
0x2135   :  { %v4138_v57 = vmul.f32 1.442695, %v4135_v47 }
0x2137   :  { %7243 = vpow2.f32 %v4138_v57 }
0x2138   :  { %v7242_v45 = vpop.eup %7241 }
0x2139   :  { %v4140_v27 = vsel %vm27_vm2, %v7242_v45, 0.0 }
0x213a   :  { %4141 = vadd.xlane.f32.xlu0 %v4140_v27 }
0x2144   :  { %v7244_v49 = vpop.eup %7243 }
0x2145   :  { %v4143_v55 = vsel %vm27_vm2, %v7244_v49, 0.0 }
0x2146   :  { %4144 = vadd.xlane.f32.xlu1 %v4143_v55 }
0x2150   :  { %4152 = vrot.lane.b32.xlu0 %v8157_v41, %s7296_s18 }
0x2154   :  { %4299 = vrot.lane.b32.xlu0 %v7831_v6, %s7302_s27 }
0x2157   :  { %4248 = vrot.lane.b32.xlu1 %v7823_v61, %s7302_s27 }
0x2158   :  { %4302 = vrot.lane.b32.xlu0 %v8159_v48, %s7302_s27 }
0x215b   :  { %4251 = vrot.lane.b32.xlu1 %v8148_v17, %s7302_s27 }
0x21c3   :  { %v4142_v21 = vpop.xlane.xlu0 %4141 }
0x21c4   :  { %7245 = vrcp.f32 %v4142_v21 }
0x21c7   :  { %v4153_v33 = vpop.permute.xlu0 %4152 }
0x21c8   :  { %v4158_v20 = vsel %vm31_vm0, %v4153_v33, 0 }
0x21c9   :  { %6778 = vmatpush3.bf16.msra.mxu1 %v4158_v20 }
0x21ca   :  { %6789 = vmatprep.subr.bf16.mxu1 %v7294_v0 }
0x21cb   :  { %v4300_v37 = vpop.permute.xlu0 %4299 }
0x21cc   :  { %v4301_v42 = vrot.slane %v4300_v37, 4 }
0x21ce   :  { %v4308_v50 = vsel %vm1621_vm6, %v4301_v42, 0 }
0x21cf   :  { %v4145_v26 = vpop.xlane.xlu1 %4144  ;;  %v4303_v52 = vpop.permute.xlu0 %4302 }
0x21d0   :  { %7247 = vrcp.f32 %v4145_v26 }
0x21d1   :  { %v7246_v25 = vpop.eup %7245 }
0x21d2   :  { %v4147_v35 = vmul.f32 %v7246_v25, %v7242_v45 }
0x21d3   :  { %v4249_v59 = vpop.permute.xlu1 %4248 }
0x21d4   :  { %v4150_v32 = vpack.c.bf16 %v4147_v35, %v4147_v35  ;;  %v4250_v34 = vrot.slane %v4249_v59, 4 }
0x21d6   :  { %v4257_v36 = vsel %vm1621_vm6, %v4250_v34, 0  ;;  %6780 = vmatmul.mubr.msk.bf16.vlgmr.msra.gmra.mxu1 %vm27_vm2, %v4150_v32 }
0x21d7   :  { %6790 = vmatpush3.bf16.xpose.msra.mxu1 %v4257_v36  ;;  %6791 = vmatprep.mubr.msk.bf16.mxu1 %vm7295_vm1, %v7294_v0  ;;  %v4252_v40 = vpop.permute.xlu1 %4251 }
0x21d8   :  { %6801 = vmatprep.subr.bf16.mxu1 %v7294_v0 }
0x21dd   :  { %v7248_v39 = vpop.eup %7247 }
0x21de   :  { %v4149_v16 = vmul.f32 %v7248_v39, %v7244_v49  ;;  %6792 = vmatmul.mubr.msk.bf16.vlgmr.msra.gmra.mxu1 %vm1621_vm6, %v4252_v40 }
0x21df   :  { %6803 = vmatprep.mubr.msk.bf16.mxu1 %vm7295_vm1, %v7294_v0 }
0x21e0   :  { %v4151_v38 = vpack.c.bf16 %v4149_v16, %v4149_v16 }
0x21e2   :  { %6786 = vmatmul.mubr.msk.bf16.vlgmr.msra.gmra.mxu0 %vm27_vm2, %v4151_v38 }
0x21e3   :  { %6796 = vmatpush3.bf16.xpose.msra.mxu0 %v4308_v50  ;;  %6797 = vmatprep.mubr.msk.bf16.mxu0 %vm7295_vm1, %v7294_v0 }
0x21e4   :  { %6807 = vmatprep.subr.bf16.mxu0 %v7294_v0 }
0x21ea   :  { %6798 = vmatmul.mubr.msk.bf16.vlgmr.msra.gmra.mxu0 %vm1621_vm6, %v4303_v52 }
0x21eb   :  { %6809 = vmatprep.mubr.msk.bf16.mxu0 %vm7295_vm1, %v7294_v0 }
0x2296   :  { %v8371_v53 = vpop.f32.mrf.mxu1 }
0x2298   :  { %v6781_v28 = vpop.f32.mrf.mxu1 }
0x229a   :  { %v4197_v62 = vpop.f32.mrf.mxu1 }
0x229c   :  { %v6782_v1 = vpop.f32.mrf.mxu1 }
0x229e   :  { %v4293_v3 = vpop.f32.mrf.mxu1 }
0x229f   :  { %v4350_v8 = vmul.f32 0.25, %v4293_v3 }
0x22a0   :  { %v6793_v56 = vpop.f32.mrf.mxu1 }
0x22a1   :  { %v4352_v10 = vsel %vm27_vm2, %v4350_v8, -inf }
0x22a2   :  { %v8374_v13 = vpop.f32.mrf.mxu0  ;;  %4353 = vmax.xlane.f32.xlu1 %v4352_v10  ;;  %v4296_v18 = vpop.f32.mrf.mxu1 }
0x22a3   :  { %v6985_v19 = vpack.i.bf16 %v8374_v13, %v8371_v53 }
0x22a4   :  { %v6787_v60 = vpop.f32.mrf.mxu0  ;;  %v6794_v58 = vpop.f32.mrf.mxu1 }
0x22a6   :  { %v4245_v2 = vpop.f32.mrf.mxu0 }
0x22a8   :  { %v6788_v11 = vpop.f32.mrf.mxu0 }
0x22aa   :  { %v4344_v43 = vpop.f32.mrf.mxu0 }
0x22ab   :  { %v4351_v9 = vmul.f32 0.25, %v4344_v43 }
0x22ac   :  { %v6799_v22 = vpop.f32.mrf.mxu0 }
0x22ad   :  { %v4355_v23 = vsel %vm27_vm2, %v4351_v9, -inf }
0x22ae   :  { %4356 = vmax.xlane.f32.xlu0 %v4355_v23  ;;  %v4347_v12 = vpop.f32.mrf.mxu0 }
0x22b0   :  { %v6800_v54 = vpop.f32.mrf.mxu0 }
0x22b3   :  { %4424 = vrot.lane.b32.xlu1 %v8249_v63, %s7302_s27 }
0x232b   :  { %v4354_v24 = vpop.xlane.xlu1 %4353 }
0x232c   :  { %v4358_v47 = vsub.f32 %v4350_v8, %v4354_v24 }
0x232e   :  { %v4360_v57 = vmul.f32 1.442695, %v4358_v47 }
0x232f   :  { %v4425_v45 = vpop.permute.xlu1 %4424 }
0x2330   :  { %7249 = vpow2.f32 %v4360_v57  ;;  %v4430_v27 = vsel %vm31_vm0, %v4425_v45, 0 }
0x2331   :  { %6808 = vmatpush3.bf16.msra.mxu0 %v4430_v27 }
0x2332   :  { %6819 = vmatprep.subr.bf16.mxu0 %v7294_v0 }
0x2337   :  { %v4357_v49 = vpop.xlane.xlu0 %4356 }
0x2338   :  { %v4359_v55 = vsub.f32 %v4351_v9, %v4357_v49 }
0x233a   :  { %v4362_v21 = vmul.f32 1.442695, %v4359_v55 }
0x233c   :  { %7251 = vpow2.f32 %v4362_v21 }
0x233d   :  { %v7250_v33 = vpop.eup %7249 }
0x233e   :  { %v4364_v20 = vsel %vm27_vm2, %v7250_v33, 0.0 }
0x233f   :  { %4365 = vadd.xlane.f32.xlu0 %v4364_v20 }
0x2349   :  { %v7252_v26 = vpop.eup %7251 }
0x234a   :  { %v4367_v25 = vsel %vm27_vm2, %v7252_v26, 0.0 }
0x234b   :  { %4368 = vadd.xlane.f32.xlu1 %v4367_v25 }
0x2355   :  { %4376 = vrot.lane.b32.xlu0 %v8157_v41, %s7302_s27 }
0x2359   :  { %4523 = vrot.lane.b32.xlu0 %v7831_v6, %s7297_s19 }
0x235c   :  { %4472 = vrot.lane.b32.xlu1 %v7823_v61, %s7297_s19 }
0x235d   :  { %4526 = vrot.lane.b32.xlu0 %v8159_v48, %s7297_s19 }
0x2360   :  { %4475 = vrot.lane.b32.xlu1 %v8148_v17, %s7297_s19 }
0x23c8   :  { %v4366_v35 = vpop.xlane.xlu0 %4365 }
0x23c9   :  { %7253 = vrcp.f32 %v4366_v35 }
0x23cc   :  { %v4377_v59 = vpop.permute.xlu0 %4376 }
0x23cd   :  { %v4382_v32 = vsel %vm31_vm0, %v4377_v59, 0 }
0x23ce   :  { %6802 = vmatpush3.bf16.msra.mxu1 %v4382_v32 }
0x23cf   :  { %6813 = vmatprep.subr.bf16.mxu1 %v7294_v0 }
0x23d0   :  { %v4524_v38 = vpop.permute.xlu0 %4523 }
0x23d1   :  { %v4525_v28 = vrot.slane %v4524_v38, 4 }
0x23d3   :  { %v4532_v3 = vsel %vm1621_vm6, %v4525_v28, 0 }
0x23d4   :  { %v4369_v34 = vpop.xlane.xlu1 %4368  ;;  %v4527_v8 = vpop.permute.xlu0 %4526 }
0x23d5   :  { %7255 = vrcp.f32 %v4369_v34 }
0x23d6   :  { %v7254_v36 = vpop.eup %7253 }
0x23d7   :  { %v4371_v37 = vmul.f32 %v7254_v36, %v7250_v33 }
0x23d8   :  { %v4473_v39 = vpop.permute.xlu1 %4472 }
0x23d9   :  { %v4374_v40 = vpack.c.bf16 %v4371_v37, %v4371_v37  ;;  %v4474_v42 = vrot.slane %v4473_v39, 4 }
0x23db   :  { %v4481_v16 = vsel %vm1621_vm6, %v4474_v42, 0  ;;  %6804 = vmatmul.mubr.msk.bf16.vlgmr.msra.gmra.mxu1 %vm27_vm2, %v4374_v40 }
0x23dc   :  { %6814 = vmatpush3.bf16.xpose.msra.mxu1 %v4481_v16  ;;  %6815 = vmatprep.mubr.msk.bf16.mxu1 %vm7295_vm1, %v7294_v0  ;;  %v4476_v52 = vpop.permute.xlu1 %4475 }
0x23dd   :  { %6825 = vmatprep.subr.bf16.mxu1 %v7294_v0 }
0x23e2   :  { %v7256_v50 = vpop.eup %7255 }
0x23e3   :  { %v4373_v62 = vmul.f32 %v7256_v50, %v7252_v26  ;;  %6816 = vmatmul.mubr.msk.bf16.vlgmr.msra.gmra.mxu1 %vm1621_vm6, %v4476_v52 }
0x23e4   :  { %6827 = vmatprep.mubr.msk.bf16.mxu1 %vm7295_vm1, %v7294_v0 }
0x23e5   :  { %v4375_v1 = vpack.c.bf16 %v4373_v62, %v4373_v62 }
0x23e7   :  { %6810 = vmatmul.mubr.msk.bf16.vlgmr.msra.gmra.mxu0 %vm27_vm2, %v4375_v1 }
0x23e8   :  { %6820 = vmatpush3.bf16.xpose.msra.mxu0 %v4532_v3  ;;  %6821 = vmatprep.mubr.msk.bf16.mxu0 %vm7295_vm1, %v7294_v0 }
0x23e9   :  { %6831 = vmatprep.subr.bf16.mxu0 %v7294_v0 }
0x23ef   :  { %6822 = vmatmul.mubr.msk.bf16.vlgmr.msra.gmra.mxu0 %vm1621_vm6, %v4527_v8 }
0x23f0   :  { %6833 = vmatprep.mubr.msk.bf16.mxu0 %vm7295_vm1, %v7294_v0 }
0x249b   :  { %v8413_v56 = vpop.f32.mrf.mxu1 }
0x249d   :  { %v6805_v10 = vpop.f32.mrf.mxu1 }
0x249f   :  { %v4421_v18 = vpop.f32.mrf.mxu1 }
0x24a1   :  { %v6806_v60 = vpop.f32.mrf.mxu1 }
0x24a3   :  { %v4517_v58 = vpop.f32.mrf.mxu1 }
0x24a4   :  { %v4574_v2 = vmul.f32 0.25, %v4517_v58 }
0x24a5   :  { %v6817_v11 = vpop.f32.mrf.mxu1 }
0x24a6   :  { %v4576_v43 = vsel %vm27_vm2, %v4574_v2, -inf }
0x24a7   :  { %v8416_v9 = vpop.f32.mrf.mxu0  ;;  %4577 = vmax.xlane.f32.xlu1 %v4576_v43  ;;  %v4520_v22 = vpop.f32.mrf.mxu1 }
0x24a8   :  { %v6990_v23 = vpack.i.bf16 %v8416_v9, %v8413_v56 }
0x24a9   :  { %v6811_v12 = vpop.f32.mrf.mxu0  ;;  %v6818_v54 = vpop.f32.mrf.mxu1 }
0x24ab   :  { %v4469_v24 = vpop.f32.mrf.mxu0 }
0x24ad   :  { %v6812_v47 = vpop.f32.mrf.mxu0 }
0x24af   :  { %v4568_v57 = vpop.f32.mrf.mxu0 }
0x24b0   :  { %v4575_v45 = vmul.f32 0.25, %v4568_v57 }
0x24b1   :  { %v6823_v27 = vpop.f32.mrf.mxu0 }
0x24b2   :  { %v4579_v49 = vsel %vm27_vm2, %v4575_v45, -inf }
0x24b3   :  { %4580 = vmax.xlane.f32.xlu0 %v4579_v49  ;;  %v4571_v55 = vpop.f32.mrf.mxu0 }
0x24b5   :  { %v6824_v21 = vpop.f32.mrf.mxu0 }
0x24b8   :  { %4648 = vrot.lane.b32.xlu1 %v8249_v63, %s7297_s19 }
0x2530   :  { %v4578_v33 = vpop.xlane.xlu1 %4577 }
0x2531   :  { %v4582_v20 = vsub.f32 %v4574_v2, %v4578_v33 }
0x2533   :  { %v4584_v26 = vmul.f32 1.442695, %v4582_v20 }
0x2534   :  { %v4649_v25 = vpop.permute.xlu1 %4648 }
0x2535   :  { %7257 = vpow2.f32 %v4584_v26  ;;  %v4654_v35 = vsel %vm31_vm0, %v4649_v25, 0 }
0x2536   :  { %6832 = vmatpush3.bf16.msra.mxu0 %v4654_v35 }
0x2537   :  { %6843 = vmatprep.subr.bf16.mxu0 %v7294_v0 }
0x253c   :  { %v4581_v59 = vpop.xlane.xlu0 %4580 }
0x253d   :  { %v4583_v32 = vsub.f32 %v4575_v45, %v4581_v59 }
0x253f   :  { %v4586_v34 = vmul.f32 1.442695, %v4583_v32 }
0x2541   :  { %7259 = vpow2.f32 %v4586_v34 }
0x2542   :  { %v7258_v36 = vpop.eup %7257 }
0x2543   :  { %v4588_v37 = vsel %vm27_vm2, %v7258_v36, 0.0 }
0x2544   :  { %4589 = vadd.xlane.f32.xlu0 %v4588_v37 }
0x254e   :  { %v7260_v39 = vpop.eup %7259 }
0x254f   :  { %v4591_v40 = vsel %vm27_vm2, %v7260_v39, 0.0 }
0x2550   :  { %4592 = vadd.xlane.f32.xlu1 %v4591_v40 }
0x255a   :  { %4600 = vrot.lane.b32.xlu0 %v8157_v41, %s7297_s19 }
0x255e   :  { %4747 = vrot.lane.b32.xlu0 %v7831_v6, %s7303_s28 }
0x2561   :  { %4696 = vrot.lane.b32.xlu1 %v7823_v61, %s7303_s28 }
0x2562   :  { %4750 = vrot.lane.b32.xlu0 %v8159_v48, %s7303_s28 }
0x2565   :  { %4699 = vrot.lane.b32.xlu1 %v8148_v17, %s7303_s28 }
0x25cd   :  { %v4590_v42 = vpop.xlane.xlu0 %4589 }
0x25ce   :  { %7261 = vrcp.f32 %v4590_v42 }
0x25d1   :  { %v4601_v16 = vpop.permute.xlu0 %4600 }
0x25d2   :  { %v4606_v38 = vsel %vm31_vm0, %v4601_v16, 0 }
0x25d3   :  { %6826 = vmatpush3.bf16.msra.mxu1 %v4606_v38 }
0x25d4   :  { %6837 = vmatprep.subr.bf16.mxu1 %v7294_v0 }
0x25d5   :  { %v4748_v10 = vpop.permute.xlu0 %4747 }
0x25d6   :  { %v4749_v58 = vrot.slane %v4748_v10, 4 }
0x25d8   :  { %v4756_v43 = vsel %vm1621_vm6, %v4749_v58, 0 }
0x25d9   :  { %v4593_v50 = vpop.xlane.xlu1 %4592  ;;  %v4751_v22 = vpop.permute.xlu0 %4750 }
0x25da   :  { %7263 = vrcp.f32 %v4593_v50 }
0x25db   :  { %v7262_v52 = vpop.eup %7261 }
0x25dc   :  { %v4595_v28 = vmul.f32 %v7262_v52, %v7258_v36 }
0x25dd   :  { %v4697_v62 = vpop.permute.xlu1 %4696 }
0x25de   :  { %v4598_v1 = vpack.c.bf16 %v4595_v28, %v4595_v28  ;;  %v4698_v3 = vrot.slane %v4697_v62, 4 }
0x25e0   :  { %v4705_v8 = vsel %vm1621_vm6, %v4698_v3, 0  ;;  %6828 = vmatmul.mubr.msk.bf16.vlgmr.msra.gmra.mxu1 %vm27_vm2, %v4598_v1 }
0x25e1   :  { %6838 = vmatpush3.bf16.xpose.msra.mxu1 %v4705_v8  ;;  %6839 = vmatprep.mubr.msk.bf16.mxu1 %vm7295_vm1, %v7294_v0  ;;  %v4700_v60 = vpop.permute.xlu1 %4699 }
0x25e2   :  { %6849 = vmatprep.subr.bf16.mxu1 %v7294_v0 }
0x25e7   :  { %v7264_v18 = vpop.eup %7263 }
0x25e8   :  { %v4597_v2 = vmul.f32 %v7264_v18, %v7260_v39  ;;  %6840 = vmatmul.mubr.msk.bf16.vlgmr.msra.gmra.mxu1 %vm1621_vm6, %v4700_v60 }
0x25e9   :  { %6851 = vmatprep.mubr.msk.bf16.mxu1 %vm7295_vm1, %v7294_v0 }
0x25ea   :  { %v4599_v11 = vpack.c.bf16 %v4597_v2, %v4597_v2 }
0x25ec   :  { %6834 = vmatmul.mubr.msk.bf16.vlgmr.msra.gmra.mxu0 %vm27_vm2, %v4599_v11 }
0x25ed   :  { %6844 = vmatpush3.bf16.xpose.msra.mxu0 %v4756_v43  ;;  %6845 = vmatprep.mubr.msk.bf16.mxu0 %vm7295_vm1, %v7294_v0 }
0x25ee   :  { %6855 = vmatprep.subr.bf16.mxu0 %v7294_v0 }
0x25f4   :  { %6846 = vmatmul.mubr.msk.bf16.vlgmr.msra.gmra.mxu0 %vm1621_vm6, %v4751_v22 }
0x25f5   :  { %6857 = vmatprep.mubr.msk.bf16.mxu0 %vm7295_vm1, %v7294_v0 }
0x26a0   :  { %v8455_v12 = vpop.f32.mrf.mxu1 }
0x26a2   :  { %v6829_v54 = vpop.f32.mrf.mxu1 }
0x26a4   :  { %v4645_v24 = vpop.f32.mrf.mxu1 }
0x26a6   :  { %v6830_v47 = vpop.f32.mrf.mxu1 }
0x26a8   :  { %v4741_v57 = vpop.f32.mrf.mxu1 }
0x26a9   :  { %v4798_v45 = vmul.f32 0.25, %v4741_v57 }
0x26aa   :  { %v6841_v27 = vpop.f32.mrf.mxu1 }
0x26ab   :  { %v4800_v49 = vsel %vm27_vm2, %v4798_v45, -inf }
0x26ac   :  { %v8458_v55 = vpop.f32.mrf.mxu0  ;;  %4801 = vmax.xlane.f32.xlu1 %v4800_v49  ;;  %v4744_v21 = vpop.f32.mrf.mxu1 }
0x26ad   :  { %v6995_v33 = vpack.i.bf16 %v8458_v55, %v8455_v12 }
0x26ae   :  { %v6835_v20 = vpop.f32.mrf.mxu0  ;;  %v6842_v26 = vpop.f32.mrf.mxu1 }
0x26b0   :  { %v4693_v25 = vpop.f32.mrf.mxu0 }
0x26b2   :  { %v6836_v35 = vpop.f32.mrf.mxu0 }
0x26b4   :  { %v4792_v59 = vpop.f32.mrf.mxu0 }
0x26b5   :  { %v4799_v32 = vmul.f32 0.25, %v4792_v59 }
0x26b6   :  { %v6847_v34 = vpop.f32.mrf.mxu0 }
0x26b7   :  { %v4803_v36 = vsel %vm27_vm2, %v4799_v32, -inf }
0x26b8   :  { %4804 = vmax.xlane.f32.xlu0 %v4803_v36  ;;  %v4795_v37 = vpop.f32.mrf.mxu0 }
0x26ba   :  { %v6848_v39 = vpop.f32.mrf.mxu0 }
0x26bd   :  { %4872 = vrot.lane.b32.xlu1 %v8249_v63, %s7303_s28 }
0x2735   :  { %v4802_v40 = vpop.xlane.xlu1 %4801 }
0x2736   :  { %v4806_v42 = vsub.f32 %v4798_v45, %v4802_v40 }
0x2738   :  { %v4808_v16 = vmul.f32 1.442695, %v4806_v42 }
0x2739   :  { %v4873_v38 = vpop.permute.xlu1 %4872 }
0x273a   :  { %7265 = vpow2.f32 %v4808_v16  ;;  %v4878_v50 = vsel %vm31_vm0, %v4873_v38, 0 }
0x273b   :  { %6856 = vmatpush3.bf16.msra.mxu0 %v4878_v50 }
0x273c   :  { %6867 = vmatprep.subr.bf16.mxu0 %v7294_v0 }
0x2741   :  { %v4805_v52 = vpop.xlane.xlu0 %4804 }
0x2742   :  { %v4807_v28 = vsub.f32 %v4799_v32, %v4805_v52 }
0x2744   :  { %v4810_v62 = vmul.f32 1.442695, %v4807_v28 }
0x2746   :  { %7267 = vpow2.f32 %v4810_v62 }
0x2747   :  { %v7266_v1 = vpop.eup %7265 }
0x2748   :  { %v4812_v3 = vsel %vm27_vm2, %v7266_v1, 0.0 }
0x2749   :  { %4813 = vadd.xlane.f32.xlu0 %v4812_v3 }
0x2753   :  { %v7268_v8 = vpop.eup %7267 }
0x2754   :  { %v4815_v10 = vsel %vm27_vm2, %v7268_v8, 0.0 }
0x2755   :  { %4816 = vadd.xlane.f32.xlu1 %v4815_v10 }
0x275f   :  { %4824 = vrot.lane.b32.xlu0 %v8157_v41, %s7303_s28 }
0x2763   :  { %4971 = vrot.lane.b32.xlu0 %v7831_v6, %s7304_s29 }
0x2766   :  { %4920 = vrot.lane.b32.xlu1 %v7823_v61, %s7304_s29 }
0x2767   :  { %4974 = vrot.lane.b32.xlu0 %v8159_v48, %s7304_s29 }
0x276a   :  { %4923 = vrot.lane.b32.xlu1 %v8148_v17, %s7304_s29 }
0x27d2   :  { %v4814_v18 = vpop.xlane.xlu0 %4813 }
0x27d3   :  { %7269 = vrcp.f32 %v4814_v18 }
0x27d6   :  { %v4825_v60 = vpop.permute.xlu0 %4824 }
0x27d7   :  { %v4830_v58 = vsel %vm31_vm0, %v4825_v60, 0 }
0x27d8   :  { %6850 = vmatpush3.bf16.msra.mxu1 %v4830_v58 }
0x27d9   :  { %6861 = vmatprep.subr.bf16.mxu1 %v7294_v0 }
0x27da   :  { %v4972_v57 = vpop.permute.xlu0 %4971 }
0x27db   :  { %v4973_v49 = vrot.slane %v4972_v57, 4 }
0x27dd   :  { %v4980_v26 = vsel %vm1621_vm6, %v4973_v49, 0 }
0x27de   :  { %v4817_v2 = vpop.xlane.xlu1 %4816  ;;  %v4975_v25 = vpop.permute.xlu0 %4974 }
0x27df   :  { %7271 = vrcp.f32 %v4817_v2 }
0x27e0   :  { %v7270_v11 = vpop.eup %7269 }
0x27e1   :  { %v4819_v43 = vmul.f32 %v7270_v11, %v7266_v1 }
0x27e2   :  { %v4921_v22 = vpop.permute.xlu1 %4920 }
0x27e3   :  { %v4822_v54 = vpack.c.bf16 %v4819_v43, %v4819_v43  ;;  %v4922_v24 = vrot.slane %v4921_v22, 4 }
0x27e5   :  { %v4929_v47 = vsel %vm1621_vm6, %v4922_v24, 0  ;;  %6852 = vmatmul.mubr.msk.bf16.vlgmr.msra.gmra.mxu1 %vm27_vm2, %v4822_v54 }
0x27e6   :  { %6862 = vmatpush3.bf16.xpose.msra.mxu1 %v4929_v47  ;;  %6863 = vmatprep.mubr.msk.bf16.mxu1 %vm7295_vm1, %v7294_v0  ;;  %v4924_v27 = vpop.permute.xlu1 %4923 }
0x27e7   :  { %6873 = vmatprep.subr.bf16.mxu1 %v7294_v0 }
0x27ec   :  { %v7272_v45 = vpop.eup %7271 }
0x27ed   :  { %v4821_v21 = vmul.f32 %v7272_v45, %v7268_v8  ;;  %6864 = vmatmul.mubr.msk.bf16.vlgmr.msra.gmra.mxu1 %vm1621_vm6, %v4924_v27 }
0x27ee   :  { %6875 = vmatprep.mubr.msk.bf16.mxu1 %vm7295_vm1, %v7294_v0 }
0x27ef   :  { %v4823_v20 = vpack.c.bf16 %v4821_v21, %v4821_v21 }
0x27f1   :  { %6858 = vmatmul.mubr.msk.bf16.vlgmr.msra.gmra.mxu0 %vm27_vm2, %v4823_v20 }
0x27f2   :  { %6868 = vmatpush3.bf16.xpose.msra.mxu0 %v4980_v26  ;;  %6869 = vmatprep.mubr.msk.bf16.mxu0 %vm7295_vm1, %v7294_v0 }
0x27f3   :  { %6879 = vmatprep.subr.bf16.mxu0 %v7294_v0 }
0x27f9   :  { %6870 = vmatmul.mubr.msk.bf16.vlgmr.msra.gmra.mxu0 %vm1621_vm6, %v4975_v25 }
0x27fa   :  { %6881 = vmatprep.mubr.msk.bf16.mxu0 %vm7295_vm1, %v7294_v0 }
0x28a5   :  { %v8497_v35 = vpop.f32.mrf.mxu1 }
0x28a7   :  { %v6853_v59 = vpop.f32.mrf.mxu1 }
0x28a9   :  { %v4869_v32 = vpop.f32.mrf.mxu1 }
0x28ab   :  { %v6854_v34 = vpop.f32.mrf.mxu1 }
0x28ad   :  { %v4965_v36 = vpop.f32.mrf.mxu1 }
0x28ae   :  { %v5022_v37 = vmul.f32 0.25, %v4965_v36 }
0x28af   :  { %v6865_v39 = vpop.f32.mrf.mxu1 }
0x28b0   :  { %v5024_v40 = vsel %vm27_vm2, %v5022_v37, -inf }
0x28b1   :  { %v8500_v42 = vpop.f32.mrf.mxu0  ;;  %5025 = vmax.xlane.f32.xlu1 %v5024_v40  ;;  %v4968_v16 = vpop.f32.mrf.mxu1 }
0x28b2   :  { %v7000_v38 = vpack.i.bf16 %v8500_v42, %v8497_v35  ;;  %v7118_v35 = vld [vmem:[%s8725_s2 + $0x15c] sm:$0xff]   ;;  %v7119_v42 = vld [vmem:[%s8725_s2 + $0x154] sm:$0xff]  }
0x28b3   :  { %v6859_v50 = vpop.f32.mrf.mxu0  ;;  %v6866_v52 = vpop.f32.mrf.mxu1 }
0x28b5   :  { %v4917_v28 = vpop.f32.mrf.mxu0 }
0x28b7   :  { %v6860_v62 = vpop.f32.mrf.mxu0 }
0x28b9   :  { %v5016_v1 = vpop.f32.mrf.mxu0 }
0x28ba   :  { %v5023_v3 = vmul.f32 0.25, %v5016_v1 }
0x28bb   :  { %v6871_v8 = vpop.f32.mrf.mxu0 }
0x28bc   :  { %v5027_v10 = vsel %vm27_vm2, %v5023_v3, -inf }
0x28bd   :  { %5028 = vmax.xlane.f32.xlu0 %v5027_v10  ;;  %v5019_v18 = vpop.f32.mrf.mxu0 }
0x28bf   :  { %v6872_v60 = vpop.f32.mrf.mxu0 }
0x28c2   :  { %5096 = vrot.lane.b32.xlu1 %v8249_v63, %s7304_s29 }
0x293a   :  { %v5026_v58 = vpop.xlane.xlu1 %5025 }
0x293b   :  { %v5030_v2 = vsub.f32 %v5022_v37, %v5026_v58 }
0x293d   :  { %v5032_v11 = vmul.f32 1.442695, %v5030_v2 }
0x293e   :  { %v5097_v43 = vpop.permute.xlu1 %5096 }
0x293f   :  { %7273 = vpow2.f32 %v5032_v11  ;;  %v5102_v22 = vsel %vm31_vm0, %v5097_v43, 0 }
0x2940   :  { %6880 = vmatpush3.bf16.msra.mxu0 %v5102_v22 }
0x2941   :  { %6891 = vmatprep.subr.bf16.mxu0 %v7294_v0 }
0x2946   :  { %v5029_v54 = vpop.xlane.xlu0 %5028 }
0x2947   :  { %v5031_v24 = vsub.f32 %v5023_v3, %v5029_v54 }
0x2949   :  { %v5034_v47 = vmul.f32 1.442695, %v5031_v24 }
0x294b   :  { %7275 = vpow2.f32 %v5034_v47 }
0x294c   :  { %v7274_v57 = vpop.eup %7273 }
0x294d   :  { %v5036_v45 = vsel %vm27_vm2, %v7274_v57, 0.0 }
0x294e   :  { %5037 = vadd.xlane.f32.xlu0 %v5036_v45 }
0x2958   :  { %v7276_v27 = vpop.eup %7275 }
0x2959   :  { %v5039_v49 = vsel %vm27_vm2, %v7276_v27, 0.0 }
0x295a   :  { %5040 = vadd.xlane.f32.xlu1 %v5039_v49 }
0x2964   :  { %5048 = vrot.lane.b32.xlu0 %v8157_v41, %s7304_s29 }
0x2968   :  { %5195 = vrot.lane.b32.xlu0 %v7831_v6, %s7305_s30 }
0x296b   :  { %5144 = vrot.lane.b32.xlu1 %v7823_v61, %s7305_s30 }
0x296c   :  { %5198 = vrot.lane.b32.xlu0 %v8159_v48, %s7305_s30 }
0x296f   :  { %5147 = vrot.lane.b32.xlu1 %v8148_v17, %s7305_s30 }
0x29d7   :  { %v5038_v21 = vpop.xlane.xlu0 %5037 }
0x29d8   :  { %7277 = vrcp.f32 %v5038_v21 }
0x29db   :  { %v5049_v20 = vpop.permute.xlu0 %5048 }
0x29dc   :  { %v5054_v26 = vsel %vm31_vm0, %v5049_v20, 0 }
0x29dd   :  { %6874 = vmatpush3.bf16.msra.mxu1 %v5054_v26 }
0x29de   :  { %6885 = vmatprep.subr.bf16.mxu1 %v7294_v0 }
0x29df   :  { %v5196_v17 = vpop.permute.xlu0 %5195 }
0x29e0   :  { %v5197_v39 = vrot.slane %v5196_v17, 4 }
0x29e2   :  { %v5204_v50 = vsel %vm1621_vm6, %v5197_v39, 0  ;;  %v7122_v39 = vld [vmem:[%s8725_s2 + $0x13c] sm:$0xff]  }
0x29e3   :  { %v5041_v25 = vpop.xlane.xlu1 %5040  ;;  %v5199_v52 = vpop.permute.xlu0 %5198 }
0x29e4   :  { %7279 = vrcp.f32 %v5041_v25 }
0x29e5   :  { %v7278_v6 = vpop.eup %7277 }
0x29e6   :  { %v5043_v59 = vmul.f32 %v7278_v6, %v7274_v57 }
0x29e7   :  { %v5145_v32 = vpop.permute.xlu1 %5144 }
0x29e8   :  { %v5046_v61 = vpack.c.bf16 %v5043_v59, %v5043_v59  ;;  %v5146_v34 = vrot.slane %v5145_v32, 4 }
0x29ea   :  { %v5153_v48 = vsel %vm1621_vm6, %v5146_v34, 0  ;;  %6876 = vmatmul.mubr.msk.bf16.vlgmr.msra.gmra.mxu1 %vm27_vm2, %v5046_v61 }
0x29eb   :  { %6886 = vmatpush3.bf16.xpose.msra.mxu1 %v5153_v48  ;;  %6887 = vmatprep.mubr.msk.bf16.mxu1 %vm7295_vm1, %v7294_v0  ;;  %v5148_v37 = vpop.permute.xlu1 %5147 }
0x29ec   :  { %6897 = vmatprep.subr.bf16.mxu1 %v7294_v0 }
0x29f1   :  { %v7280_v36 = vpop.eup %7279 }
0x29f2   :  { %v5045_v40 = vmul.f32 %v7280_v36, %v7276_v27  ;;  %6888 = vmatmul.mubr.msk.bf16.vlgmr.msra.gmra.mxu1 %vm1621_vm6, %v5148_v37  ;;  %v6980_v36 = vpack.i.bf16 %v8334_v4, %v8331_v46  ;;  %v7121_v37 = vld [vmem:[%s8725_s2 + $0x144] sm:$0xff]  }
0x29f3   :  { %6899 = vmatprep.mubr.msk.bf16.mxu1 %vm7295_vm1, %v7294_v0 }
0x29f4   :  { %v5047_v16 = vpack.c.bf16 %v5045_v40, %v5045_v40  ;;  %v7123_v40 = vld [vmem:[%s8725_s2 + $0x134] sm:$0xff]  }
0x29f6   :  { %6882 = vmatmul.mubr.msk.bf16.vlgmr.msra.gmra.mxu0 %vm27_vm2, %v5047_v16 }
0x29f7   :  { %6892 = vmatpush3.bf16.xpose.msra.mxu0 %v5204_v50  ;;  %6893 = vmatprep.mubr.msk.bf16.mxu0 %vm7295_vm1, %v7294_v0 }
0x29f8   :  { %6903 = vmatprep.subr.bf16.mxu0 %v7294_v0 }
0x29fe   :  { %6894 = vmatmul.mubr.msk.bf16.vlgmr.msra.gmra.mxu0 %vm1621_vm6, %v5199_v52  ;;  %v7124_v52 = vld [vmem:[%s8725_s2 + $0x12c] sm:$0xff]  }
0x29ff   :  { %6905 = vmatprep.mubr.msk.bf16.mxu0 %vm7295_vm1, %v7294_v0 }
0x2aaa   :  { %v5090_v28 = vpop.f32.mrf.mxu1 }
0x2aac   :  { %v6877_v62 = vpop.f32.mrf.mxu1 }
0x2aae   :  { %v5093_v1 = vpop.f32.mrf.mxu1 }
0x2ab0   :  { %v6878_v3 = vpop.f32.mrf.mxu1 }
0x2ab2   :  { %v5189_v8 = vpop.f32.mrf.mxu1 }
0x2ab3   :  { %v5246_v10 = vmul.f32 0.25, %v5189_v8 }
0x2ab4   :  { %v6889_v18 = vpop.f32.mrf.mxu1 }
0x2ab5   :  { %v5248_v60 = vsel %vm27_vm2, %v5246_v10, -inf }
0x2ab6   :  { %v5138_v58 = vpop.f32.mrf.mxu0  ;;  %5249 = vmax.xlane.f32.xlu1 %v5248_v60  ;;  %v5192_v2 = vpop.f32.mrf.mxu1 }
0x2ab7   :  { %v7005_v11 = vpack.i.bf16 %v5138_v58, %v5090_v28 }
0x2ab8   :  { %v6883_v43 = vpop.f32.mrf.mxu0  ;;  %v6890_v22 = vpop.f32.mrf.mxu1 }
0x2aba   :  { %v5141_v54 = vpop.f32.mrf.mxu0 }
0x2abc   :  { %v6884_v24 = vpop.f32.mrf.mxu0 }
0x2abe   :  { %v5240_v47 = vpop.f32.mrf.mxu0 }
0x2abf   :  { %v5247_v57 = vmul.f32 0.25, %v5240_v47 }
0x2ac0   :  { %v6895_v45 = vpop.f32.mrf.mxu0 }
0x2ac1   :  { %v5251_v27 = vsel %vm27_vm2, %v5247_v57, -inf }
0x2ac2   :  { %5252 = vmax.xlane.f32.xlu0 %v5251_v27  ;;  %v5243_v49 = vpop.f32.mrf.mxu0 }
0x2ac4   :  { %v6896_v21 = vpop.f32.mrf.mxu0 }
0x2b3f   :  { %v5250_v20 = vpop.xlane.xlu1 %5249 }
0x2b40   :  { %v5254_v26 = vsub.f32 %v5246_v10, %v5250_v20 }
0x2b42   :  { %v5256_v25 = vmul.f32 1.442695, %v5254_v26 }
0x2b44   :  { %7281 = vpow2.f32 %v5256_v25 }
0x2b4b   :  { %v5253_v6 = vpop.xlane.xlu0 %5252 }
0x2b4c   :  { %v5255_v59 = vsub.f32 %v5247_v57, %v5253_v6 }
0x2b4e   :  { %v5258_v32 = vmul.f32 1.442695, %v5255_v59 }
0x2b50   :  { %7283 = vpow2.f32 %v5258_v32 }
0x2b51   :  { %v7282_v61 = vpop.eup %7281 }
0x2b52   :  { %v5260_v34 = vsel %vm27_vm2, %v7282_v61, 0.0 }
0x2b53   :  { %5261 = vadd.xlane.f32.xlu0 %v5260_v34 }
0x2b5d   :  { %v7284_v48 = vpop.eup %7283 }
0x2b5e   :  { %v5263_v17 = vsel %vm27_vm2, %v7284_v48, 0.0 }
0x2b5f   :  { %5264 = vadd.xlane.f32.xlu1 %v5263_v17 }
0x2b69   :  { %5272 = vrot.lane.b32.xlu0 %v8157_v41, %s7305_s30 }
0x2b6d   :  { %6986 = vrot.lane.b32.xlu0 %v6985_v19, %s7304_s29 }
0x2b70   :  { %5320 = vrot.lane.b32.xlu1 %v8249_v63, %s7305_s30 }
0x2b71   :  { %6996 = vrot.lane.b32.xlu0 %v6995_v33, %s7297_s19  ;;  %v7117_v33 = vld [vmem:[%s8725_s2 + $0x164] sm:$0xff]  }
0x2b74   :  { %6981 = vrot.lane.b32.xlu1 %v6980_v36, %s7305_s30 }
0x2b75   :  { %7006 = vrot.lane.b32.xlu0 %v7005_v11, %s7296_s18 }
0x2b78   :  { %6991 = vrot.lane.b32.xlu1 %v6990_v23, %s7303_s28  ;;  %s7307_s28 = smov 120  }
0x2b7c   :  { %7001 = vrot.lane.b32.xlu1 %v7000_v38, %s7302_s27  ;;  %v7120_v38 = vld [vmem:[%s8725_s2 + $0x14c] sm:$0xff]   ;;  %s7306_s27 = smov 8  }
0x2bdc   :  { %v5262_v41 = vpop.xlane.xlu0 %5261 }
0x2bdd   :  { %7285 = vrcp.f32 %v5262_v41 }
0x2be0   :  { %v5273_v63 = vpop.permute.xlu0 %5272 }
0x2be1   :  { %v5278_v53 = vsel %vm31_vm0, %v5273_v63, 0 }
0x2be2   :  { %6898 = vmatpush3.bf16.msra.mxu1 %v5278_v53 }
0x2be3   :  { %6909 = vmatprep.subr.bf16.mxu1 %v7294_v0 }
0x2be4   :  { %v6987_v58 = vpop.permute.xlu0 %6986 }
0x2be5   :  { %v6989_v57 = vunpack.i.h.bf16 %v6987_v58  ;;  %v6988_v45 = vunpack.i.l.bf16 %v6987_v58  ;;  %v7125_v58 = vld [vmem:[%s8725_s2 + $0x1e4] sm:$0xff]  }
0x2be8   :  { %v5265_v46 = vpop.xlane.xlu1 %5264  ;;  %v6997_v43 = vpop.permute.xlu0 %6996 }
0x2be9   :  { %7287 = vrcp.f32 %v5265_v46  ;;  %v6999_v59 = vunpack.i.h.bf16 %v6997_v43 }
0x2bea   :  { %v7286_v4 = vpop.eup %7285 }
0x2beb   :  { %v5267_v13 = vmul.f32 %v7286_v4, %v7282_v61 }
0x2bec   :  { %v5321_v19 = vpop.permute.xlu1 %5320  ;;  %v7007_v32 = vpop.permute.xlu0 %7006 }
0x2bed   :  { %v5270_v56 = vpack.c.bf16 %v5267_v13, %v5267_v13  ;;  %v5326_v9 = vsel %vm31_vm0, %v5321_v19, 0  ;;  %v7009_v17 = vunpack.i.h.bf16 %v7007_v32  ;;  %v7008_v36 = vunpack.i.l.bf16 %v7007_v32  ;;  %v7130_v32 = vld [vmem:[%s8725_s2 + $0x194] sm:$0xff]  }
0x2bee   :  { %6904 = vmatpush3.bf16.msra.mxu0 %v5326_v9  ;;  %v3496_v9 = vld [vmem:[%s8727_s4 + $0x19] ss:$0 sm:$0xff] }
0x2bef   :  { %6900 = vmatmul.mubr.msk.bf16.vlgmr.msra.gmra.mxu1 %vm27_vm2, %v5270_v56  ;;  %6307 = vmatprep.subr.bf16.mxu0 %v7125_v58 }
0x2bf0   :  { %6925 = vmatprep.mubr.msk.bf16.mxu1 %vm7295_vm1, %v7294_v0  ;;  %6910 = vmatpush3.bf16.msra.mxu1 %v7117_v33  ;;  %v6982_v60 = vpop.permute.xlu1 %6981  ;;  %v3583_v33 = vadd.f32 %v8291_v51, %v3496_v9 }
0x2bf1   :  { %6911 = vmatprep.subr.bf16.mxu1 %v7294_v0  ;;  %v6983_v11 = vunpack.i.l.bf16 %v6982_v60 }
0x2bf3   :  { %v5424_v54 = vsel %vm1621_vm6, %v8287_v44, %v6983_v11 }
0x2bf4   :  { %6912 = vmatpush3.bf16.msra.mxu1 %v7118_v35  ;;  %v6992_v2 = vpop.permute.xlu1 %6991  ;;  %v5426_v49 = vsel %vm196_vm3, %v5424_v54, %v6988_v45 }
0x2bf5   :  { %6913 = vmatprep.subr.bf16.mxu1 %v7294_v0  ;;  %v6994_v24 = vunpack.i.h.bf16 %v6992_v2  ;;  %v6993_v47 = vunpack.i.l.bf16 %v6992_v2  ;;  %v7128_v2 = vld [vmem:[%s8725_s2 + $0x19c] sm:$0xff]  }
0x2bf6   :  { %v7288_v23 = vpop.eup %7287 }
0x2bf7   :  { %v5269_v12 = vmul.f32 %v7288_v23, %v7284_v48  ;;  %v5428_v20 = vsel %vm3466_vm7, %v5426_v49, %v6993_v47  ;;  %v3580_v23 = vadd.f32 %v8289_v29, %v3496_v9  ;;  %v5552_v29 = vld [vmem:[%s8727_s4 + $0x1c] ss:$0 sm:$0xff] }
0x2bf8   :  { %6914 = vmatpush3.bf16.msra.mxu1 %v7119_v42  ;;  %v7002_v27 = vpop.permute.xlu1 %7001 }
0x2bf9   :  { %v5271_v55 = vpack.c.bf16 %v5269_v12, %v5269_v12  ;;  %6915 = vmatprep.subr.bf16.mxu1 %v7294_v0  ;;  %v7004_v25 = vunpack.i.h.bf16 %v7002_v27  ;;  %v7003_v6 = vunpack.i.l.bf16 %v7002_v27  ;;  %v5455_v12 = vld [vmem:[%s8727_s4 + $0x1a] ss:$0 sm:$0xff] }
0x2bfb   :  { %6906 = vmatmul.mubr.msk.bf16.vlgmr.msra.gmra.mxu0 %vm27_vm2, %v5271_v55  ;;  %v3586_v55 = vmax.f32 %v3580_v23, 0.0 }
0x2bfc   :  { %6916 = vmatpush3.bf16.msra.mxu1 %v7120_v38 }
0x2bfd   :  { %6917 = vmatprep.subr.bf16.mxu1 %v7294_v0 }
0x2c00   :  { %6918 = vmatpush3.bf16.msra.mxu1 %v7121_v37  ;;  %v8631_v37 = vadd.f32 %v3586_v55, %v7627_v14  ;;  %v7135_v55 = vld [vmem:[%s8725_s2 + $0x1bc] sm:$0xff]  }
0x2c01   :  { %6919 = vmatprep.subr.bf16.mxu1 %v7294_v0 }
0x2c04   :  { %6920 = vmatpush3.bf16.msra.mxu1 %v7122_v39  ;;  %v3587_v39 = vmax.f32 %v3583_v33, 0.0  ;;  %v7136_v33 = vld [vmem:[%s8725_s2 + $0x17c] sm:$0xff]  }
0x2c05   :  { %6921 = vmatprep.subr.bf16.mxu1 %v7294_v0 }
0x2c06   :  { %v8644_v14 = vadd.f32 %v3587_v39, %v7629_v15  ;;  %v7126_v15 = vld [vmem:[%s8725_s2 + $0x1a4] sm:$0xff]  }
0x2c07   :  { %6308 = vmatpush3.bf16.msra.mxu0 %v7126_v15 }
0x2c08   :  { %6922 = vmatpush3.bf16.msra.mxu1 %v7123_v40 }
0x2c09   :  { %6923 = vmatprep.subr.bf16.mxu1 %v7294_v0  ;;  %v6984_v0 = vunpack.i.h.bf16 %v6982_v60 }
0x2c0b   :  { %v5425_v22 = vsel %vm1621_vm6, %v8296_v7, %v6984_v0  ;;  %v6998_v7 = vunpack.i.l.bf16 %v6997_v43  ;;  %v5565_v43 = vld [vmem:[%s8727_s4 + $0x18] sm:$0xc0] }
0x2c0c   :  { %6924 = vmatpush3.bf16.msra.mxu1 %v7124_v52  ;;  %v5427_v21 = vsel %vm196_vm3, %v5425_v22, %v6989_v57  ;;  %v5566_v22 = vld [vmem:[%s8727_s4 + $0x30] sm:$0x3f]  ;;  %v5571_v54 = vrot.slane %v5565_v43, 6 }
0x2c0d   :  { %v5429_v26 = vsel %vm3466_vm7, %v5427_v21, %v6994_v24  ;;  %v5430_v44 = vsel %vm602_vm5, %v5428_v20, %v6998_v7  ;;  %v5572_v24 = vrot.slane %v5566_v22, 6  ;;  %v7129_v7 = vld [vmem:[%s8725_s2 + $0x1d4] sm:$0xff]  }
0x2c0e   :  { %v5431_v61 = vsel %vm602_vm5, %v5429_v26, %v6999_v59  ;;  %v5432_v34 = vsel %vm523_vm4, %v5430_v44, %v7003_v6 }
0x2c0f   :  { %v5433_v48 = vsel %vm523_vm4, %v5431_v61, %v7004_v25  ;;  %v5434_v46 = vsel %vm3473_vm8, %v5432_v34, %v7008_v36  ;;  %v5573_v47 = vsel %vm5570_vm10, %v5571_v54, %v5572_v24  ;;  %v5567_v36 = vld [vmem:[%s8727_s4 + $0x1d] ss:$0 sm:$0xff] }
0x2c10   :  { %v5435_v4 = vsel %vm3473_vm8, %v5433_v48, %v7009_v17  ;;  %v7131_v17 = vld [vmem:[%s8725_s2 + $0x1cc] sm:$0xff]  }
0x2caf   :  { %v5314_v16 = vpop.f32.mrf.mxu1 }
0x2cb1   :  { %v6901_v50 = vpop.f32.mrf.mxu1 }
0x2cb3   :  { %v5317_v28 = vpop.f32.mrf.mxu1 }
0x2cb5   :  { %v6902_v62 = vpop.f32.mrf.mxu1 }
0x2cbb   :  { %v5362_v1 = vpop.f32.mrf.mxu0 }
0x2cbc   :  { %v7010_v3 = vpack.i.bf16 %v5362_v1, %v5314_v16  ;;  %v5551_v16 = vld [vmem:[%s8727_s4 + $0x1b] ss:$0 sm:$0xff] }
0x2cbd   :  { %v6907_v8 = vpop.f32.mrf.mxu0  ;;  %v5553_v62 = vmul.f32 %v5551_v16, %v8631_v37 }
0x2cbe   :  { %7011 = vrot.lane.b32.xlu1 %v7010_v3, %s7301_s26 }
0x2cbf   :  { %v5365_v10 = vpop.f32.mrf.mxu0 }
0x2cc1   :  { %v6908_v18 = vpop.f32.mrf.mxu0 }
0x2cc2   :  { %v5554_v18 = vmul.f32 %v5551_v16, %v8644_v14  ;;  %v7139_v16 = vld [vmem:[%s8725_s2 + $0x1ac] sm:$0xff]  }
0x2d30   :  { %v7012_v41 = vpop.permute.xlu1 %7011 }
0x2d31   :  { %v7014_v63 = vunpack.i.h.bf16 %v7012_v41  ;;  %v7013_v53 = vunpack.i.l.bf16 %v7012_v41  ;;  %v7132_v41 = vld [vmem:[%s8725_s2 + $0x18c] sm:$0xff]  }
0x2d33   :  { %v5437_v13 = vsel %vm3476_vm9, %v5435_v4, %v7014_v63  ;;  %v5436_v19 = vsel %vm3476_vm9, %v5434_v46, %v7013_v53 }
0x2d34   :  { %v5438_v56 = vpack.c.bf16 %v5437_v13, %v5436_v19  ;;  %v7133_v13 = vld [vmem:[%s8725_s2 + $0x1c4] sm:$0xff]  }
0x2d35   :  { %v7134_v19 = vld [vmem:[%s8725_s2 + $0x184] sm:$0xff]  }
0x2d36   :  { %6926 = vmatmul.mubr.bf16.vlgmr.msra.gmra.mxu1 %v5438_v56 }
0x2df6   :  { %v5538_v35 = vpop.f32.mrf.mxu1 }
0x2df7   :  { %v5539_v42 = vadd.f32 %v5538_v35, %v5455_v12 }
0x2df8   :  { %v6927_v38 = vpop.f32.mrf.mxu1 }
0x2df9   :  { %v5545_v40 = vmax.f32 %v5539_v42, 0.0  ;;  %v7137_v38 = vld [vmem:[%s8725_s2 + $0x1b4] sm:$0xff]  }
0x2dfa   :  { %v5541_v50 = vpop.f32.mrf.mxu1 }
0x2dfb   :  { %v8640_v52 = vadd.f32 %v5545_v40, %v7788_v30  ;;  %v5542_v51 = vadd.f32 %v5541_v50, %v5455_v12  ;;  %v7138_v40 = vld [vmem:[%s8725_s2 + $0x174] sm:$0xff]  }
0x2dfc   :  { %v6928_v28 = vpop.f32.mrf.mxu1 }
0x2dfd   :  { %v5555_v1 = vmul.f32 %v5552_v29, %v8640_v52  ;;  %v5546_v3 = vmax.f32 %v5542_v51, 0.0 }
0x2dff   :  { %v8648_v8 = vadd.f32 %v5546_v3, %v7790_v31  ;;  %v5557_v10 = vadd.f32 %v5555_v1, %v5553_v62  ;;  %v7127_v31 = vld [vmem:[%s8725_s2 + $0x1dc] sm:$0xff]  }
0x2e00   :  { %6309 = vmatprep.subr.bf16.mxu0 %v7127_v31 }
0x2e01   :  { %v5556_v60 = vmul.f32 %v5552_v29, %v8648_v8  ;;  %5559 = vadd.xlane.f32.xlu0 %v5557_v10  ;;  %6310 = vmatpush3.bf16.msra.mxu0 %v7128_v2 }
0x2e02   :  { %6311 = vmatprep.subr.bf16.mxu0 %v7129_v7 }
0x2e03   :  { %v5558_v30 = vadd.f32 %v5556_v60, %v5554_v18 }
0x2e05   :  { %5561 = vadd.xlane.f32.xlu1 %v5558_v30  ;;  %6312 = vmatpush3.bf16.msra.mxu0 %v7130_v32 }
0x2e06   :  { %6313 = vmatprep.subr.bf16.mxu0 %v7131_v17 }
0x2e09   :  { %6314 = vmatpush3.bf16.msra.mxu0 %v7132_v41 }
0x2e0a   :  { %6315 = vmatprep.subr.bf16.mxu0 %v7133_v13 }
0x2e0d   :  { %6316 = vmatpush3.bf16.msra.mxu0 %v7134_v19 }
0x2e0e   :  { %6317 = vmatprep.subr.bf16.mxu0 %v7135_v55 }
0x2e11   :  { %6318 = vmatpush3.bf16.msra.mxu0 %v7136_v33 }
0x2e12   :  { %6319 = vmatprep.subr.bf16.mxu0 %v7137_v38 }
0x2e15   :  { %6320 = vmatpush3.bf16.msra.mxu0 %v7138_v40 }
0x2e16   :  { %6321 = vmatprep.subr.bf16.mxu0 %v7139_v16 }
0x2e8a   :  { %v5560_v0 = vpop.xlane.xlu0 %5559 }
0x2e8b   :  { %7289 = vtanh.f32 %v5560_v0 }
0x2e8e   :  { %v5562_v11 = vpop.xlane.xlu1 %5561 }
0x2e8f   :  { %7291 = vtanh.f32 %v5562_v11 }
0x2e98   :  { %v7290_v57 = vpop.eup %7289 }
0x2e99   :  { %v5575_v45 = vmul.f32 %v7290_v57, %v5573_v47 }
0x2e9b   :  { %v5577_v27 = vsel %vm27_vm2, %v5575_v45, 0.0 }
0x2e9c   :  { %v7292_v49 = vpop.eup %7291  ;;  %v5578_v21 = vrot.slane %v5577_v27, 4 }
0x2e9d   :  { %v5576_v20 = vmul.f32 %v7292_v49, %v5573_v47 }
0x2e9e   :  { %v5579_v26 = vadd.f32 %v5578_v21, %v5577_v27 }
0x2e9f   :  { %v5584_v25 = vsel %vm27_vm2, %v5576_v20, 0.0 }
0x2ea0   :  { %v5580_v6 = vrot.slane %v5579_v26, 2  ;;  %v5585_v59 = vrot.slane %v5584_v25, 4 }
0x2ea2   :  { %v5581_v44 = vadd.f32 %v5580_v6, %v5579_v26  ;;  %v5586_v61 = vadd.f32 %v5585_v59, %v5584_v25 }
0x2ea4   :  { %v5582_v34 = vrot.slane %v5581_v44, 1  ;;  %v5587_v48 = vrot.slane %v5586_v61, 2 }
0x2ea6   :  { %v5583_v63 = vadd.f32 %v5582_v34, %v5581_v44  ;;  %v5588_v53 = vadd.f32 %v5587_v48, %v5586_v61 }
0x2ea8   :  { %v5591_v46 = vadd.f32 %v5583_v63, %v5567_v36  ;;  %v5589_v4 = vrot.slane %v5588_v53, 1 }
0x2eaa   :  { %v5593_v56 = vmax.f32 %v5591_v46, 0.0  ;;  %v5590_v9 = vadd.f32 %v5589_v4, %v5588_v53 }
0x2eac   :  { %v5598_v23 = vrot.slane %v5593_v56, %v7767_v5  ;;  %v5592_v12 = vadd.f32 %v5590_v9, %v5567_v36 }
0x2eae   :  { %5600 = vbcast.lane.b32.xlu0 %v5598_v23, 256  ;;  %v5594_v35 = vmax.f32 %v5592_v12, 0.0 }
0x2eb0   :  { %v5605_v42 = vrot.slane %v5594_v35, %v7767_v5  ;;  %v5826_v39 = vrot.slane %v5594_v35, 7  ;;  %v7140_v5 = vld [vmem:[%s8725_s2 + $0x16c] sm:$0xff]  }
0x2eb1   :  { %6322 = vmatpush3.bf16.msra.mxu0 %v7140_v5 }
0x2eb2   :  { %5607 = vbcast.lane.b32.xlu1 %v5605_v42, 256  ;;  %v5827_v29 = vsel %vm5643_vm11, %v5826_v39, %v5593_v56  ;;  %5781 = vrot.lane.b32.xlu0 %v5567_v36, %s7307_s28 }
0x2eb6   :  { %5828 = vrot.lane.b32.xlu1 %v5827_v29, %s7306_s27 }
0x2f20   :  { %v5601_v50 = vpop.permute.xlu0 %5600 }
0x2f21   :  { %v5609_v51 = vmul.f32 %v5601_v50, %v8631_v37  ;;  %v5625_v28 = vmul.f32 %v5601_v50, %v8640_v52 }
0x2f23   :  { %v5611_v62 = vrot.slane %v5609_v51, 4  ;;  %v5627_v1 = vrot.slane %v5625_v28, 4 }
0x2f24   :  { %v5608_v3 = vpop.permute.xlu1 %5607  ;;  %v5782_v48 = vpop.permute.xlu0 %5781 }
0x2f25   :  { %v5612_v10 = vadd.f32 %v5611_v62, %v5609_v51  ;;  %v5628_v18 = vadd.f32 %v5627_v1, %v5625_v28  ;;  %v5610_v60 = vmul.f32 %v5608_v3, %v8644_v14  ;;  %v5626_v30 = vmul.f32 %v5608_v3, %v8648_v8 }
0x2f27   :  { %v5613_v58 = vrot.slane %v5612_v10, 2  ;;  %v5629_v15 = vrot.slane %v5628_v18, 2  ;;  %v5617_v31 = vrot.slane %v5610_v60, 4  ;;  %v5633_v2 = vrot.slane %v5626_v30, 4 }
0x2f28   :  { %v5829_v63 = vpop.permute.xlu1 %5828 }
0x2f29   :  { %v5614_v0 = vadd.f32 %v5613_v58, %v5612_v10  ;;  %v5630_v11 = vadd.f32 %v5629_v15, %v5628_v18  ;;  %v5618_v43 = vadd.f32 %v5617_v31, %v5610_v60  ;;  %v5634_v22 = vadd.f32 %v5633_v2, %v5626_v30 }
0x2f2b   :  { %v5615_v37 = vrot.slane %v5614_v0, 1  ;;  %v5631_v54 = vrot.slane %v5630_v11, 1  ;;  %v5619_v52 = vrot.slane %v5618_v43, 2  ;;  %v5635_v24 = vrot.slane %v5634_v22, 2 }
0x2f2d   :  { %v5620_v47 = vadd.f32 %v5619_v52, %v5618_v43  ;;  %v5636_v57 = vadd.f32 %v5635_v24, %v5634_v22  ;;  %v5616_v45 = vadd.f32 %v5615_v37, %v5614_v0  ;;  %v5632_v27 = vadd.f32 %v5631_v54, %v5630_v11 }
0x2f2f   :  { %v5621_v49 = vrot.slane %v5620_v47, 1  ;;  %v5637_v14 = vrot.slane %v5636_v57, 1  ;;  %v5623_v20 = vmul.f32 0.125, %v5616_v45  ;;  %v5639_v26 = vmul.f32 0.125, %v5632_v27 }
0x2f31   :  { %v5622_v21 = vadd.f32 %v5621_v49, %v5620_v47  ;;  %v5638_v8 = vadd.f32 %v5637_v14, %v5636_v57 }
0x2f33   :  { %v5624_v25 = vmul.f32 0.125, %v5622_v21  ;;  %v5640_v6 = vmul.f32 0.125, %v5638_v8 }
0x2f35   :  { %v5648_v59 = vsel %vm5643_vm11, %v5640_v6, %v5639_v26  ;;  %v5644_v7 = vsel %vm5643_vm11, %v5624_v25, %v5623_v20 }
0x2f36   :  { %v5651_v32 = vpack.c.bf16 %v5648_v59, %v5648_v59  ;;  %v5650_v44 = vpack.c.bf16 %v5644_v7, %v5644_v7 }
0x2f38   :  { %5816 = vmatprep.mubr.bf16.mxu0 %v5651_v32 }
0x2f39   :  { %5817 = vmatmul.mubr.bf16.vlgmr.msra.gmra.mxu0 %v5650_v44 }
0x2ff9   :  { %v6323_v61 = vpop.f32.mrf.mxu0 }
0x2ffb   :  { %v6324_v34 = vpop.f32.mrf.mxu0 }
0x2ffc   :  { %v6325_v17 = vadd.f32 %v6324_v34, %v6323_v61 }
0x2ffd   :  { %v6326_v36 = vpop.f32.mrf.mxu0 }
0x2ffe   :  { %v5819_v41 = vadd.f32 %v6325_v17, %v5782_v48 }
0x2fff   :  { %v6327_v53 = vpop.f32.mrf.mxu0 }
0x3000   :  { %v5831_v46 = vsel %vm27_vm2, %v5819_v41, %v5829_v63 }
0x3001   :  { %v5832_v4 = vsel %vm1621_vm6, %v5831_v46, 0.0 }
0x3002   :  { %5833 = vst [vmem:[%s8730_s5] sm:$0x3] %v5832_v4 }

</bundles_post_ra>
